<compile_context>
chip_gen: v7x
topology: tpu7x:2x2x1
jax: 0.10.0
libtpu: 0.0.40
codegen_flags: <defaults>
</compile_context>

<pallas_src>
import functools
import math

import jax
import jax.numpy as jnp
from jax import lax
from jax.experimental import pallas as pl
from jax.experimental.pallas import tpu as pltpu


MEXICAN_HAT_C = 2.0 / (math.sqrt(3.0) * math.pi ** 0.25)
BN_EPS = 1e-5


def _round_up(x, m):
    return ((x + m - 1) // m) * m


def wavkan_kernel(x_ref, inv_s_ref, t_ref, w_ref, gamma_ref, beta_ref, o_ref,
                  *, b_sub, n_b_chunks):
    """One (Dout-tile j, Din-tile k) grid step.

    Accumulates the weighted wavelet reduction over Din tiles directly into the
    resident (B, TN) output block; applies BatchNorm1d on the last Din tile.
    """
    k = pl.program_id(1)

    @pl.when(k == 0)
    def _init():
        o_ref[...] = jnp.zeros_like(o_ref)

    inv_s = inv_s_ref[...]     # (TN, TK)  precomputed 1/scale
    t = t_ref[...]             # (TN, TK)
    w = w_ref[...]             # (TN, TK)  already scaled by MEXICAN_HAT_C

    def body(c, carry):
        b0 = pl.multiple_of(c * b_sub, b_sub)
        xb = x_ref[pl.ds(b0, b_sub), :]                              # (b_sub, TK)
        # Bounded 3-D working slab: (b_sub, TN, TK); reduce over Din immediately.
        z = (xb[:, None, :] - t[None, :, :]) * inv_s[None, :, :]
        zz = z * z
        wav = (zz - 1.0) * jnp.exp(-0.5 * zz)
        contrib = jnp.sum(wav * w[None, :, :], axis=2)               # (b_sub, TN)
        o_ref[pl.ds(b0, b_sub), :] += contrib
        return carry

    lax.fori_loop(0, n_b_chunks, body, 0, unroll=True)

    @pl.when(k == pl.num_programs(1) - 1)
    def _finalize():
        # BatchNorm1d (training forward): batch mean / biased variance over B.
        y = o_ref[...]                                               # (B, TN)
        mean = jnp.mean(y, axis=0, keepdims=True)
        diff = y - mean
        var = jnp.mean(diff * diff, axis=0, keepdims=True)
        y_hat = diff * lax.rsqrt(var + BN_EPS)
        o_ref[...] = y_hat * gamma_ref[...] + beta_ref[...]


def wavelet_kan_forward(x, scale, translation, wavelet_weights, gamma, beta,
                        *, tn=128, tk=128):
    B, Din = x.shape
    Dout = wavelet_weights.shape[0]

    din_p = _round_up(Din, tk)
    dout_p = _round_up(Dout, tn)

    # Lane-aligned padding. Padded Din columns carry weight 0 -> exact; padded
    # Dout rows produce y == 0 (finite after BN) and are sliced off.
    x_p = jnp.pad(x, ((0, 0), (0, din_p - Din)))
    scale_p = jnp.pad(scale, ((0, dout_p - Dout), (0, din_p - Din)),
                      constant_values=1.0)
    trans_p = jnp.pad(translation, ((0, dout_p - Dout), (0, din_p - Din)))
    w_p = jnp.pad(MEXICAN_HAT_C * wavelet_weights,
                  ((0, dout_p - Dout), (0, din_p - Din)))
    gamma_p = jnp.pad(gamma, ((0, 0), (0, dout_p - Dout)), constant_values=1.0)
    beta_p = jnp.pad(beta, ((0, 0), (0, dout_p - Dout)))
    inv_scale = 1.0 / scale_p                    # divide hoisted out of the kernel

    b_sub = 8 if B % 8 == 0 else B               # sublane-aligned batch sub-chunk
    n_b_chunks = B // b_sub

    grid = (dout_p // tn, din_p // tk)

    n_elem = B * dout_p * din_p
    cost = pl.CostEstimate(
        flops=8 * n_elem + 6 * B * dout_p,
        transcendentals=n_elem,
        bytes_accessed=4 * (B * din_p + 3 * dout_p * din_p + 2 * dout_p
                            + B * dout_p),
    )

    kernel = functools.partial(wavkan_kernel, b_sub=b_sub,
                               n_b_chunks=n_b_chunks)

    out_p = pl.pallas_call(
        kernel,
        out_shape=jax.ShapeDtypeStruct((B, dout_p), jnp.float32),
        grid=grid,
        in_specs=[
            pl.BlockSpec((B, tk), lambda j, k: (0, k)),        # x
            pl.BlockSpec((tn, tk), lambda j, k: (j, k)),       # 1/scale
            pl.BlockSpec((tn, tk), lambda j, k: (j, k)),       # translation
            pl.BlockSpec((tn, tk), lambda j, k: (j, k)),       # C * wavelet_weights
            pl.BlockSpec((1, tn), lambda j, k: (0, j)),        # bn gamma
            pl.BlockSpec((1, tn), lambda j, k: (0, j)),        # bn beta
        ],
        out_specs=pl.BlockSpec((B, tn), lambda j, k: (0, j)),  # resident accumulator
        compiler_params=pltpu.CompilerParams(
            dimension_semantics=("parallel", "arbitrary"),
            vmem_limit_bytes=32 * 1024 * 1024,
        ),
        cost_estimate=cost,
    )(x_p, inv_scale, trans_p, w_p, gamma_p, beta_p)

    return out_p[:, :Dout]


def reference_forward(x, scale, translation, wavelet_weights, gamma, beta):
    x_scaled = (x[:, None, :] - translation[None]) / scale[None]
    wav = MEXICAN_HAT_C * (x_scaled ** 2 - 1.0) * jnp.exp(-0.5 * x_scaled ** 2)
    y = jnp.sum(wav * wavelet_weights[None], axis=2)
    mean = jnp.mean(y, axis=0, keepdims=True)
    var = jnp.mean((y - mean) ** 2, axis=0, keepdims=True)
    return (y - mean) * jax.lax.rsqrt(var + BN_EPS) * gamma + beta


if __name__ == "__main__":
    B, Din, Dout = 8, 16, 32

    key = jax.random.PRNGKey(0)
    k_x, k_w = jax.random.split(key)

    # Inputs
    x = jax.random.normal(k_x, (B, Din), dtype=jnp.float32)

    # Parameters (matching the PyTorch module's init):
    #   WaveletTransform: scale = ones, translation = zeros
    #   LinearCombinationLayer.wavelet_weights: kaiming_uniform_(a=sqrt(5))
    #     -> uniform(-1/sqrt(fan_in), 1/sqrt(fan_in)), fan_in = Din
    #   BatchNorm1d: gamma = ones, beta = zeros (training-mode forward)
    scale = jnp.ones((Dout, Din), dtype=jnp.float32)
    translation = jnp.zeros((Dout, Din), dtype=jnp.float32)
    bound = 1.0 / math.sqrt(Din)
    wavelet_weights = jax.random.uniform(
        k_w, (Dout, Din), minval=-bound, maxval=bound, dtype=jnp.float32)
    gamma = jnp.ones((1, Dout), dtype=jnp.float32)
    beta = jnp.zeros((1, Dout), dtype=jnp.float32)

    out = wavelet_kan_forward(x, scale, translation, wavelet_weights, gamma, beta)
    out = jax.block_until_ready(out)

    ref = reference_forward(x, scale, translation, wavelet_weights, gamma, beta)
    assert out.shape == (B, Dout)
    assert jnp.allclose(out, ref, atol=1e-4, rtol=1e-4), "mismatch vs JAX reference"

    print("KERNEL_OK")
</pallas_src>

<mosaic_0001>
module attributes {stable_mosaic.version = 11 : i64} {
  func.func @wavkan_kernel(%arg0: i32, %arg1: i32, %arg2: memref<8x128xf32, #tpu.memory_space<vmem>>, %arg3: memref<128x128xf32, #tpu.memory_space<vmem>>, %arg4: memref<128x128xf32, #tpu.memory_space<vmem>>, %arg5: memref<128x128xf32, #tpu.memory_space<vmem>>, %arg6: memref<1x128xf32, #tpu.memory_space<vmem>>, %arg7: memref<1x128xf32, #tpu.memory_space<vmem>>, %arg8: memref<8x128xf32, #tpu.memory_space<vmem>>) attributes {dimension_semantics = [#tpu.dimension_semantics<parallel>, #tpu.dimension_semantics<arbitrary>], iteration_bounds = array<i64: 1, 1>, scalar_prefetch = 0 : i64, scratch_operands = 0 : i64, tpu.core_type = #tpu.core_type<tc>, window_params = [{transform_indices = @transform_0, window_bounds = array<i64: 8, 128>}, {transform_indices = @transform_1, window_bounds = array<i64: 128, 128>}, {transform_indices = @transform_2, window_bounds = array<i64: 128, 128>}, {transform_indices = @transform_3, window_bounds = array<i64: 128, 128>}, {transform_indices = @transform_4, window_bounds = array<i64: 1, 128>}, {transform_indices = @transform_5, window_bounds = array<i64: 1, 128>}, {transform_indices = @transform_6, window_bounds = array<i64: 8, 128>}]} {
    %c0_i32 = arith.constant 0 : i32
    %0 = arith.cmpi eq, %arg1, %c0_i32 : i32
    %1 = arith.extui %0 : i1 to i32
    %c0_i32_0 = arith.constant 0 : i32
    %2 = arith.cmpi ne, %1, %c0_i32_0 : i32
    scf.if %2 {
      %cst_14 = arith.constant 0.000000e+00 : f32
      %37 = vector.broadcast %cst_14 : f32 to vector<8x128xf32>
      %c0_15 = arith.constant 0 : index
      %c0_16 = arith.constant 0 : index
      %38 = vector.load %arg8[%c0_15, %c0_16] : memref<8x128xf32, #tpu.memory_space<vmem>>, vector<8x128xf32>
      tpu.vector_store %arg8[%c0_15, %c0_16], %37 {strides = array<i32>} : memref<8x128xf32, #tpu.memory_space<vmem>>, vector<8x128xf32>,
    } else {
    }
    %c0 = arith.constant 0 : index
    %c0_1 = arith.constant 0 : index
    %3 = vector.load %arg3[%c0, %c0_1] : memref<128x128xf32, #tpu.memory_space<vmem>>, vector<128x128xf32>
    %c0_2 = arith.constant 0 : index
    %c0_3 = arith.constant 0 : index
    %4 = vector.load %arg4[%c0_2, %c0_3] : memref<128x128xf32, #tpu.memory_space<vmem>>, vector<128x128xf32>
    %c0_4 = arith.constant 0 : index
    %c0_5 = arith.constant 0 : index
    %5 = vector.load %arg5[%c0_4, %c0_5] : memref<128x128xf32, #tpu.memory_space<vmem>>, vector<128x128xf32>
    %c0_i32_6 = arith.constant 0 : i32
    %c8_i32 = arith.constant 8 : i32
    %6 = arith.muli %c0_i32_6, %c8_i32 : i32
    %7 = tpu.assume_multiple %6, 8 : i32
    %8 = arith.index_cast %7 : i32 to index
    %c0_7 = arith.constant 0 : index
    %9 = vector.load %arg2[%8, %c0_7] : memref<8x128xf32, #tpu.memory_space<vmem>>, vector<8x128xf32>
    %10 = vector.shape_cast %9 : vector<8x128xf32> to vector<8x1x128xf32>
    %11 = vector.shape_cast %4 : vector<128x128xf32> to vector<1x128x128xf32>
    %12 = vector.broadcast %10 : vector<8x1x128xf32> to vector<8x128x128xf32>
    %13 = vector.broadcast %11 : vector<1x128x128xf32> to vector<8x128x128xf32>
    %14 = arith.subf %12, %13 : vector<8x128x128xf32>
    %15 = vector.shape_cast %3 : vector<128x128xf32> to vector<1x128x128xf32>
    %16 = vector.broadcast %15 : vector<1x128x128xf32> to vector<8x128x128xf32>
    %17 = arith.mulf %14, %16 : vector<8x128x128xf32>
    %18 = arith.mulf %17, %17 : vector<8x128x128xf32>
    %cst = arith.constant 1.000000e+00 : f32
    %19 = vector.broadcast %cst : f32 to vector<8x128x128xf32>
    %20 = arith.subf %18, %19 : vector<8x128x128xf32>
    %cst_8 = arith.constant -5.000000e-01 : f32
    %21 = vector.broadcast %cst_8 : f32 to vector<8x128x128xf32>
    %22 = arith.mulf %21, %18 : vector<8x128x128xf32>
    %23 = math.exp %22 : vector<8x128x128xf32>
    %24 = arith.mulf %20, %23 : vector<8x128x128xf32>
    %25 = vector.shape_cast %5 : vector<128x128xf32> to vector<1x128x128xf32>
    %26 = vector.broadcast %25 : vector<1x128x128xf32> to vector<8x128x128xf32>
    %27 = arith.mulf %24, %26 : vector<8x128x128xf32>
    %cst_9 = arith.constant dense<0.000000e+00> : vector<8x128xf32>
    %28 = vector.multi_reduction <add>, %27, %cst_9 [2] : vector<8x128x128xf32> to vector<8x128xf32>
    %29 = arith.index_cast %7 : i32 to index
    %c0_10 = arith.constant 0 : index
    %30 = vector.load %arg8[%29, %c0_10] : memref<8x128xf32, #tpu.memory_space<vmem>>, vector<8x128xf32>
    %31 = arith.addf %30, %28 : vector<8x128xf32>
    %32 = arith.index_cast %7 : i32 to index
    %c0_11 = arith.constant 0 : index
    %33 = vector.load %arg8[%32, %c0_11] : memref<8x128xf32, #tpu.memory_space<vmem>>, vector<8x128xf32>
    tpu.vector_store %arg8[%32, %c0_11], %31 {strides = array<i32>} : memref<8x128xf32, #tpu.memory_space<vmem>>, vector<8x128xf32>,
    %c1_i32 = arith.constant 1 : i32
    %c0_i32_12 = arith.constant 0 : i32
    %34 = arith.cmpi eq, %arg1, %c0_i32_12 : i32
    %35 = arith.extui %34 : i1 to i32
    %c0_i32_13 = arith.constant 0 : i32
    %36 = arith.cmpi ne, %35, %c0_i32_13 : i32
    scf.if %36 {
      %c0_14 = arith.constant 0 : index
      %c0_15 = arith.constant 0 : index
      %37 = vector.load %arg8[%c0_14, %c0_15] : memref<8x128xf32, #tpu.memory_space<vmem>>, vector<8x128xf32>
      %cst_16 = arith.constant dense<0.000000e+00> : vector<128xf32>
      %38 = vector.multi_reduction <add>, %37, %cst_16 [0] : vector<8x128xf32> to vector<128xf32>
      %39 = vector.shape_cast %38 : vector<128xf32> to vector<1x128xf32>
      %cst_17 = arith.constant 8.000000e+00 : f32
      %40 = vector.broadcast %cst_17 : f32 to vector<1x128xf32>
      %41 = arith.divf %39, %40 : vector<1x128xf32>
      %42 = vector.broadcast %41 : vector<1x128xf32> to vector<8x128xf32>
      %43 = arith.subf %37, %42 : vector<8x128xf32>
      %44 = arith.mulf %43, %43 : vector<8x128xf32>
      %cst_18 = arith.constant dense<0.000000e+00> : vector<128xf32>
      %45 = vector.multi_reduction <add>, %44, %cst_18 [0] : vector<8x128xf32> to vector<128xf32>
      %46 = vector.shape_cast %45 : vector<128xf32> to vector<1x128xf32>
      %cst_19 = arith.constant 8.000000e+00 : f32
      %47 = vector.broadcast %cst_19 : f32 to vector<1x128xf32>
      %48 = arith.divf %46, %47 : vector<1x128xf32>
      %cst_20 = arith.constant 9.99999974E-6 : f32
      %49 = vector.broadcast %cst_20 : f32 to vector<1x128xf32>
      %50 = arith.addf %48, %49 : vector<1x128xf32>
      %51 = math.rsqrt %50 : vector<1x128xf32>
      %52 = vector.broadcast %51 : vector<1x128xf32> to vector<8x128xf32>
      %53 = arith.mulf %43, %52 : vector<8x128xf32>
      %c0_21 = arith.constant 0 : index
      %c0_22 = arith.constant 0 : index
      %54 = vector.load %arg6[%c0_21, %c0_22] : memref<1x128xf32, #tpu.memory_space<vmem>>, vector<1x128xf32>
      %55 = vector.broadcast %54 : vector<1x128xf32> to vector<8x128xf32>
      %56 = arith.mulf %53, %55 : vector<8x128xf32>
      %c0_23 = arith.constant 0 : index
      %c0_24 = arith.constant 0 : index
      %57 = vector.load %arg7[%c0_23, %c0_24] : memref<1x128xf32, #tpu.memory_space<vmem>>, vector<1x128xf32>
      %58 = vector.broadcast %57 : vector<1x128xf32> to vector<8x128xf32>
      %59 = arith.addf %56, %58 : vector<8x128xf32>
      %c0_25 = arith.constant 0 : index
      %c0_26 = arith.constant 0 : index
      %60 = vector.load %arg8[%c0_25, %c0_26] : memref<8x128xf32, #tpu.memory_space<vmem>>, vector<8x128xf32>
      tpu.vector_store %arg8[%c0_25, %c0_26], %59 {strides = array<i32>} : memref<8x128xf32, #tpu.memory_space<vmem>>, vector<8x128xf32>,
    } else {
    }
    return
  }
  func.func @transform_0(%arg0: i32, %arg1: i32) -> (i32, i32) {
    %c0_i32 = arith.constant 0 : i32
    %c0_i32_0 = arith.constant 0 : i32
    return %c0_i32, %arg1 : i32, i32
  }
  func.func @transform_1(%arg0: i32, %arg1: i32) -> (i32, i32) {
    %c0_i32 = arith.constant 0 : i32
    return %arg0, %arg1 : i32, i32
  }
  func.func @transform_2(%arg0: i32, %arg1: i32) -> (i32, i32) {
    %c0_i32 = arith.constant 0 : i32
    return %arg0, %arg1 : i32, i32
  }
  func.func @transform_3(%arg0: i32, %arg1: i32) -> (i32, i32) {
    %c0_i32 = arith.constant 0 : i32
    return %arg0, %arg1 : i32, i32
  }
  func.func @transform_4(%arg0: i32, %arg1: i32) -> (i32, i32) {
    %c0_i32 = arith.constant 0 : i32
    %c0_i32_0 = arith.constant 0 : i32
    return %c0_i32, %arg0 : i32, i32
  }
  func.func @transform_5(%arg0: i32, %arg1: i32) -> (i32, i32) {
    %c0_i32 = arith.constant 0 : i32
    %c0_i32_0 = arith.constant 0 : i32
    return %c0_i32, %arg0 : i32, i32
  }
  func.func @transform_6(%arg0: i32, %arg1: i32) -> (i32, i32) {
    %c0_i32 = arith.constant 0 : i32
    %c0_i32_0 = arith.constant 0 : i32
    return %c0_i32, %arg0 : i32, i32
  }
}

</mosaic_0001>

<bundles_post_ra>
// kernel: tpu_custom_call.1
= control target key start
LH: loop header
LB: loop body
LE: loop exit
PB: predicated region body
PF: predicated region fallthrough
CT: control target
= control target key end

     0   :  { %11 = vsyncpa [#allocation3], 0  ;;  %s4760_s0 = inlined_call_operand.hbm [shape: f32[8,128], index: 0, kind: input, shape index: {}]   ;;  %s4761_s1 = inlined_call_operand.hbm [shape: f32[128,128], index: 1, kind: input, shape index: {}]   ;;  %s4762_s2 = inlined_call_operand.hbm [shape: f32[128,128], index: 2, kind: input, shape index: {}]   ;;  %s4763_s3 = inlined_call_operand.hbm [shape: f32[128,128], index: 3, kind: input, shape index: {}]   ;;  %s4764_s4 = inlined_call_operand.vmem [shape: f32[1,128], index: 4, kind: input, shape index: {}]   ;;  %s4765_s5 = inlined_call_operand.vmem [shape: f32[1,128], index: 5, kind: input, shape index: {}]   ;;  %s4766_s6 = inlined_call_operand.hbm [shape: f32[8,128], index: 6, kind: output, shape index: {}]  }
   0x1   :  { %12 = vsyncpa [#allocation6], 0 }
   0x2   :  { %13 = vsyncpa [#allocation9], 0 }
   0x3   :  { %14 = vsyncpa [#allocation4], 0  ;;  %s3061_s21 = smov [#allocation5]   ;;  %s2943_s25 = scalar_lea.hbm %s4761_s1, 2048 }
   0x4   :  { %s30_s22 = sshll.u32 %s3061_s21, 4  ;;  %p2944_p0 = scmp.ne.s32.totalorder %s4761_s1, %s2943_s25  ;;  %s31_s22 = int_to_ptr.vmem [resolvable:$true] %s30_s22 }
   0x5   :  { %p2947_p1 = scmp.lt.u32.totalorder %s2943_s25, %s4761_s1 }
   0x7   :  { %p2949_p2 = pnand %p2947_p1, %p2944_p0 }
   0x9   :  { %2952 = shalt.err (!%p2949_p2)
}
   0xa   :  { %s2953_s30 = scalar_lea.vmem %s31_s22, 2048  ;;  %p2958_p4 = scmp.lt.s32.totalorder %s31_s22, %s31_s22 }
   0xb   :  { %p2954_p3 = scmp.ne.s32.totalorder %s31_s22, %s2953_s30  ;;  %p2959_p5 = scmp.lt.s32.totalorder %s2953_s30, %s2953_s30 }
   0xd   :  { %p2960_p6 = por %p2959_p5, %p2958_p4 }
   0xf   :  { %p2961_p7 = pnand %p2960_p6, %p2954_p3 }
  0x11   :  { %2964 = shalt.err (!%p2961_p7)
}
  0x12   :  { %s3062_s7 = smov 128   ;;  %s3063_s8 = smov 8  }
  0x13   :  { %36 = dma.hbm_to_vmem [thread:$0]  %s4761_s1, 2048, %s31_s22, [#allocation6], %s3062_s7, %s3062_s7, %s3063_s8  }
  0x14   :  { %s3064_s11 = smov [#allocation2]   ;;  %s3065_s13 = smov [#allocation7]  }
  0x15   :  { %s21_s12 = sshll.u32 %s3064_s11, 4  ;;  %s42_s14 = sshll.u32 %s3065_s13, 4  ;;  %s22_s12 = int_to_ptr.vmem [resolvable:$true] %s21_s12  ;;  %s43_s14 = int_to_ptr.vmem [resolvable:$true] %s42_s14 }
  0x16   :  { %s2965_s17 = scalar_lea.hbm %s4760_s0, 128 }
  0x17   :  { %p2966_p8 = scmp.ne.s32.totalorder %s4760_s0, %s2965_s17  ;;  %p2969_p9 = scmp.lt.u32.totalorder %s2965_s17, %s4760_s0 }
  0x19   :  { %p2971_p10 = pnand %p2969_p9, %p2966_p8 }
  0x1b   :  { %2974 = shalt.err (!%p2971_p10)
}
  0x1c   :  { %s2975_s1 = scalar_lea.vmem %s22_s12, 128  ;;  %p2980_p12 = scmp.lt.s32.totalorder %s22_s12, %s22_s12 }
  0x1d   :  { %p2976_p11 = scmp.ne.s32.totalorder %s22_s12, %s2975_s1  ;;  %p2981_p13 = scmp.lt.s32.totalorder %s2975_s1, %s2975_s1 }
  0x1f   :  { %p2982_p0 = por %p2981_p13, %p2980_p12 }
  0x21   :  { %p2983_p1 = pnand %p2982_p0, %p2976_p11 }
  0x23   :  { %2986 = shalt.err (!%p2983_p1)
}
  0x24   :  { %24 = dma.hbm_to_vmem [thread:$0]  %s4760_s0, 128, %s22_s12, [#allocation3]  }
  0x25   :  { %s2987_s26 = scalar_lea.hbm %s4762_s2, 2048 }
  0x26   :  { %p2988_p2 = scmp.ne.s32.totalorder %s4762_s2, %s2987_s26  ;;  %p2991_p3 = scmp.lt.u32.totalorder %s2987_s26, %s4762_s2 }
  0x28   :  { %p2993_p4 = pnand %p2991_p3, %p2988_p2 }
  0x2a   :  { %2996 = shalt.err (!%p2993_p4)
}
  0x2b   :  { %s2997_s9 = scalar_lea.vmem %s43_s14, 2048  ;;  %p3002_p6 = scmp.lt.s32.totalorder %s43_s14, %s43_s14 }
  0x2c   :  { %p2998_p5 = scmp.ne.s32.totalorder %s43_s14, %s2997_s9  ;;  %p3003_p7 = scmp.lt.s32.totalorder %s2997_s9, %s2997_s9 }
  0x2e   :  { %p3004_p8 = por %p3003_p7, %p3002_p6 }
  0x30   :  { %p3005_p9 = pnand %p3004_p8, %p2998_p5 }
  0x32   :  { %3008 = shalt.err (!%p3005_p9)
}
  0x33   :  { %48 = dma.hbm_to_vmem [thread:$0]  %s4762_s2, 2048, %s43_s14, [#allocation6], %s3062_s7, %s3062_s7, %s3063_s8  }
  0x34   :  { %s3066_s11 = smov [#allocation8]   ;;  %s3009_s16 = scalar_lea.hbm %s4763_s3, 2048 }
  0x35   :  { %s54_s12 = sshll.u32 %s3066_s11, 4  ;;  %p3010_p10 = scmp.ne.s32.totalorder %s4763_s3, %s3009_s16  ;;  %s55_s12 = int_to_ptr.vmem [resolvable:$true] %s54_s12 }
  0x36   :  { %p3013_p11 = scmp.lt.u32.totalorder %s3009_s16, %s4763_s3 }
  0x38   :  { %p3015_p12 = pnand %p3013_p11, %p3010_p10 }
  0x3a   :  { %3018 = shalt.err (!%p3015_p12)
}
  0x3b   :  { %s3019_s21 = scalar_lea.vmem %s55_s12, 2048  ;;  %p3024_p0 = scmp.lt.s32.totalorder %s55_s12, %s55_s12 }
  0x3c   :  { %p3020_p13 = scmp.ne.s32.totalorder %s55_s12, %s3019_s21  ;;  %p3025_p1 = scmp.lt.s32.totalorder %s3019_s21, %s3019_s21 }
  0x3e   :  { %p3026_p2 = por %p3025_p1, %p3024_p0 }
  0x40   :  { %p3027_p3 = pnand %p3026_p2, %p3020_p13 }
  0x42   :  { %3030 = shalt.err (!%p3027_p3)
}
  0x43   :  { %60 = dma.hbm_to_vmem [thread:$0]  %s4763_s3, 2048, %s55_s12, [#allocation9], %s3062_s7, %s3062_s7, %s3063_s8  }
  0x44   :  { %3053 = dma.done.wait [#allocation3], 128  }
  0x45   :  { %3054 = vsyncadd [#allocation3], 4294967168 }
  0x46   :  { %3055 = dma.done.wait [#allocation6], 4096  }
  0x47   :  { %3056 = vsyncadd [#allocation6], 4294963200 }
  0x48   :  { %3057 = dma.done.wait [#allocation9], 2048  }
  0x49   :  { %3058 = vsyncadd [#allocation9], 4294965248  ;;  %v4767_v0 = vlaneseq  ;;  %v3067_v1 = vmov 1966171168   ;;  %v130_v6 = vld [vmem:[#allocation2] sm:$0xff]  ;;  %v3171_v10 = vld [vmem:[#allocation7 + $0x10] sm:$0xff] }
  0x4a   :  { %v134_v2 = vunpack.c.l.s4 %v3067_v1  ;;  %v132_v9 = vcombine.high %v130_v6, %v130_v6  ;;  %4838 = vst [vmem:[#allocation18_spill] sm:$0xff] %v3171_v10  ;;  %v3176_v12 = vld [vmem:[#allocation7] sm:$0xff]  ;;  %v3178_v14 = vld [vmem:[#allocation5 + $0x10] sm:$0xff]  ;;  %v3182_v16 = vld [vmem:[#allocation5 + $0x18] sm:$0xff]  ;;  %vm1769_vm0 = vcmask 130112   ;;  %vm1776_vm1 = vcmask 195712  }
  0x4b   :  { %v3162_v3 = vshrl.u32 %v4767_v0, 7  ;;  %4839 = vst [vmem:[#allocation19_spill] sm:$0xff] %v3176_v12  ;;  %v3180_v15 = vld [vmem:[#allocation5] sm:$0xff]  ;;  %v3184_v17 = vld [vmem:[#allocation7 + $0x18] sm:$0xff]  ;;  %v3186_v18 = vld [vmem:[#allocation7 + $0x8] sm:$0xff]  ;;  %vm1783_vm2 = vcmask 261312  }
  0x4c   :  { %v135_v4 = vunpack.c.0.s8 %v134_v2  ;;  %4840 = vst [vmem:[#allocation20_spill] sm:$0xff] %v3180_v15  ;;  %4841 = vst [vmem:[#allocation21_spill] sm:$0xff] %v3184_v17  ;;  %v3192_v20 = vld [vmem:[#allocation7 + $0x28] sm:$0xff]  ;;  %v3194_v21 = vld [vmem:[#allocation7 + $0x20] sm:$0xff]  ;;  %vm1790_vm3 = vcmask 326912   ;;  %vm1797_vm4 = vcmask 392512  }
  0x4d   :  { %4835 = vst [vmem:[#allocation15_spill] sm:$0xff] %v3162_v3  ;;  %v3169_v8 = vsub.s32 0, %v3162_v3  ;;  %4842 = vst [vmem:[#allocation22_spill] sm:$0xff] %v3192_v20  ;;  %v3196_v22 = vld [vmem:[#allocation7 + $0x38] sm:$0xff]  ;;  %v3198_v23 = vld [vmem:[#allocation5 + $0x8] sm:$0xff]  ;;  %vm1804_vm5 = vcmask 458112  }
  0x4e   :  { %v3165_v5 = vsub.s32 %v135_v4, %v3162_v3  ;;  %4843 = vst [vmem:[#allocation23_spill] sm:$0xff] %v3194_v21  ;;  %v3200_v24 = vld [vmem:[#allocation5 + $0x28] sm:$0xff]  ;;  %v3202_v25 = vld [vmem:[#allocation7 + $0x30] sm:$0xff]  ;;  %v3220_v33 = vld [vmem:[#allocation5 + $0x20] sm:$0xff]  ;;  %vm1811_vm6 = vcmask 523712   ;;  %vm1818_vm7 = vcmask 589312  }
  0x4f   :  { %4837 = vst [vmem:[#allocation17_spill] sm:$0xff] %v3169_v8  ;;  %v3222_v34 = vld [vmem:[#allocation5 + $0x38] sm:$0xff]  ;;  %v3224_v35 = vld [vmem:[#allocation5 + $0x30] sm:$0xff]  ;;  %v3252_v1 = vld [vmem:[#allocation7 + $0x48] sm:$0xff]  ;;  %vm1825_vm8 = vcmask 654912   ;;  %vm1832_vm9 = vcmask 720512  }
  0x50   :  { %4836 = vst [vmem:[#allocation16_spill] sm:$0xff] %v3165_v5  ;;  %v139_v7 = vrot.slane %v130_v6, %v3165_v5  ;;  %v3210_v28 = vrot.slane %v132_v9, %v3165_v5  ;;  %v3254_v2 = vld [vmem:[#allocation7 + $0x40] sm:$0xff]  ;;  %vm1839_vm10 = vcmask 786112   ;;  %vm1846_vm11 = vcmask 851712   ;;  %s3068_s22 = smov [#allocation10]  }
  0x51   :  { %vm1853_vm12 = vcmask 917312   ;;  %vm1860_vm13 = vcmask 982912   ;;  %vm1867_vm14 = vcmask 1048512   ;;  %vm2422_vm15 = vcmask 1041409   ;;  %s2486_s23 = sshll.u32 %s3068_s22, 4  ;;  %s2487_s23 = int_to_ptr.vmem [resolvable:$true] %s2486_s23 }
  0x52   :  { %v3174_v11 = vrot.slane %v139_v7, %v3165_v5  ;;  %v147_v13 = vcombine.high %v139_v7, %v139_v7  ;;  %4845 = vst [vmem:[#allocation25_spill] sm:$0xff] %v3210_v28  ;;  %v3244_v54 = vrot.slane %v3210_v28, %v3165_v5  ;;  %s3031_s24 = scalar_lea.vmem %s2487_s23, 128  ;;  %p3036_p5 = scmp.lt.s32.totalorder %s2487_s23, %s2487_s23 }
  0x53   :  { %p3032_p4 = scmp.ne.s32.totalorder %s2487_s23, %s3031_s24  ;;  %p3037_p6 = scmp.lt.s32.totalorder %s3031_s24, %s3031_s24 }
  0x54   :  { %v3190_v19 = vrot.slane %v3174_v11, %v3169_v8  ;;  %v3205_v26 = vrot.slane %v147_v13, %v3165_v5  ;;  %4846 = vst [vmem:[#allocation26_spill] sm:$0xff] %v3244_v54 }
  0x55   :  { %p3038_p7 = por %p3037_p6, %p3036_p5 }
  0x56   :  { %4844 = vst [vmem:[#allocation24_spill] sm:$0xff] %v3205_v26  ;;  %v223_v29 = vsub.f32 %v3190_v19, %v3171_v10  ;;  %v221_v30 = vsub.f32 %v3190_v19, %v3176_v12  ;;  %v224_v31 = vsub.f32 %v3190_v19, %v3184_v17  ;;  %v222_v32 = vsub.f32 %v3190_v19, %v3186_v18 }
  0x57   :  { %v226_v36 = vsub.f32 %v3190_v19, %v3192_v20  ;;  %v225_v37 = vsub.f32 %v3190_v19, %v3194_v21  ;;  %v228_v38 = vsub.f32 %v3190_v19, %v3196_v22  ;;  %v227_v39 = vsub.f32 %v3190_v19, %v3202_v25  ;;  %p3039_p8 = pnand %p3038_p7, %p3032_p4 }
  0x58   :  { %v351_v40 = vmul.f32 %v223_v29, %v3178_v14  ;;  %v349_v41 = vmul.f32 %v221_v30, %v3180_v15  ;;  %v352_v42 = vmul.f32 %v224_v31, %v3182_v16  ;;  %v350_v43 = vmul.f32 %v222_v32, %v3198_v23  ;;  %v3260_v32 = vld [vmem:[#allocation5 + $0x48] sm:$0xff] }
  0x59   :  { %v354_v44 = vmul.f32 %v226_v36, %v3200_v24  ;;  %v353_v45 = vmul.f32 %v225_v37, %v3220_v33  ;;  %v356_v46 = vmul.f32 %v228_v38, %v3222_v34  ;;  %v355_v47 = vmul.f32 %v227_v39, %v3224_v35  ;;  %v3264_v39 = vld [vmem:[#allocation7 + $0x58] sm:$0xff] }
  0x5a   :  { %v479_v48 = vmul.f32 %v351_v40, %v351_v40  ;;  %v477_v49 = vmul.f32 %v349_v41, %v349_v41  ;;  %v480_v50 = vmul.f32 %v352_v42, %v352_v42  ;;  %v478_v51 = vmul.f32 %v350_v43, %v350_v43  ;;  %4847 = vst [vmem:[#allocation27_spill] sm:$0xff] %v3264_v39  ;;  %v3266_v40 = vld [vmem:[#allocation7 + $0x50] sm:$0xff] }
  0x5b   :  { %v482_v52 = vmul.f32 %v354_v44, %v354_v44  ;;  %v481_v53 = vmul.f32 %v353_v45, %v353_v45  ;;  %v484_v58 = vmul.f32 %v356_v46, %v356_v46  ;;  %v483_v59 = vmul.f32 %v355_v47, %v355_v47  ;;  %4848 = vst [vmem:[#allocation28_spill] sm:$0xff] %v3266_v40  ;;  %v3270_v44 = vld [vmem:[#allocation5 + $0x40] sm:$0xff]  ;;  %v3272_v45 = vld [vmem:[#allocation7 + $0x68] sm:$0xff] }
  0x5c   :  { %v735_v56 = vmul.f32 -0.5, %v479_v48  ;;  %v733_v57 = vmul.f32 -0.5, %v477_v49  ;;  %v3248_v60 = vadd.f32 -1.0, %v479_v48  ;;  %v3250_v61 = vadd.f32 -1.0, %v477_v49  ;;  %4849 = vst [vmem:[#allocation29_spill] sm:$0xff] %v3272_v45  ;;  %v3278_v49 = vld [vmem:[#allocation5 + $0x58] sm:$0xff] }
  0x5d   :  { %v736_v62 = vmul.f32 -0.5, %v480_v50  ;;  %v734_v63 = vmul.f32 -0.5, %v478_v51  ;;  %v3256_v7 = vadd.f32 -1.0, %v480_v50  ;;  %v738_v9 = vmul.f32 -0.5, %v482_v52  ;;  %4850 = vst [vmem:[#allocation30_spill] sm:$0xff] %v3278_v49  ;;  %v3280_v50 = vld [vmem:[#allocation5 + $0x50] sm:$0xff] }
  0x5e   :  { %v865_v4 = vmul.f32 1.442695, %v735_v56  ;;  %v861_v6 = vmul.f32 1.442695, %v733_v57  ;;  %v3258_v29 = vadd.f32 -1.0, %v478_v51  ;;  %v737_v31 = vmul.f32 -0.5, %v481_v53 }
  0x5f   :  { %v867_v13 = vmul.f32 1.442695, %v736_v62  ;;  %v863_v30 = vmul.f32 1.442695, %v734_v63  ;;  %v3262_v36 = vadd.f32 -1.0, %v482_v52  ;;  %v740_v38 = vmul.f32 -0.5, %v484_v58 }
  0x60   :  { %2637 = vpow2.f32 %v865_v4  ;;  %v871_v37 = vmul.f32 1.442695, %v738_v9  ;;  %v3268_v41 = vadd.f32 -1.0, %v481_v53  ;;  %v869_v42 = vmul.f32 1.442695, %v737_v31  ;;  %4851 = vst [vmem:[#allocation31_spill] sm:$0xff] %v3280_v50 }
  0x61   :  { %2639 = vpow2.f32 %v861_v6  ;;  %v739_v43 = vmul.f32 -0.5, %v483_v59  ;;  %v875_v46 = vmul.f32 1.442695, %v740_v38  ;;  %v230_v47 = vsub.f32 %v3190_v19, %v3252_v1  ;;  %v3282_v51 = vld [vmem:[#allocation7 + $0x60] sm:$0xff]  ;;  %v3288_v57 = vld [vmem:[#allocation5 + $0x68] sm:$0xff] }
  0x62   :  { %2641 = vpow2.f32 %v867_v13  ;;  %v229_v48 = vsub.f32 %v3190_v19, %v3254_v2  ;;  %4852 = vst [vmem:[#allocation32_spill] sm:$0xff] %v3282_v51  ;;  %v232_v53 = vsub.f32 %v3190_v19, %v3264_v39  ;;  %v231_v56 = vsub.f32 %v3190_v19, %v3266_v40  ;;  %4853 = vst [vmem:[#allocation33_spill] sm:$0xff] %v3288_v57  ;;  %v3294_v6 = vld [vmem:[#allocation5 + $0x60] sm:$0xff] }
  0x63   :  { %2643 = vpow2.f32 %v863_v30  ;;  %v873_v52 = vmul.f32 1.442695, %v739_v43  ;;  %v358_v62 = vmul.f32 %v230_v47, %v3260_v32  ;;  %v234_v4 = vsub.f32 %v3190_v19, %v3272_v45  ;;  %4854 = vst [vmem:[#allocation34_spill] sm:$0xff] %v3294_v6 }
  0x64   :  { %2645 = vpow2.f32 %v871_v37  ;;  %v357_v63 = vmul.f32 %v229_v48, %v3270_v44  ;;  %v360_v9 = vmul.f32 %v232_v53, %v3278_v49  ;;  %v359_v13 = vmul.f32 %v231_v56, %v3280_v50 }
  0x65   :  { %2647 = vpow2.f32 %v869_v42  ;;  %v233_v30 = vsub.f32 %v3190_v19, %v3282_v51  ;;  %v486_v31 = vmul.f32 %v358_v62, %v358_v62  ;;  %v362_v38 = vmul.f32 %v234_v4, %v3288_v57  ;;  %v3316_v51 = vld [vmem:[#allocation8 + $0x18] sm:$0xff] }
  0x66   :  { %2649 = vpow2.f32 %v875_v46  ;;  %v485_v37 = vmul.f32 %v357_v63, %v357_v63  ;;  %v488_v43 = vmul.f32 %v360_v9, %v360_v9  ;;  %v487_v47 = vmul.f32 %v359_v13, %v359_v13  ;;  %v3306_v46 = vld [vmem:[#allocation7 + $0x78] sm:$0xff]  ;;  %v3308_v63 = vld [vmem:[#allocation8 + $0x10] sm:$0xff]  ;;  %4857 = vst [vmem:[#allocation37_spill] sm:$0xff] %v3316_v51 }
  0x67   :  { %2651 = vpow2.f32 %v873_v52  ;;  %v361_v48 = vmul.f32 %v233_v30, %v3294_v6  ;;  %v2504_v0 = vadd.f32 -1.0, %v484_v58  ;;  %v2503_v55 = vadd.f32 -1.0, %v483_v59  ;;  %4855 = vst [vmem:[#allocation35_spill] sm:$0xff] %v3306_v46  ;;  %4856 = vst [vmem:[#allocation36_spill] sm:$0xff] %v3308_v63  ;;  %v3313_v30 = vld [vmem:[#allocation8] sm:$0xff] }
  0x68   :  { %v742_v42 = vmul.f32 -0.5, %v486_v31  ;;  %v741_v27 = vmul.f32 -0.5, %v485_v37  ;;  %v3302_v53 = vadd.f32 -1.0, %v486_v31  ;;  %v3304_v56 = vadd.f32 -1.0, %v485_v37 }
  0x69   :  { %v744_v3 = vmul.f32 -0.5, %v488_v43  ;;  %v743_v28 = vmul.f32 -0.5, %v487_v47  ;;  %v3310_v9 = vadd.f32 -1.0, %v488_v43  ;;  %v490_v13 = vmul.f32 %v362_v38, %v362_v38 }
  0x6a   :  { %v2638_v62 = vpop.eup %2637  ;;  %v879_v52 = vmul.f32 1.442695, %v742_v42  ;;  %v877_v4 = vmul.f32 1.442695, %v741_v27  ;;  %v489_v5 = vmul.f32 %v361_v48, %v361_v48  ;;  %v236_v27 = vsub.f32 %v3190_v19, %v3306_v46  ;;  %v3322_v42 = vld [vmem:[#allocation8 + $0x8] sm:$0xff] }
  0x6b   :  { %v2640_v58 = vpop.eup %2639  ;;  %v1119_v59 = vmul.f32 %v2638_v62, %v3248_v60  ;;  %v883_v31 = vmul.f32 1.442695, %v744_v3  ;;  %v881_v37 = vmul.f32 1.442695, %v743_v28  ;;  %v746_v57 = vmul.f32 -0.5, %v490_v13  ;;  %v3326_v28 = vld [vmem:[#allocation5 + $0x78] sm:$0xff] }
  0x6c   :  { %v2642_v54 = vpop.eup %2641  ;;  %v1117_v6 = vmul.f32 %v2640_v58, %v3250_v61  ;;  %2653 = vpow2.f32 %v879_v52  ;;  %v3324_v3 = vadd.f32 -1.0, %v487_v47  ;;  %v3330_v58 = vld [vmem:[#allocation7 + $0x70] sm:$0xff]  ;;  %v745_v47 = vmul.f32 -0.5, %v489_v5 }
  0x6d   :  { %v2644_v43 = vpop.eup %2643  ;;  %v1247_v38 = vmul.f32 %v1119_v59, %v3308_v63  ;;  %v1120_v60 = vmul.f32 %v2642_v54, %v3256_v7  ;;  %2655 = vpow2.f32 %v877_v4  ;;  %v887_v52 = vmul.f32 1.442695, %v746_v57  ;;  %v3335_v63 = vld [vmem:[#allocation8 + $0x28] sm:$0xff] }
  0x6e   :  { %v2646_v61 = vpop.eup %2645  ;;  %v1245_v48 = vmul.f32 %v1117_v6, %v3313_v30  ;;  %v1118_v62 = vmul.f32 %v2644_v43, %v3258_v29  ;;  %2657 = vpow2.f32 %v883_v31  ;;  %v3337_v6 = vld [vmem:[#allocation8 + $0x20] sm:$0xff]  ;;  %v364_v57 = vmul.f32 %v236_v27, %v3326_v28  ;;  %v3341_v31 = vld [vmem:[#allocation5 + $0x70] sm:$0xff] }
  0x6f   :  { %v2648_v46 = vpop.eup %2647  ;;  %1377 = vadd.xlane.f32.xlu1 %v1247_v38  ;;  %v1248_v54 = vmul.f32 %v1120_v60, %v3316_v51  ;;  %v1122_v7 = vmul.f32 %v2646_v61, %v3262_v36  ;;  %2659 = vpow2.f32 %v881_v37  ;;  %v3343_v38 = vld [vmem:[#allocation8 + $0x38] sm:$0xff]  ;;  %v2510_v37 = vadd.f32 -1.0, %v490_v13 }
  0x70   :  { %v2650_v4 = vpop.eup %2649  ;;  %1373 = vadd.xlane.f32.xlu0 %v1245_v48  ;;  %v1246_v59 = vmul.f32 %v1118_v62, %v3322_v42  ;;  %v1121_v29 = vmul.f32 %v2648_v46, %v3268_v41  ;;  %2661 = vpow2.f32 %v887_v52  ;;  %v885_v60 = vmul.f32 1.442695, %v745_v47  ;;  %v3347_v48 = vld [vmem:[#allocation8 + $0x30] sm:$0xff] }
  0x71   :  { %v2652_v43 = vpop.eup %2651  ;;  %v1124_v36 = vmul.f32 %v2650_v4, %v2504_v0  ;;  %v235_v61 = vsub.f32 %v3190_v19, %v3330_v58  ;;  %v3349_v51 = vadd.f32 -1.0, %v489_v5  ;;  %v492_v41 = vmul.f32 %v364_v57, %v364_v57 }
  0x72   :  { %v1123_v62 = vmul.f32 %v2652_v43, %v2503_v55  ;;  %v3353_v46 = vrot.slane %v3205_v26, %v3169_v8  ;;  %v1250_v27 = vmul.f32 %v1122_v7, %v3335_v63  ;;  %v1249_v0 = vmul.f32 %v1121_v29, %v3337_v6  ;;  %v3386_v26 = vld [vmem:[#allocation8 + $0x58] sm:$0xff] }
  0x73   :  { %1379 = vadd.xlane.f32.xlu1 %v1248_v54  ;;  %2663 = vpow2.f32 %v885_v60  ;;  %v363_v13 = vmul.f32 %v235_v61, %v3341_v31  ;;  %v1252_v19 = vmul.f32 %v1124_v36, %v3343_v38  ;;  %v748_v52 = vmul.f32 -0.5, %v492_v41  ;;  %v3377_v61 = vld [vmem:[#allocation8 + $0x48] sm:$0xff] }
  0x74   :  { %1375 = vadd.xlane.f32.xlu0 %v1246_v59  ;;  %v238_v5 = vsub.f32 %v3353_v46, %v3186_v18  ;;  %v4858_v55 = vcombine.high %v3174_v11, %v3174_v11  ;;  %v1251_v54 = vmul.f32 %v1123_v62, %v3347_v48  ;;  %v237_v4 = vsub.f32 %v3353_v46, %v3176_v12 }
  0x75   :  { %v491_v7 = vmul.f32 %v363_v13, %v363_v13  ;;  %v240_v59 = vsub.f32 %v3353_v46, %v3184_v17  ;;  %v3372_v57 = vadd.f32 -1.0, %v492_v41  ;;  %v891_v43 = vmul.f32 1.442695, %v748_v52  ;;  %4859 = vst [vmem:[#allocation38_spill] sm:$0xff] %v3377_v61  ;;  %v3383_v52 = vld [vmem:[#allocation8 + $0x40] sm:$0xff] }
  0x76   :  { %v3365_v47 = vrot.slane %v4858_v55, %v3169_v8  ;;  %v2654_v29 = vpop.eup %2653  ;;  %v366_v36 = vmul.f32 %v238_v5, %v3198_v23  ;;  %v239_v11 = vsub.f32 %v3353_v46, %v3171_v10  ;;  %v365_v55 = vmul.f32 %v237_v4, %v3180_v15 }
  0x77   :  { %v2656_v60 = vpop.eup %2655  ;;  %1383 = vadd.xlane.f32.xlu1 %v1250_v27  ;;  %v1126_v62 = vmul.f32 %v2654_v29, %v3302_v53  ;;  %v747_v13 = vmul.f32 -0.5, %v491_v7  ;;  %v242_v8 = vsub.f32 %v3353_v46, %v3192_v20  ;;  %2665 = vpow2.f32 %v891_v43 }
  0x78   :  { %v2658_v41 = vpop.eup %2657  ;;  %1381 = vadd.xlane.f32.xlu0 %v1249_v0  ;;  %v1125_v5 = vmul.f32 %v2656_v60, %v3304_v56  ;;  %v494_v27 = vmul.f32 %v366_v36, %v366_v36  ;;  %v368_v10 = vmul.f32 %v240_v59, %v3182_v16  ;;  %v493_v4 = vmul.f32 %v365_v55, %v365_v55  ;;  %v3396_v36 = vld [vmem:[#allocation8 + $0x50] sm:$0xff] }
  0x79   :  { %v2660_v17 = vpop.eup %2659  ;;  %v1128_v53 = vmul.f32 %v2658_v41, %v3310_v9  ;;  %v889_v29 = vmul.f32 1.442695, %v747_v13  ;;  %v241_v20 = vsub.f32 %v3353_v46, %v3194_v21  ;;  %v1254_v0 = vmul.f32 %v1126_v62, %v3377_v61  ;;  %v3400_v61 = vld [vmem:[#allocation8 + $0x68] sm:$0xff] }
  0x7a   :  { %v2662_v15 = vpop.eup %2661  ;;  %v1127_v12 = vmul.f32 %v2660_v17, %v3324_v3  ;;  %v2511_v56 = vadd.f32 -1.0, %v491_v7  ;;  %v750_v60 = vmul.f32 -0.5, %v494_v27  ;;  %v1253_v43 = vmul.f32 %v1125_v5, %v3383_v52 }
  0x7b   :  { %1387 = vadd.xlane.f32.xlu1 %v1252_v19  ;;  %v1256_v59 = vmul.f32 %v1128_v53, %v3386_v26  ;;  %2667 = vpow2.f32 %v889_v29  ;;  %v3398_v9 = vadd.f32 -1.0, %v494_v27  ;;  %v1130_v13 = vmul.f32 %v2662_v15, %v2510_v37  ;;  %v3408_v27 = vld [vmem:[#allocation8 + $0x60] sm:$0xff] }
  0x7c   :  { %1385 = vadd.xlane.f32.xlu0 %v1251_v54  ;;  %v895_v55 = vmul.f32 1.442695, %v750_v60  ;;  %v749_v41 = vmul.f32 -0.5, %v493_v4  ;;  %v496_v21 = vmul.f32 %v368_v10, %v368_v10  ;;  %v3402_v17 = vadd.f32 -1.0, %v493_v4  ;;  %4860 = vst [vmem:[#allocation39_spill] sm:$0xff] %v3408_v27 }
  0x7d   :  { %v2664_v62 = vpop.eup %2663  ;;  %v367_v3 = vmul.f32 %v239_v11, %v3178_v14  ;;  %v370_v19 = vmul.f32 %v242_v8, %v3200_v24  ;;  %v369_v7 = vmul.f32 %v241_v20, %v3220_v33  ;;  %v1255_v5 = vmul.f32 %v1127_v12, %v3396_v36 }
  0x7e   :  { %v1129_v15 = vmul.f32 %v2664_v62, %v3349_v51  ;;  %2669 = vpow2.f32 %v895_v55  ;;  %v893_v37 = vmul.f32 1.442695, %v749_v41  ;;  %v752_v10 = vmul.f32 -0.5, %v496_v21 }
  0x7f   :  { %1391 = vadd.xlane.f32.xlu1 %v1254_v0  ;;  %v495_v54 = vmul.f32 %v367_v3, %v367_v3  ;;  %v498_v53 = vmul.f32 %v370_v19, %v370_v19  ;;  %v497_v29 = vmul.f32 %v369_v7, %v369_v7  ;;  %v1258_v11 = vmul.f32 %v1130_v13, %v3400_v61  ;;  %v3424_v7 = vld [vmem:[#allocation8 + $0x78] sm:$0xff] }
  0x80   :  { %1389 = vadd.xlane.f32.xlu0 %v1253_v43  ;;  %2671 = vpow2.f32 %v893_v37  ;;  %v244_v8 = vsub.f32 %v3353_v46, %v3196_v22  ;;  %v243_v12 = vsub.f32 %v3353_v46, %v3202_v25  ;;  %v1257_v20 = vmul.f32 %v1129_v15, %v3408_v27  ;;  %v3428_v27 = vld [vmem:[#allocation8 + $0x70] sm:$0xff] }
  0x81   :  { %v3417_v51 = vadd.f32 -1.0, %v496_v21  ;;  %v899_v4 = vmul.f32 1.442695, %v752_v10  ;;  %v751_v0 = vmul.f32 -0.5, %v495_v54  ;;  %v2666_v60 = vpop.eup %2665  ;;  %v3419_v55 = vadd.f32 -1.0, %v495_v54 }
  0x82   :  { %v754_v41 = vmul.f32 -0.5, %v498_v53  ;;  %v753_v43 = vmul.f32 -0.5, %v497_v29  ;;  %v372_v13 = vmul.f32 %v244_v8, %v3222_v34  ;;  %v1132_v62 = vmul.f32 %v2666_v60, %v3372_v57 }
  0x83   :  { %1395 = vadd.xlane.f32.xlu1 %v1256_v59  ;;  %2673 = vpow2.f32 %v899_v4  ;;  %v897_v3 = vmul.f32 1.442695, %v751_v0  ;;  %v371_v19 = vmul.f32 %v243_v12, %v3224_v35  ;;  %v246_v10 = vsub.f32 %v3353_v46, %v3252_v1 }
  0x84   :  { %1393 = vadd.xlane.f32.xlu0 %v1255_v5  ;;  %v903_v21 = vmul.f32 1.442695, %v754_v41  ;;  %v901_v15 = vmul.f32 1.442695, %v753_v43  ;;  %v500_v37 = vmul.f32 %v372_v13, %v372_v13  ;;  %v2518_v59 = vadd.f32 -1.0, %v498_v53 }
  0x85   :  { %v2668_v54 = vpop.eup %2667  ;;  %2675 = vpow2.f32 %v897_v3  ;;  %v499_v8 = vmul.f32 %v371_v19, %v371_v19  ;;  %v245_v57 = vsub.f32 %v3353_v46, %v3254_v2  ;;  %v2517_v5 = vadd.f32 -1.0, %v497_v29 }
  0x86   :  { %v1131_v4 = vmul.f32 %v2668_v54, %v2511_v56  ;;  %2677 = vpow2.f32 %v903_v21  ;;  %v756_v12 = vmul.f32 -0.5, %v500_v37  ;;  %v1260_v0 = vmul.f32 %v1132_v62, %v3424_v7 }
  0x87   :  { %1399 = vadd.xlane.f32.xlu1 %v1258_v11  ;;  %2679 = vpow2.f32 %v901_v15  ;;  %v755_v60 = vmul.f32 -0.5, %v499_v8  ;;  %v374_v41 = vmul.f32 %v246_v10, %v3260_v32  ;;  %v373_v3 = vmul.f32 %v245_v57, %v3270_v44 }
  0x88   :  { %v2670_v43 = vpop.eup %2669  ;;  %1397 = vadd.xlane.f32.xlu0 %v1257_v20  ;;  %v1259_v13 = vmul.f32 %v1131_v4, %v3428_v27  ;;  %v907_v53 = vmul.f32 1.442695, %v756_v12  ;;  %v248_v56 = vsub.f32 %v3353_v46, %v3264_v39  ;;  %v247_v62 = vsub.f32 %v3353_v46, %v3266_v40  ;;  %v4863_v40 = vld [vmem:[#allocation34_spill] sm:$0xff] }
  0x89   :  { %v1134_v29 = vmul.f32 %v2670_v43, %v3398_v9  ;;  %v905_v19 = vmul.f32 1.442695, %v755_v60  ;;  %v502_v11 = vmul.f32 %v374_v41, %v374_v41  ;;  %v501_v15 = vmul.f32 %v373_v3, %v373_v3 }
  0x8a   :  { %v2672_v21 = vpop.eup %2671  ;;  %2681 = vpow2.f32 %v907_v53  ;;  %v376_v20 = vmul.f32 %v248_v56, %v3278_v49  ;;  %v250_v10 = vsub.f32 %v3353_v46, %v3272_v45  ;;  %v2520_v4 = vadd.f32 -1.0, %v500_v37  ;;  %v4861_v56 = vld [vmem:[#allocation33_spill] sm:$0xff]  ;;  %v4862_v45 = vld [vmem:[#allocation32_spill] sm:$0xff] }
  0x8b   :  { %1403 = vadd.xlane.f32.xlu1 %v1260_v0  ;;  %v1262_v54 = vmul.f32 %v1134_v29, %v3322_v42  ;;  %v1133_v57 = vmul.f32 %v2672_v21, %v3402_v17  ;;  %2683 = vpow2.f32 %v905_v19  ;;  %v2519_v9 = vadd.f32 -1.0, %v499_v8 }
  0x8c   :  { %1401 = vadd.xlane.f32.xlu0 %v1259_v13  ;;  %v758_v12 = vmul.f32 -0.5, %v502_v11  ;;  %v757_v60 = vmul.f32 -0.5, %v501_v15  ;;  %v504_v41 = vmul.f32 %v376_v20, %v376_v20  ;;  %v375_v3 = vmul.f32 %v247_v62, %v3280_v50  ;;  %v4864_v62 = vld [vmem:[#allocation37_spill] sm:$0xff] }
  0x8d   :  { %v2674_v43 = vpop.eup %2673  ;;  %v1261_v53 = vmul.f32 %v1133_v57, %v3313_v30  ;;  %v378_v49 = vmul.f32 %v250_v10, %v4861_v56  ;;  %v249_v0 = vsub.f32 %v3353_v46, %v4862_v45  ;;  %v3452_v17 = vadd.f32 -1.0, %v502_v11  ;;  %v4865_v45 = vld [vmem:[#allocation35_spill] sm:$0xff] }
  0x8e   :  { %v1136_v29 = vmul.f32 %v2674_v43, %v3417_v51  ;;  %v911_v37 = vmul.f32 1.442695, %v758_v12  ;;  %v909_v13 = vmul.f32 1.442695, %v757_v60  ;;  %v760_v19 = vmul.f32 -0.5, %v504_v41  ;;  %v4866_v43 = vld [vmem:[#allocation36_spill] sm:$0xff] }
  0x8f   :  { %v2676_v8 = vpop.eup %2675  ;;  %1407 = vadd.xlane.f32.xlu1 %v1262_v54  ;;  %v503_v21 = vmul.f32 %v375_v3, %v375_v3  ;;  %v506_v20 = vmul.f32 %v378_v49, %v378_v49  ;;  %v377_v57 = vmul.f32 %v249_v0, %v4863_v40  ;;  %v252_v51 = vsub.f32 %v3353_v46, %v4865_v45 }
  0x90   :  { %v2678_v39 = vpop.eup %2677  ;;  %1405 = vadd.xlane.f32.xlu0 %v1261_v53  ;;  %v1264_v10 = vmul.f32 %v1136_v29, %v4864_v62  ;;  %v1135_v56 = vmul.f32 %v2676_v8, %v3419_v55  ;;  %2685 = vpow2.f32 %v911_v37  ;;  %v2521_v60 = vadd.f32 -1.0, %v501_v15 }
  0x91   :  { %v2680_v11 = vpop.eup %2679  ;;  %v1138_v12 = vmul.f32 %v2678_v39, %v2518_v59  ;;  %2687 = vpow2.f32 %v909_v13  ;;  %v915_v54 = vmul.f32 1.442695, %v760_v19  ;;  %v2524_v50 = vadd.f32 -1.0, %v504_v41 }
  0x92   :  { %v1263_v3 = vmul.f32 %v1135_v56, %v4866_v43  ;;  %v1137_v49 = vmul.f32 %v2680_v11, %v2517_v5  ;;  %v759_v0 = vmul.f32 -0.5, %v503_v21  ;;  %v762_v29 = vmul.f32 -0.5, %v506_v20 }
  0x93   :  { %1411 = vadd.xlane.f32.xlu1 %v1264_v10  ;;  %v1266_v53 = vmul.f32 %v1138_v12, %v3335_v63  ;;  %2689 = vpow2.f32 %v915_v54  ;;  %v505_v55 = vmul.f32 %v377_v57, %v377_v57  ;;  %v380_v39 = vmul.f32 %v252_v51, %v3326_v28 }
  0x94   :  { %v2682_v37 = vpop.eup %2681  ;;  %1409 = vadd.xlane.f32.xlu0 %v1263_v3  ;;  %v1265_v8 = vmul.f32 %v1137_v49, %v3337_v6  ;;  %v913_v40 = vmul.f32 1.442695, %v759_v0  ;;  %v251_v59 = vsub.f32 %v3353_v46, %v3330_v58  ;;  %v2523_v41 = vadd.f32 -1.0, %v503_v21  ;;  %v4868_v49 = vld [vmem:[#allocation21_spill] sm:$0xff] }
  0x95   :  { %v2684_v15 = vpop.eup %2683  ;;  %v1140_v5 = vmul.f32 %v2682_v37, %v2520_v4  ;;  %v919_v56 = vmul.f32 1.442695, %v762_v29  ;;  %v761_v13 = vmul.f32 -0.5, %v505_v55  ;;  %v508_v10 = vmul.f32 %v380_v39, %v380_v39 }
  0x96   :  { %v1139_v19 = vmul.f32 %v2684_v15, %v2519_v9  ;;  %2691 = vpow2.f32 %v913_v40  ;;  %v379_v57 = vmul.f32 %v251_v59, %v3341_v31  ;;  %v254_v51 = vsub.f32 %v3365_v47, %v3186_v18  ;;  %v4867_v9 = vld [vmem:[#allocation19_spill] sm:$0xff]  ;;  %v4869_v18 = vld [vmem:[#allocation18_spill] sm:$0xff] }
  0x97   :  { %1415 = vadd.xlane.f32.xlu1 %v1266_v53  ;;  %v1268_v11 = vmul.f32 %v1140_v5, %v3343_v38  ;;  %2693 = vpow2.f32 %v919_v56  ;;  %v917_v12 = vmul.f32 1.442695, %v761_v13  ;;  %v2526_v4 = vadd.f32 -1.0, %v506_v20  ;;  %v4870_v5 = vld [vmem:[#allocation20_spill] sm:$0xff] }
  0x98   :  { %1413 = vadd.xlane.f32.xlu0 %v1265_v8  ;;  %v1267_v46 = vmul.f32 %v1139_v19, %v3347_v48  ;;  %v764_v21 = vmul.f32 -0.5, %v508_v10  ;;  %v507_v54 = vmul.f32 %v379_v57, %v379_v57  ;;  %v382_v40 = vmul.f32 %v254_v51, %v3198_v23 }
  0x99   :  { %2695 = vpow2.f32 %v917_v12  ;;  %v253_v3 = vsub.f32 %v3365_v47, %v4867_v9  ;;  %v256_v0 = vsub.f32 %v3365_v47, %v4868_v49  ;;  %v2525_v29 = vadd.f32 -1.0, %v505_v55  ;;  %v4871_v12 = vld [vmem:[#allocation38_spill] sm:$0xff] }
  0x9a   :  { %v2686_v53 = vpop.eup %2685  ;;  %v923_v37 = vmul.f32 1.442695, %v764_v21  ;;  %v763_v39 = vmul.f32 -0.5, %v507_v54  ;;  %v255_v8 = vsub.f32 %v3365_v47, %v4869_v18  ;;  %v510_v15 = vmul.f32 %v382_v40, %v382_v40 }
  0x9b   :  { %v2688_v59 = vpop.eup %2687  ;;  %1419 = vadd.xlane.f32.xlu1 %v1268_v11  ;;  %v1142_v20 = vmul.f32 %v2686_v53, %v3452_v17  ;;  %v381_v23 = vmul.f32 %v253_v3, %v4870_v5  ;;  %v384_v56 = vmul.f32 %v256_v0, %v3182_v16  ;;  %v2528_v21 = vadd.f32 -1.0, %v508_v10 }
  0x9c   :  { %1417 = vadd.xlane.f32.xlu0 %v1267_v46  ;;  %v1141_v13 = vmul.f32 %v2688_v59, %v2521_v60  ;;  %2697 = vpow2.f32 %v923_v37  ;;  %v921_v19 = vmul.f32 1.442695, %v763_v39  ;;  %v383_v55 = vmul.f32 %v255_v8, %v3178_v14  ;;  %v4872_v39 = vld [vmem:[#allocation22_spill] sm:$0xff] }
  0x9d   :  { %v2690_v57 = vpop.eup %2689  ;;  %v1270_v51 = vmul.f32 %v1142_v20, %v4871_v12  ;;  %v766_v9 = vmul.f32 -0.5, %v510_v15  ;;  %v509_v49 = vmul.f32 %v381_v23, %v381_v23  ;;  %v512_v40 = vmul.f32 %v384_v56, %v384_v56 }
  0x9e   :  { %v1269_v11 = vmul.f32 %v1141_v13, %v3383_v52  ;;  %v1144_v17 = vmul.f32 %v2690_v57, %v2524_v50  ;;  %2699 = vpow2.f32 %v921_v19  ;;  %v2527_v3 = vadd.f32 -1.0, %v507_v54 }
  0x9f   :  { %1423 = vadd.xlane.f32.xlu1 %v1270_v51  ;;  %v927_v16 = vmul.f32 1.442695, %v766_v9  ;;  %v765_v46 = vmul.f32 -0.5, %v509_v49  ;;  %v511_v60 = vmul.f32 %v383_v55, %v383_v55  ;;  %v2530_v53 = vadd.f32 -1.0, %v510_v15  ;;  %v4873_v15 = vld [vmem:[#allocation23_spill] sm:$0xff] }
  0xa0   :  { %v2692_v0 = vpop.eup %2691  ;;  %1421 = vadd.xlane.f32.xlu0 %v1269_v11  ;;  %v1272_v14 = vmul.f32 %v1144_v17, %v3386_v26  ;;  %v768_v37 = vmul.f32 -0.5, %v512_v40  ;;  %v258_v10 = vsub.f32 %v3365_v47, %v4872_v39  ;;  %v3486_v50 = vadd.f32 -1.0, %v509_v49  ;;  %v4874_v17 = vld [vmem:[#allocation39_spill] sm:$0xff] }
  0xa1   :  { %v2694_v18 = vpop.eup %2693  ;;  %v1143_v8 = vmul.f32 %v2692_v0, %v2523_v41  ;;  %2701 = vpow2.f32 %v927_v16  ;;  %v925_v59 = vmul.f32 1.442695, %v765_v46  ;;  %v767_v5 = vmul.f32 -0.5, %v511_v60 }
  0xa2   :  { %v1146_v20 = vmul.f32 %v2694_v18, %v2526_v4  ;;  %v931_v54 = vmul.f32 1.442695, %v768_v37  ;;  %v386_v23 = vmul.f32 %v258_v10, %v3200_v24  ;;  %v257_v19 = vsub.f32 %v3365_v47, %v4873_v15 }
  0xa3   :  { %v2696_v56 = vpop.eup %2695  ;;  %1427 = vadd.xlane.f32.xlu1 %v1272_v14  ;;  %v1271_v13 = vmul.f32 %v1143_v8, %v3396_v36  ;;  %2703 = vpow2.f32 %v925_v59  ;;  %v260_v41 = vsub.f32 %v3365_v47, %v3196_v22  ;;  %v929_v4 = vmul.f32 1.442695, %v767_v5 }
  0xa4   :  { %v1274_v55 = vmul.f32 %v1146_v20, %v3400_v61  ;;  %v1145_v57 = vmul.f32 %v2696_v56, %v2525_v29  ;;  %2705 = vpow2.f32 %v931_v54  ;;  %v514_v51 = vmul.f32 %v386_v23, %v386_v23 }
  0xa5   :  { %1425 = vadd.xlane.f32.xlu0 %v1271_v13  ;;  %v385_v24 = vmul.f32 %v257_v19, %v3220_v33  ;;  %v388_v9 = vmul.f32 %v260_v41, %v3222_v34  ;;  %v259_v49 = vsub.f32 %v3365_v47, %v3202_v25  ;;  %2707 = vpow2.f32 %v929_v4 }
  0xa6   :  { %v2698_v11 = vpop.eup %2697  ;;  %v1273_v16 = vmul.f32 %v1145_v57, %v4874_v17  ;;  %v262_v22 = vsub.f32 %v3365_v47, %v3252_v1  ;;  %v261_v29 = vsub.f32 %v3365_v47, %v3254_v2  ;;  %v2532_v0 = vadd.f32 -1.0, %v512_v40 }
  0xa7   :  { %1431 = vadd.xlane.f32.xlu1 %v1274_v55  ;;  %v1148_v46 = vmul.f32 %v2698_v11, %v2528_v21  ;;  %v770_v14 = vmul.f32 -0.5, %v514_v51  ;;  %v513_v33 = vmul.f32 %v385_v24, %v385_v24  ;;  %v516_v34 = vmul.f32 %v388_v9, %v388_v9 }
  0xa8   :  { %v2700_v37 = vpop.eup %2699  ;;  %v387_v39 = vmul.f32 %v259_v49, %v3224_v35  ;;  %v390_v25 = vmul.f32 %v262_v22, %v3260_v32  ;;  %v389_v10 = vmul.f32 %v261_v29, %v3270_v44  ;;  %v2531_v8 = vadd.f32 -1.0, %v511_v60  ;;  %v4875_v22 = vld [vmem:[#allocation27_spill] sm:$0xff] }
  0xa9   :  { %1429 = vadd.xlane.f32.xlu0 %v1273_v16  ;;  %v1276_v18 = vmul.f32 %v1148_v46, %v3424_v7  ;;  %v1147_v1 = vmul.f32 %v2700_v37, %v2527_v3  ;;  %v935_v59 = vmul.f32 1.442695, %v770_v14  ;;  %v2534_v2 = vadd.f32 -1.0, %v514_v51  ;;  %v4876_v46 = vld [vmem:[#allocation28_spill] sm:$0xff]  ;;  %v4878_v37 = vld [vmem:[#allocation30_spill] sm:$0xff] }
  0xaa   :  { %v769_v20 = vmul.f32 -0.5, %v513_v33  ;;  %v772_v21 = vmul.f32 -0.5, %v516_v34  ;;  %v515_v40 = vmul.f32 %v387_v39, %v387_v39  ;;  %v518_v35 = vmul.f32 %v390_v25, %v390_v25  ;;  %v4879_v39 = vld [vmem:[#allocation31_spill] sm:$0xff]  ;;  %v4880_v25 = vld [vmem:[#allocation32_spill] sm:$0xff] }
  0xab   :  { %v2702_v54 = vpop.eup %2701  ;;  %1435 = vadd.xlane.f32.xlu1 %v1276_v18  ;;  %v1275_v5 = vmul.f32 %v1147_v1, %v3428_v27  ;;  %2709 = vpow2.f32 %v935_v59  ;;  %v517_v23 = vmul.f32 %v389_v10, %v389_v10  ;;  %v2533_v56 = vadd.f32 -1.0, %v513_v33  ;;  %v4877_v33 = vld [vmem:[#allocation29_spill] sm:$0xff] }
  0xac   :  { %v1150_v32 = vmul.f32 %v2702_v54, %v2530_v53  ;;  %v933_v44 = vmul.f32 1.442695, %v769_v20  ;;  %v939_v13 = vmul.f32 1.442695, %v772_v21  ;;  %v2536_v3 = vadd.f32 -1.0, %v516_v34  ;;  %v4881_v1 = vld [vmem:[#allocation33_spill] sm:$0xff] }
  0xad   :  { %v2704_v15 = vpop.eup %2703  ;;  %1433 = vadd.xlane.f32.xlu0 %v1275_v5  ;;  %v3509_v60 = vadd.f32 -1.0, %v515_v40  ;;  %v771_v19 = vmul.f32 -0.5, %v515_v40  ;;  %v774_v41 = vmul.f32 -0.5, %v518_v35  ;;  %v773_v51 = vmul.f32 -0.5, %v517_v23  ;;  %v4882_v21 = vld [vmem:[#allocation34_spill] sm:$0xff] }
  0xae   :  { %v2706_v55 = vpop.eup %2705  ;;  %v1278_v57 = vmul.f32 %v1150_v32, %v3322_v42  ;;  %v1149_v4 = vmul.f32 %v2704_v15, %v3486_v50  ;;  %2711 = vpow2.f32 %v933_v44  ;;  %v264_v29 = vsub.f32 %v3365_v47, %v4875_v22 }
  0xaf   :  { %v1152_v24 = vmul.f32 %v2706_v55, %v2532_v0  ;;  %2713 = vpow2.f32 %v939_v13  ;;  %v937_v53 = vmul.f32 1.442695, %v771_v19  ;;  %v943_v9 = vmul.f32 1.442695, %v774_v41  ;;  %v2708_v49 = vpop.eup %2707  ;;  %v4883_v41 = vld [vmem:[#allocation24_spill] sm:$0xff]  ;;  %v4884_v55 = vld [vmem:[#allocation17_spill] sm:$0xff] }
  0xb0   :  { %1439 = vadd.xlane.f32.xlu1 %v1278_v57  ;;  %v1277_v11 = vmul.f32 %v1149_v4, %v3313_v30  ;;  %v941_v16 = vmul.f32 1.442695, %v773_v51  ;;  %v263_v14 = vsub.f32 %v3365_v47, %v4876_v46  ;;  %v1151_v50 = vmul.f32 %v2708_v49, %v2531_v8  ;;  %v4885_v57 = vld [vmem:[#allocation26_spill] sm:$0xff] }
  0xb1   :  { %v1280_v42 = vmul.f32 %v1152_v24, %v4864_v62  ;;  %2715 = vpow2.f32 %v937_v53  ;;  %v266_v0 = vsub.f32 %v3365_v47, %v4877_v33  ;;  %v392_v34 = vmul.f32 %v264_v29, %v4878_v37 }
  0xb2   :  { %1437 = vadd.xlane.f32.xlu0 %v1277_v11  ;;  %2717 = vpow2.f32 %v943_v9  ;;  %v391_v30 = vmul.f32 %v263_v14, %v4879_v39  ;;  %v265_v10 = vsub.f32 %v3365_v47, %v4880_v25  ;;  %v1279_v18 = vmul.f32 %v1151_v50, %v4866_v43 }
  0xb3   :  { %2719 = vpow2.f32 %v941_v16  ;;  %v394_v59 = vmul.f32 %v266_v0, %v4881_v1  ;;  %v268_v62 = vsub.f32 %v3365_v47, %v4865_v45  ;;  %v520_v8 = vmul.f32 %v392_v34, %v392_v34  ;;  %v3557_v1 = vld [vmem:[#allocation7] sm:$0xff] }
  0xb4   :  { %1443 = vadd.xlane.f32.xlu1 %v1280_v42  ;;  %v519_v20 = vmul.f32 %v391_v30, %v391_v30  ;;  %v393_v40 = vmul.f32 %v265_v10, %v4882_v21  ;;  %v267_v54 = vsub.f32 %v3365_v47, %v3330_v58  ;;  %v2538_v32 = vadd.f32 -1.0, %v518_v35  ;;  %v3568_v21 = vld [vmem:[#allocation7 + $0x10] sm:$0xff] }
  0xb5   :  { %v2710_v5 = vpop.eup %2709  ;;  %v2537_v44 = vadd.f32 -1.0, %v517_v23  ;;  %v522_v13 = vmul.f32 %v394_v59, %v394_v59  ;;  %v396_v43 = vmul.f32 %v268_v62, %v3326_v28  ;;  %v776_v19 = vmul.f32 -0.5, %v520_v8 }
  0xb6   :  { %1441 = vadd.xlane.f32.xlu0 %v1279_v18  ;;  %v1154_v15 = vmul.f32 %v2710_v5, %v2534_v2  ;;  %v179_v45 = vcombine.high %v4883_v41, %v4883_v41  ;;  %v3537_v4 = vrot.slane %v4885_v57, %v4884_v55  ;;  %v3539_v51 = vadd.f32 -1.0, %v520_v8  ;;  %v3562_v8 = vld [vmem:[#allocation7 + $0x8] sm:$0xff]  ;;  %v4886_v41 = vld [vmem:[#allocation16_spill] sm:$0xff] }
  0xb7   :  { %v775_v24 = vmul.f32 -0.5, %v519_v20  ;;  %v778_v58 = vmul.f32 -0.5, %v522_v13  ;;  %v521_v47 = vmul.f32 %v393_v40, %v393_v40  ;;  %v947_v53 = vmul.f32 1.442695, %v776_v19  ;;  %v3572_v40 = vld [vmem:[#allocation5] sm:$0xff] }
  0xb8   :  { %v2712_v35 = vpop.eup %2711  ;;  %v1282_v23 = vmul.f32 %v1154_v15, %v3335_v63  ;;  %v524_v28 = vmul.f32 %v396_v43, %v396_v43  ;;  %v395_v2 = vmul.f32 %v267_v54, %v3341_v31  ;;  %v3543_v11 = vadd.f32 -1.0, %v519_v20  ;;  %v3585_v15 = vld [vmem:[#allocation5 + $0x10] sm:$0xff] }
  0xb9   :  { %v2714_v9 = vpop.eup %2713  ;;  %v1153_v49 = vmul.f32 %v2712_v35, %v2533_v56  ;;  %v945_v16 = vmul.f32 1.442695, %v775_v24  ;;  %v951_v22 = vmul.f32 1.442695, %v778_v58  ;;  %2721 = vpow2.f32 %v947_v53  ;;  %v3594_v53 = vld [vmem:[#allocation5 + $0x18] sm:$0xff] }
  0xba   :  { %1447 = vadd.xlane.f32.xlu1 %v1282_v23  ;;  %v1156_v29 = vmul.f32 %v2714_v9, %v2536_v3  ;;  %v3545_v46 = vadd.f32 -1.0, %v522_v13  ;;  %v777_v14 = vmul.f32 -0.5, %v521_v47  ;;  %v780_v63 = vmul.f32 -0.5, %v524_v28 }
  0xbb   :  { %v2716_v42 = vpop.eup %2715  ;;  %v1281_v50 = vmul.f32 %v1153_v49, %v3337_v6  ;;  %2723 = vpow2.f32 %v945_v16  ;;  %v523_v33 = vmul.f32 %v395_v2, %v395_v2  ;;  %v3550_v39 = vadd.f32 -1.0, %v521_v47 }
  0xbc   :  { %v2718_v0 = vpop.eup %2717  ;;  %v1284_v31 = vmul.f32 %v1156_v29, %v3343_v38  ;;  %v1155_v56 = vmul.f32 %v2716_v42, %v3509_v60  ;;  %2725 = vpow2.f32 %v951_v22  ;;  %v949_v37 = vmul.f32 1.442695, %v777_v14 }
  0xbd   :  { %v2720_v34 = vpop.eup %2719  ;;  %1445 = vadd.xlane.f32.xlu0 %v1281_v50  ;;  %v1158_v3 = vmul.f32 %v2718_v0, %v2538_v32  ;;  %v955_v30 = vmul.f32 1.442695, %v780_v63  ;;  %v779_v25 = vmul.f32 -0.5, %v523_v33  ;;  %v3554_v18 = vrot.slane %v179_v45, %v4884_v55  ;;  %v4887_v45 = vld [vmem:[#allocation25_spill] sm:$0xff] }
  0xbe   :  { %1451 = vadd.xlane.f32.xlu1 %v1284_v31  ;;  %v1283_v6 = vmul.f32 %v1155_v56, %v3347_v48  ;;  %v1157_v10 = vmul.f32 %v2720_v34, %v2537_v44  ;;  %2727 = vpow2.f32 %v949_v37  ;;  %v285_v59 = vsub.f32 %v3537_v4, %v3557_v1  ;;  %v3581_v44 = vld [vmem:[#allocation5 + $0x8] sm:$0xff] }
  0xbf   :  { %v1286_v38 = vmul.f32 %v1158_v3, %v4871_v12  ;;  %2729 = vpow2.f32 %v955_v30  ;;  %v953_v60 = vmul.f32 1.442695, %v779_v25  ;;  %v270_v48 = vsub.f32 %v3554_v18, %v3562_v8 }
  0xc0   :  { %v1285_v62 = vmul.f32 %v1157_v10, %v3383_v52  ;;  %v269_v20 = vsub.f32 %v3554_v18, %v3557_v1  ;;  %v271_v12 = vsub.f32 %v3554_v18, %v3568_v21  ;;  %v413_v54 = vmul.f32 %v3572_v40, %v285_v59  ;;  %v3575_v52 = vld [vmem:[#allocation7 + $0x18] sm:$0xff] }
  0xc1   :  { %1449 = vadd.xlane.f32.xlu0 %v1283_v6  ;;  %2731 = vpow2.f32 %v953_v60  ;;  %v272_v5 = vsub.f32 %v3554_v18, %v3575_v52  ;;  %v286_v32 = vsub.f32 %v3537_v4, %v3562_v8  ;;  %v398_v13 = vmul.f32 %v3581_v44, %v270_v48 }
  0xc2   :  { %1455 = vadd.xlane.f32.xlu1 %v1286_v38  ;;  %v397_v43 = vmul.f32 %v3572_v40, %v269_v20  ;;  %v399_v19 = vmul.f32 %v3585_v15, %v271_v12  ;;  %v4888_v24 = vcombine.high %v4887_v45, %v4887_v45  ;;  %v2544_v47 = vadd.f32 -1.0, %v524_v28 }
  0xc3   :  { %v2543_v35 = vadd.f32 -1.0, %v523_v33  ;;  %v541_v23 = vmul.f32 %v413_v54, %v413_v54  ;;  %v400_v2 = vmul.f32 %v3594_v53, %v272_v5  ;;  %v2722_v9 = vpop.eup %2721  ;;  %v526_v49 = vmul.f32 %v398_v13, %v398_v13 }
  0xc4   :  { %v3592_v58 = vrot.slane %v4888_v24, %v4886_v41  ;;  %v525_v16 = vmul.f32 %v397_v43, %v397_v43  ;;  %v527_v22 = vmul.f32 %v399_v19, %v399_v19  ;;  %v414_v29 = vmul.f32 %v3581_v44, %v286_v32  ;;  %v3622_v24 = vld [vmem:[#allocation7 + $0x20] sm:$0xff] }
  0xc5   :  { %v2724_v14 = vpop.eup %2723  ;;  %1453 = vadd.xlane.f32.xlu0 %v1285_v62  ;;  %v1160_v42 = vmul.f32 %v2722_v9, %v3539_v51  ;;  %v797_v50 = vmul.f32 -0.5, %v541_v23  ;;  %v287_v63 = vsub.f32 %v3537_v4, %v3568_v21  ;;  %v782_v31 = vmul.f32 -0.5, %v526_v49 }
  0xc6   :  { %v3601_v28 = vrot.slane %v3592_v58, %v4884_v55  ;;  %v2726_v33 = vpop.eup %2725  ;;  %v1159_v0 = vmul.f32 %v2724_v14, %v3543_v11  ;;  %v3606_v56 = vadd.f32 -1.0, %v541_v23  ;;  %v528_v37 = vmul.f32 %v400_v2, %v400_v2 }
  0xc7   :  { %v1288_v34 = vmul.f32 %v1160_v42, %v3386_v26  ;;  %v1162_v3 = vmul.f32 %v2726_v33, %v3545_v46  ;;  %v781_v51 = vmul.f32 -0.5, %v525_v16  ;;  %v989_v30 = vmul.f32 1.442695, %v797_v50 }
  0xc8   :  { %v2728_v25 = vpop.eup %2727  ;;  %v1287_v6 = vmul.f32 %v1159_v0, %v3396_v36  ;;  %v3611_v10 = vadd.f32 -1.0, %v526_v49  ;;  %v959_v38 = vmul.f32 1.442695, %v782_v31  ;;  %v783_v60 = vmul.f32 -0.5, %v527_v22  ;;  %v3630_v49 = vld [vmem:[#allocation5 + $0x20] sm:$0xff] }
  0xc9   :  { %v2730_v59 = vpop.eup %2729  ;;  %1459 = vadd.xlane.f32.xlu1 %v1288_v34  ;;  %v1290_v11 = vmul.f32 %v1162_v3, %v3400_v61  ;;  %v1161_v62 = vmul.f32 %v2728_v25, %v3550_v39  ;;  %v957_v48 = vmul.f32 1.442695, %v781_v51  ;;  %2733 = vpow2.f32 %v989_v30 }
  0xca   :  { %1457 = vadd.xlane.f32.xlu0 %v1287_v6  ;;  %v1164_v26 = vmul.f32 %v2730_v59, %v2544_v47  ;;  %2735 = vpow2.f32 %v959_v38  ;;  %v2545_v46 = vadd.f32 -1.0, %v525_v16  ;;  %v961_v20 = vmul.f32 1.442695, %v783_v60 }
  0xcb   :  { %v2732_v12 = vpop.eup %2731  ;;  %v1289_v36 = vmul.f32 %v1161_v62, %v4874_v17  ;;  %2737 = vpow2.f32 %v957_v48  ;;  %v784_v54 = vmul.f32 -0.5, %v528_v37  ;;  %v542_v5 = vmul.f32 %v414_v29, %v414_v29 }
  0xcc   :  { %v1163_v32 = vmul.f32 %v2732_v12, %v2543_v35  ;;  %v2547_v13 = vadd.f32 -1.0, %v527_v22  ;;  %2739 = vpow2.f32 %v961_v20  ;;  %v301_v61 = vsub.f32 %v3601_v28, %v3557_v1 }
  0xcd   :  { %1463 = vadd.xlane.f32.xlu1 %v1290_v11  ;;  %v1292_v39 = vmul.f32 %v1164_v26, %v3424_v7  ;;  %v963_v43 = vmul.f32 1.442695, %v784_v54  ;;  %v798_v19 = vmul.f32 -0.5, %v542_v5  ;;  %v415_v41 = vmul.f32 %v3585_v15, %v287_v63  ;;  %v3648_v54 = vld [vmem:[#allocation8 + $0x8] sm:$0xff] }
  0xce   :  { %1461 = vadd.xlane.f32.xlu0 %v1289_v36  ;;  %v1291_v45 = vmul.f32 %v1163_v32, %v3428_v27  ;;  %v429_v17 = vmul.f32 %v3572_v40, %v301_v61  ;;  %v273_v47 = vsub.f32 %v3554_v18, %v3622_v24  ;;  %v302_v35 = vsub.f32 %v3601_v28, %v3562_v8 }
  0xcf   :  { %2741 = vpow2.f32 %v963_v43  ;;  %v991_v23 = vmul.f32 1.442695, %v798_v19  ;;  %v543_v7 = vmul.f32 %v415_v41, %v415_v41  ;;  %v303_v2 = vsub.f32 %v3601_v28, %v3568_v21 }
  0xd0   :  { %v557_v9 = vmul.f32 %v429_v17, %v429_v17  ;;  %v401_v27 = vmul.f32 %v3630_v49, %v273_v47  ;;  %v430_v16 = vmul.f32 %v3581_v44, %v302_v35  ;;  %v288_v22 = vsub.f32 %v3537_v4, %v3575_v52 }
  0xd1   :  { %1467 = vadd.xlane.f32.xlu1 %v1292_v39  ;;  %v2548_v29 = vadd.f32 -1.0, %v528_v37  ;;  %2743 = vpow2.f32 %v991_v23  ;;  %v799_v14 = vmul.f32 -0.5, %v543_v7  ;;  %v431_v42 = vmul.f32 %v3585_v15, %v303_v2  ;;  %v3653_v39 = vld [vmem:[#allocation8] sm:$0xff] }
  0xd2   :  { %1465 = vadd.xlane.f32.xlu0 %v1291_v45  ;;  %v2562_v50 = vadd.f32 -1.0, %v542_v5  ;;  %v813_v63 = vmul.f32 -0.5, %v557_v9  ;;  %v529_v33 = vmul.f32 %v401_v27, %v401_v27  ;;  %v558_v0 = vmul.f32 %v430_v16, %v430_v16  ;;  %v3662_v45 = vld [vmem:[#allocation8 + $0x10] sm:$0xff]  ;;  %v3670_v16 = vld [vmem:[#allocation7 + $0x28] sm:$0xff] }
  0xd3   :  { %v2734_v31 = vpop.eup %2733  ;;  %v3637_v34 = vadd.f32 -1.0, %v557_v9  ;;  %v3639_v3 = vadd.f32 -1.0, %v543_v7  ;;  %v993_v51 = vmul.f32 1.442695, %v799_v14  ;;  %v559_v30 = vmul.f32 %v431_v42, %v431_v42  ;;  %v3674_v14 = vld [vmem:[#allocation8 + $0x18] sm:$0xff] }
  0xd4   :  { %v2736_v25 = vpop.eup %2735  ;;  %v1021_v6 = vmul.f32 1.442695, %v813_v63  ;;  %v785_v38 = vmul.f32 -0.5, %v529_v33  ;;  %v416_v37 = vmul.f32 %v3594_v53, %v288_v22  ;;  %v178_v60 = vcombine.high %v4885_v57, %v4885_v57 }
  0xd5   :  { %v2738_v59 = vpop.eup %2737  ;;  %v1166_v11 = vmul.f32 %v2736_v25, %v3611_v10  ;;  %v1181_v62 = vmul.f32 %v2734_v31, %v3606_v56  ;;  %2745 = vpow2.f32 %v993_v51  ;;  %v814_v48 = vmul.f32 -0.5, %v558_v0  ;;  %v3679_v51 = vld [vmem:[#allocation5 + $0x28] sm:$0xff] }
  0xd6   :  { %v2740_v26 = vpop.eup %2739  ;;  %v1165_v20 = vmul.f32 %v2738_v59, %v2545_v46  ;;  %2747 = vpow2.f32 %v1021_v6  ;;  %v3646_v12 = vadd.f32 -1.0, %v529_v33  ;;  %v965_v36 = vmul.f32 1.442695, %v785_v38 }
  0xd7   :  { %v1294_v5 = vmul.f32 %v3648_v54, %v1166_v11  ;;  %v1167_v32 = vmul.f32 %v2740_v26, %v2547_v13  ;;  %v3651_v61 = vadd.f32 -1.0, %v558_v0  ;;  %v1023_v57 = vmul.f32 1.442695, %v814_v48 }
  0xd8   :  { %v1293_v56 = vmul.f32 %v3653_v39, %v1165_v20  ;;  %2749 = vpow2.f32 %v965_v36  ;;  %v815_v10 = vmul.f32 -0.5, %v559_v30  ;;  %v544_v43 = vmul.f32 %v416_v37, %v416_v37 }
  0xd9   :  { %v2742_v46 = vpop.eup %2741  ;;  %1471 = vadd.xlane.f32.xlu1 %v1294_v5  ;;  %v1309_v19 = vmul.f32 %v3653_v39, %v1181_v62  ;;  %2751 = vpow2.f32 %v1023_v57  ;;  %v3658_v41 = vrot.slane %v178_v60, %v4884_v55  ;;  %v289_v13 = vsub.f32 %v3537_v4, %v3622_v24 }
  0xda   :  { %1469 = vadd.xlane.f32.xlu0 %v1293_v56  ;;  %v1295_v17 = vmul.f32 %v3662_v45, %v1167_v32  ;;  %v1168_v47 = vmul.f32 %v2742_v46, %v2548_v29  ;;  %v1025_v35 = vmul.f32 1.442695, %v815_v10  ;;  %v800_v23 = vmul.f32 -0.5, %v544_v43 }
  0xdb   :  { %v2744_v7 = vpop.eup %2743  ;;  %v318_v2 = vsub.f32 %v3658_v41, %v3562_v8  ;;  %v317_v9 = vsub.f32 %v3658_v41, %v3557_v1  ;;  %v417_v27 = vmul.f32 %v3630_v49, %v289_v13  ;;  %v274_v22 = vsub.f32 %v3554_v18, %v3670_v16 }
  0xdc   :  { %v1296_v29 = vmul.f32 %v3674_v14, %v1168_v47  ;;  %v1182_v42 = vmul.f32 %v2744_v7, %v2562_v50  ;;  %2753 = vpow2.f32 %v1025_v35  ;;  %v995_v63 = vmul.f32 1.442695, %v800_v23 }
  0xdd   :  { %1501 = vadd.xlane.f32.xlu1 %v1309_v19  ;;  %v446_v33 = vmul.f32 %v3581_v44, %v318_v2  ;;  %v445_v0 = vmul.f32 %v3572_v40, %v317_v9  ;;  %v545_v31 = vmul.f32 %v417_v27, %v417_v27  ;;  %v402_v25 = vmul.f32 %v3679_v51, %v274_v22  ;;  %v3699_v9 = vld [vmem:[#allocation8 + $0x20] sm:$0xff] }
  0xde   :  { %1473 = vadd.xlane.f32.xlu0 %v1295_v17  ;;  %v1310_v6 = vmul.f32 %v3648_v54, %v1182_v42  ;;  %2755 = vpow2.f32 %v995_v63  ;;  %v319_v38 = vsub.f32 %v3658_v41, %v3568_v21  ;;  %v304_v50 = vsub.f32 %v3601_v28, %v3575_v52 }
  0xdf   :  { %v2746_v37 = vpop.eup %2745  ;;  %v2579_v60 = vadd.f32 -1.0, %v559_v30  ;;  %v574_v59 = vmul.f32 %v446_v33, %v446_v33  ;;  %v573_v11 = vmul.f32 %v445_v0, %v445_v0  ;;  %v801_v62 = vmul.f32 -0.5, %v545_v31 }
  0xe0   :  { %v2748_v48 = vpop.eup %2747  ;;  %v1183_v26 = vmul.f32 %v2746_v37, %v3639_v3  ;;  %v2564_v20 = vadd.f32 -1.0, %v544_v43  ;;  %v530_v36 = vmul.f32 %v402_v25, %v402_v25  ;;  %v447_v5 = vmul.f32 %v3585_v15, %v319_v38  ;;  %v3707_v37 = vld [vmem:[#allocation7 + $0x30] sm:$0xff] }
  0xe1   :  { %1475 = vadd.xlane.f32.xlu1 %v1296_v29  ;;  %v1197_v32 = vmul.f32 %v2748_v48, %v3637_v34  ;;  %v830_v57 = vmul.f32 -0.5, %v574_v59  ;;  %v3690_v56 = vadd.f32 -1.0, %v545_v31  ;;  %v432_v10 = vmul.f32 %v3594_v53, %v304_v50 }
  0xe2   :  { %v2750_v46 = vpop.eup %2749  ;;  %1503 = vadd.xlane.f32.xlu0 %v1310_v6  ;;  %v1311_v30 = vmul.f32 %v3662_v45, %v1183_v26  ;;  %v3694_v19 = vadd.f32 -1.0, %v574_v59  ;;  %v829_v13 = vmul.f32 -0.5, %v573_v11  ;;  %v997_v3 = vmul.f32 1.442695, %v801_v62 }
  0xe3   :  { %v2752_v43 = vpop.eup %2751  ;;  %v1325_v17 = vmul.f32 %v3653_v39, %v1197_v32  ;;  %v1169_v47 = vmul.f32 %v2750_v46, %v3646_v12  ;;  %v1055_v35 = vmul.f32 1.442695, %v830_v57  ;;  %v786_v34 = vmul.f32 -0.5, %v530_v36 }
  0xe4   :  { %v1198_v23 = vmul.f32 %v2752_v43, %v3651_v61  ;;  %v1053_v7 = vmul.f32 1.442695, %v829_v13  ;;  %2757 = vpow2.f32 %v997_v3  ;;  %v575_v2 = vmul.f32 %v447_v5, %v447_v5 }
  0xe5   :  { %1533 = vadd.xlane.f32.xlu1 %v1325_v17  ;;  %v1297_v27 = vmul.f32 %v3699_v9, %v1169_v47  ;;  %2759 = vpow2.f32 %v1055_v35  ;;  %v967_v22 = vmul.f32 1.442695, %v786_v34  ;;  %v560_v29 = vmul.f32 %v432_v10, %v432_v10 }
  0xe6   :  { %v2754_v42 = vpop.eup %2753  ;;  %1505 = vadd.xlane.f32.xlu0 %v1311_v30  ;;  %v1326_v63 = vmul.f32 %v3648_v54, %v1198_v23  ;;  %v2593_v12 = vadd.f32 -1.0, %v573_v11  ;;  %2761 = vpow2.f32 %v1053_v7  ;;  %v831_v33 = vmul.f32 -0.5, %v575_v2 }
  0xe7   :  { %v1199_v0 = vmul.f32 %v2754_v42, %v2579_v60  ;;  %v2550_v61 = vadd.f32 -1.0, %v530_v36  ;;  %2763 = vpow2.f32 %v967_v22  ;;  %v816_v31 = vmul.f32 -0.5, %v560_v29  ;;  %v3718_v36 = vld [vmem:[#allocation5 + $0x30] sm:$0xff] }
  0xe8   :  { %v2756_v25 = vpop.eup %2755  ;;  %v1057_v6 = vmul.f32 1.442695, %v831_v33  ;;  %v180_v38 = vcombine.high %v3592_v58, %v3592_v58  ;;  %v290_v50 = vsub.f32 %v3537_v4, %v3670_v16  ;;  %v275_v59 = vsub.f32 %v3554_v18, %v3707_v37 }
  0xe9   :  { %1477 = vadd.xlane.f32.xlu1 %v1297_v27  ;;  %v1327_v11 = vmul.f32 %v3662_v45, %v1199_v0  ;;  %v1184_v60 = vmul.f32 %v2756_v25, %v2564_v20  ;;  %v1027_v62 = vmul.f32 1.442695, %v816_v31  ;;  %v320_v48 = vsub.f32 %v3658_v41, %v3575_v52 }
  0xea   :  { %1535 = vadd.xlane.f32.xlu0 %v1326_v63  ;;  %2765 = vpow2.f32 %v1057_v6  ;;  %v3715_v58 = vrot.slane %v180_v38, %v4884_v55  ;;  %v418_v26 = vmul.f32 %v3679_v51, %v290_v50  ;;  %v403_v5 = vmul.f32 %v3718_v36, %v275_v59 }
  0xeb   :  { %v1312_v32 = vmul.f32 %v3674_v14, %v1184_v60  ;;  %2767 = vpow2.f32 %v1027_v62  ;;  %v448_v20 = vmul.f32 %v3594_v53, %v320_v48  ;;  %v305_v57 = vsub.f32 %v3601_v28, %v3622_v24 }
  0xec   :  { %v334_v10 = vsub.f32 %v3715_v58, %v3562_v8  ;;  %v333_v55 = vsub.f32 %v3715_v58, %v3557_v1  ;;  %v546_v46 = vmul.f32 %v418_v26, %v418_v26  ;;  %v531_v30 = vmul.f32 %v403_v5, %v403_v5 }
  0xed   :  { %1537 = vadd.xlane.f32.xlu1 %v1327_v11  ;;  %v2595_v13 = vadd.f32 -1.0, %v575_v2  ;;  %v2580_v3 = vadd.f32 -1.0, %v560_v29  ;;  %v576_v43 = vmul.f32 %v448_v20, %v448_v20  ;;  %v433_v17 = vmul.f32 %v3630_v49, %v305_v57  ;;  %v3738_v29 = vld [vmem:[#allocation7 + $0x38] sm:$0xff]  ;;  %v3752_v57 = vld [vmem:[#allocation8 + $0x28] sm:$0xff] }
  0xee   :  { %v2758_v47 = vpop.eup %2757  ;;  %1507 = vadd.xlane.f32.xlu0 %v1312_v32  ;;  %v462_v35 = vmul.f32 %v3581_v44, %v334_v10  ;;  %v461_v34 = vmul.f32 %v3572_v40, %v333_v55  ;;  %v802_v23 = vmul.f32 -0.5, %v546_v46  ;;  %v4889_v7 = vlaneseq }
  0xef   :  { %v2760_v27 = vpop.eup %2759  ;;  %v1185_v1 = vmul.f32 %v2758_v47, %v3690_v56  ;;  %v3736_v22 = vadd.f32 -1.0, %v546_v46  ;;  %v787_v2 = vmul.f32 -0.5, %v531_v30  ;;  %v276_v42 = vsub.f32 %v3554_v18, %v3738_v29  ;;  %v3756_v47 = vld [vmem:[#allocation5 + $0x38] sm:$0xff] }
  0xf0   :  { %v3733_v8 = vand.u32 127, %v4889_v7  ;;  %v2762_v63 = vpop.eup %2761  ;;  %v1214_v44 = vmul.f32 %v2760_v27, %v3694_v19  ;;  %v590_v33 = vmul.f32 %v462_v35, %v462_v35  ;;  %v589_v40 = vmul.f32 %v461_v34, %v461_v34  ;;  %v4890_v7 = vld [vmem:[#allocation15_spill] sm:$0xff] }
  0xf1   :  { %v999_v0 = vmul.f32 1.442695, %v802_v23  ;;  %v2764_v31 = vpop.eup %2763  ;;  %v1213_v25 = vmul.f32 %v2762_v63, %v2593_v12  ;;  %v3743_v6 = vadd.f32 -1.0, %v531_v30  ;;  %v969_v38 = vmul.f32 1.442695, %v787_v2 }
  0xf2   :  { %v832_v56 = vmul.f32 -0.5, %v576_v43  ;;  %v1342_v50 = vmul.f32 %v3648_v54, %v1214_v44  ;;  %v1170_v59 = vmul.f32 %v2764_v31, %v2550_v61  ;;  %v846_v11 = vmul.f32 -0.5, %v590_v33 }
  0xf3   :  { %v3746_v60 = vadd.f32 -1.0, %v576_v43  ;;  %v1341_v62 = vmul.f32 %v3653_v39, %v1213_v25  ;;  %v1313_v48 = vmul.f32 %v3699_v9, %v1185_v1  ;;  %v845_v19 = vmul.f32 -0.5, %v589_v40 }
  0xf4   :  { %2769 = vpow2.f32 %v999_v0  ;;  %v2766_v26 = vpop.eup %2765  ;;  %1567 = vadd.xlane.f32.xlu1 %v1342_v50  ;;  %v3750_v5 = vadd.f32 -1.0, %v590_v33  ;;  %v1087_v12 = vmul.f32 1.442695, %v846_v11  ;;  %v1059_v32 = vmul.f32 1.442695, %v832_v56 }
  0xf5   :  { %2771 = vpow2.f32 %v969_v38  ;;  %v2768_v20 = vpop.eup %2767  ;;  %1565 = vadd.xlane.f32.xlu0 %v1341_v62  ;;  %v1298_v61 = vmul.f32 %v3752_v57, %v1170_v59  ;;  %v1215_v10 = vmul.f32 %v2766_v26, %v2595_v13  ;;  %v1085_v55 = vmul.f32 1.442695, %v845_v19 }
  0xf6   :  { %v561_v46 = vmul.f32 %v433_v17, %v433_v17  ;;  %v1200_v30 = vmul.f32 %v2768_v20, %v2580_v3  ;;  %2773 = vpow2.f32 %v1087_v12  ;;  %v1771_v43 = vadd.s32 4294967280, %v3733_v8 }
  0xf7   :  { %v404_v35 = vmul.f32 %v3756_v47, %v276_v42  ;;  %v2609_v34 = vadd.f32 -1.0, %v589_v40  ;;  %2775 = vpow2.f32 %v1085_v55  ;;  %v3761_v27 = vsub.s32 %v3733_v8, %v4890_v7 }
  0xf8   :  { %v817_v23 = vmul.f32 -0.5, %v561_v46  ;;  %1509 = vadd.xlane.f32.xlu1 %v1313_v48  ;;  %v1343_v13 = vmul.f32 %v3662_v45, %v1215_v10  ;;  %v1328_v17 = vmul.f32 %v3674_v14, %v1200_v30  ;;  %2777 = vpow2.f32 %v1059_v32 }
  0xf9   :  { %4891 = vst [vmem:[#allocation37_spill] sm:$0xff] %v3761_v27  ;;  %v532_v3 = vmul.f32 %v404_v35, %v404_v35  ;;  %1479 = vadd.xlane.f32.xlu0 %v1298_v61  ;;  %v335_v2 = vsub.f32 %v3715_v58, %v3568_v21  ;;  %v1778_v42 = vadd.s32 4294967272, %v3733_v8  ;;  %v1764_v63 = vadd.s32 4294967288, %v3733_v8 }
  0xfa   :  { %v1029_v1 = vmul.f32 1.442695, %v817_v23  ;;  %v3769_v44 = vadd.f32 -1.0, %v561_v46  ;;  %v3772_v33 = vsub.s32 %v1771_v43, %v4890_v7  ;;  %v306_v56 = vsub.f32 %v3601_v28, %v3670_v16 }
  0xfb   :  { %v3774_v40 = vadd.f32 -1.0, %v532_v3  ;;  %v788_v0 = vmul.f32 -0.5, %v532_v3  ;;  %v463_v31 = vmul.f32 %v3585_v15, %v335_v2  ;;  %v3778_v38 = vsub.s32 %v1778_v42, %v4890_v7 }
  0xfc   :  { %4892 = vst [vmem:[#allocation35_spill] sm:$0xff] %v3772_v33  ;;  %2779 = vpow2.f32 %v1029_v1  ;;  %1569 = vadd.xlane.f32.xlu1 %v1343_v13  ;;  %v1378_v25 = vpop.xlane.xlu1 %1377  ;;  %v291_v50 = vsub.f32 %v3537_v4, %v3707_v37  ;;  %v3785_v15 = vsub.s32 %v1764_v63, %v4890_v7  ;;  %v1792_v48 = vadd.s32 4294967256, %v3733_v8 }
  0xfd   :  { %v971_v21 = vmul.f32 1.442695, %v788_v0  ;;  %4893 = vst [vmem:[#allocation36_spill] sm:$0xff] %v3778_v38  ;;  %1539 = vadd.xlane.f32.xlu0 %v1328_v17  ;;  %v1374_v11 = vpop.xlane.xlu0 %1373  ;;  %v591_v62 = vmul.f32 %v463_v31, %v463_v31  ;;  %v1785_v19 = vadd.s32 4294967264, %v3733_v8  ;;  %v1775_v32 = vrot.slane %v1378_v25, %v3772_v33 }
  0xfe   :  { %v2770_v59 = vpop.eup %2769  ;;  %v434_v20 = vmul.f32 %v3679_v51, %v306_v56  ;;  %v1763_v61 = vrot.slane %v1374_v11, %v3761_v27  ;;  %v419_v55 = vmul.f32 %v3718_v36, %v291_v50  ;;  %v3800_v2 = vsub.s32 %v1792_v48, %v4890_v7 }
  0xff   :  { %v2772_v26 = vpop.eup %2771  ;;  %v1186_v12 = vmul.f32 %v2770_v59, %v3736_v22  ;;  %2781 = vpow2.f32 %v971_v21  ;;  %v847_v10 = vmul.f32 -0.5, %v591_v62  ;;  %v3796_v35 = vadd.f32 -1.0, %v591_v62  ;;  %v3810_v59 = vld [vmem:[#allocation8 + $0x30] sm:$0xff] }
 0x100   :  { %v2774_v46 = vpop.eup %2773  ;;  %v1171_v43 = vmul.f32 %v2772_v26, %v3743_v6  ;;  %v1380_v23 = vpop.xlane.xlu1 %1379  ;;  %v562_v22 = vmul.f32 %v434_v20, %v434_v20  ;;  %4894 = vst [vmem:[#allocation19_spill] sm:$0xff] %v3800_v2  ;;  %v3803_v42 = vsub.s32 %v1785_v19, %v4890_v7 }
 0x101   :  { %v1314_v30 = vmul.f32 %v3752_v57, %v1186_v12  ;;  %v2776_v13 = vpop.eup %2775  ;;  %v1230_v17 = vmul.f32 %v2774_v46, %v3750_v5  ;;  %v1089_v3 = vmul.f32 1.442695, %v847_v10  ;;  %v1376_v1 = vpop.xlane.xlu0 %1375  ;;  %v1782_v31 = vrot.slane %v1380_v23, %v3778_v38 }
 0x102   :  { %4895 = vst [vmem:[#allocation21_spill] sm:$0xff] %v3803_v42  ;;  %v2778_v63 = vpop.eup %2777  ;;  %v1229_v0 = vmul.f32 %v2776_v13, %v2609_v34  ;;  %v1768_v6 = vrot.slane %v1376_v1, %v3785_v15  ;;  %v818_v25 = vmul.f32 -0.5, %v562_v22  ;;  %v547_v5 = vmul.f32 %v419_v55, %v419_v55 }
 0x103   :  { %v1358_v21 = vmul.f32 %v3648_v54, %v1230_v17  ;;  %v1216_v56 = vmul.f32 %v2778_v63, %v3746_v60  ;;  %2783 = vpow2.f32 %v1089_v3  ;;  %v1299_v11 = vmul.f32 %v3810_v59, %v1171_v43 }
 0x104   :  { %v1357_v50 = vmul.f32 %v3653_v39, %v1229_v0  ;;  %v1770_v62 = vsel %vm1769_vm0, %v1768_v6, %v1763_v61  ;;  %v1031_v34 = vmul.f32 1.442695, %v818_v25  ;;  %v1384_v48 = vpop.xlane.xlu1 %1383  ;;  %v3815_v12 = vadd.f32 -1.0, %v562_v22 }
 0x105   :  { %1599 = vadd.xlane.f32.xlu1 %v1358_v21  ;;  %v1777_v26 = vsel %vm1776_vm1, %v1775_v32, %v1770_v62  ;;  %v803_v54 = vmul.f32 -0.5, %v547_v5  ;;  %v1382_v60 = vpop.xlane.xlu0 %1381  ;;  %v1344_v39 = vmul.f32 %v3674_v14, %v1216_v56  ;;  %v336_v46 = vsub.f32 %v3715_v58, %v3575_v52 }
 0x106   :  { %v2780_v19 = vpop.eup %2779  ;;  %1597 = vadd.xlane.f32.xlu0 %v1357_v50  ;;  %2785 = vpow2.f32 %v1031_v34  ;;  %v1784_v10 = vsel %vm1783_vm2, %v1782_v31, %v1777_v26  ;;  %v1789_v55 = vrot.slane %v1382_v60, %v3803_v42  ;;  %v321_v32 = vsub.f32 %v3658_v41, %v3622_v24  ;;  %v3845_v50 = vld [vmem:[#allocation7 + $0x40] sm:$0xff] }
 0x107   :  { %v1201_v20 = vmul.f32 %v2780_v19, %v3769_v44  ;;  %v1001_v61 = vmul.f32 1.442695, %v803_v54  ;;  %v1796_v23 = vrot.slane %v1384_v48, %v3800_v2  ;;  %v1806_v22 = vadd.s32 4294967240, %v3733_v8 }
 0x108   :  { %v3827_v13 = vpop.xlane.xlu1 %1387  ;;  %v1799_v44 = vadd.s32 4294967248, %v3733_v8  ;;  %v1791_v3 = vsel %vm1790_vm3, %v1789_v55, %v1784_v10  ;;  %v464_v52 = vmul.f32 %v3594_v53, %v336_v46  ;;  %v449_v0 = vmul.f32 %v3630_v49, %v321_v32  ;;  %v3860_v32 = vld [vmem:[#allocation5 + $0x40] sm:$0xff] }
 0x109   :  { %v2782_v43 = vpop.eup %2781  ;;  %1511 = vadd.xlane.f32.xlu1 %v1314_v30  ;;  %2787 = vpow2.f32 %v1001_v61  ;;  %v1386_v1 = vpop.xlane.xlu0 %1385  ;;  %v1329_v63 = vmul.f32 %v3699_v9, %v1201_v20  ;;  %v3836_v31 = vsub.s32 %v1806_v22, %v4890_v7  ;;  %v2567_v30 = vadd.f32 -1.0, %v547_v5  ;;  %v3851_v5 = vld [vmem:[#allocation8 + $0x38] sm:$0xff] }
 0x10a   :  { %v1172_v17 = vmul.f32 %v2782_v43, %v3774_v40  ;;  %1481 = vadd.xlane.f32.xlu0 %v1299_v11  ;;  %v3839_v6 = vsub.s32 %v1799_v44, %v4890_v7  ;;  %v592_v25 = vmul.f32 %v464_v52, %v464_v52  ;;  %v292_v40 = vsub.f32 %v3537_v4, %v3738_v29 }
 0x10b   :  { %4896 = vst [vmem:[#allocation18_spill] sm:$0xff] %v3836_v31  ;;  %v577_v21 = vmul.f32 %v449_v0, %v449_v0  ;;  %v1798_v53 = vsel %vm1797_vm4, %v1796_v23, %v1791_v3  ;;  %v277_v11 = vsub.f32 %v3554_v18, %v3845_v50  ;;  %v1820_v54 = vadd.s32 4294967224, %v3733_v8 }
 0x10c   :  { %4897 = vst [vmem:[#allocation20_spill] sm:$0xff] %v3839_v6  ;;  %v1803_v56 = vrot.slane %v1386_v1, %v3839_v6  ;;  %v3849_v62 = vpop.xlane.xlu1 %1391  ;;  %v1300_v48 = vmul.f32 %v3851_v5, %v1172_v17  ;;  %v848_v19 = vmul.f32 -0.5, %v592_v25  ;;  %v420_v26 = vmul.f32 %v3756_v47, %v292_v40 }
 0x10d   :  { %v2784_v34 = vpop.eup %2783  ;;  %1571 = vadd.xlane.f32.xlu1 %v1344_v39  ;;  %v1390_v60 = vpop.xlane.xlu0 %1389  ;;  %v833_v10 = vmul.f32 -0.5, %v577_v21  ;;  %v1810_v61 = vrot.slane %v3827_v13, %v3836_v31  ;;  %v405_v43 = vmul.f32 %v3860_v32, %v277_v11  ;;  %v3864_v23 = vsub.s32 %v1820_v54, %v4890_v7 }
 0x10e   :  { %1541 = vadd.xlane.f32.xlu0 %v1329_v63  ;;  %v1231_v20 = vmul.f32 %v2784_v34, %v3796_v35  ;;  %v1805_v55 = vsel %vm1804_vm5, %v1803_v56, %v1798_v53  ;;  %v1091_v39 = vmul.f32 1.442695, %v848_v19  ;;  %v548_v46 = vmul.f32 %v420_v26, %v420_v26 }
 0x10f   :  { %4898 = vst [vmem:[#allocation38_spill] sm:$0xff] %v3864_v23  ;;  %v1061_v17 = vmul.f32 1.442695, %v833_v10  ;;  %v1813_v35 = vadd.s32 4294967232, %v3733_v8  ;;  %v2612_v52 = vadd.f32 -1.0, %v592_v25  ;;  %v2597_v0 = vadd.f32 -1.0, %v577_v21 }
 0x110   :  { %v2786_v22 = vpop.eup %2785  ;;  %v1359_v44 = vmul.f32 %v3662_v45, %v1231_v20  ;;  %v3868_v3 = vpop.xlane.xlu1 %1395  ;;  %2789 = vpow2.f32 %v1091_v39  ;;  %v804_v1 = vmul.f32 -0.5, %v548_v46  ;;  %v533_v40 = vmul.f32 %v405_v43, %v405_v43 }
 0x111   :  { %1483 = vadd.xlane.f32.xlu1 %v1300_v48  ;;  %v1202_v13 = vmul.f32 %v2786_v22, %v3815_v12  ;;  %v3871_v63 = vpop.xlane.xlu0 %1393  ;;  %2791 = vpow2.f32 %v1061_v17  ;;  %v1824_v45 = vrot.slane %v3849_v62, %v3864_v23  ;;  %v1812_v34 = vsel %vm1811_vm6, %v1810_v61, %v1805_v55 }
 0x112   :  { %1601 = vadd.xlane.f32.xlu0 %v1359_v44  ;;  %v1003_v11 = vmul.f32 1.442695, %v804_v1  ;;  %v3878_v12 = vsub.s32 %v1813_v35, %v4890_v7  ;;  %v789_v48 = vmul.f32 -0.5, %v533_v40  ;;  %v322_v21 = vsub.f32 %v3658_v41, %v3670_v16 }
 0x113   :  { %v2788_v53 = vpop.eup %2787  ;;  %v1330_v56 = vmul.f32 %v3752_v57, %v1202_v13  ;;  %v307_v26 = vsub.f32 %v3601_v28, %v3707_v37  ;;  %v1834_v54 = vadd.s32 4294967208, %v3733_v8  ;;  %v2568_v22 = vadd.f32 -1.0, %v548_v46 }
 0x114   :  { %4899 = vst [vmem:[#allocation22_spill] sm:$0xff] %v3878_v12  ;;  %v1187_v25 = vmul.f32 %v2788_v53, %v2567_v30  ;;  %v3882_v19 = vpop.xlane.xlu1 %1399  ;;  %2793 = vpow2.f32 %v1003_v11  ;;  %v1817_v62 = vrot.slane %v1390_v60, %v3878_v12  ;;  %v973_v10 = vmul.f32 1.442695, %v789_v48 }
 0x115   :  { %1543 = vadd.xlane.f32.xlu1 %v1330_v56  ;;  %v3888_v20 = vpop.xlane.xlu0 %1397  ;;  %v450_v61 = vmul.f32 %v3679_v51, %v322_v21  ;;  %v435_v39 = vmul.f32 %v3718_v36, %v307_v26  ;;  %v3895_v43 = vsub.s32 %v1834_v54, %v4890_v7  ;;  %v1827_v60 = vadd.s32 4294967216, %v3733_v8  ;;  %v3904_v56 = vld [vmem:[#allocation7 + $0x48] sm:$0xff] }
 0x116   :  { %v1315_v30 = vmul.f32 %v3810_v59, %v1187_v25  ;;  %v1819_v55 = vsel %vm1818_vm7, %v1817_v62, %v1812_v34  ;;  %v2553_v44 = vadd.f32 -1.0, %v533_v40  ;;  %2795 = vpow2.f32 %v973_v10  ;;  %v3917_v26 = vld [vmem:[#allocation5 + $0x48] sm:$0xff] }
 0x117   :  { %4900 = vst [vmem:[#allocation23_spill] sm:$0xff] %v3895_v43  ;;  %v578_v17 = vmul.f32 %v450_v61, %v450_v61  ;;  %v563_v13 = vmul.f32 %v435_v39, %v435_v39  ;;  %v1826_v1 = vsel %vm1825_vm8, %v1824_v45, %v1819_v55  ;;  %v3902_v53 = vsub.s32 %v1827_v60, %v4890_v7 }
 0x118   :  { %1513 = vadd.xlane.f32.xlu0 %v1315_v30  ;;  %v3898_v35 = vpop.xlane.xlu1 %1403  ;;  %v278_v11 = vsub.f32 %v3554_v18, %v3904_v56  ;;  %v337_v46 = vsub.f32 %v3715_v58, %v3622_v24  ;;  %v1848_v40 = vadd.s32 4294967192, %v3733_v8  ;;  %v1838_v45 = vrot.slane %v3868_v3, %v3895_v43 }
 0x119   :  { %4901 = vst [vmem:[#allocation39_spill] sm:$0xff] %v3902_v53  ;;  %v3908_v34 = vpop.xlane.xlu0 %1401  ;;  %v834_v25 = vmul.f32 -0.5, %v578_v17  ;;  %v819_v21 = vmul.f32 -0.5, %v563_v13  ;;  %v1831_v62 = vrot.slane %v3871_v63, %v3902_v53  ;;  %v2598_v23 = vadd.f32 -1.0, %v578_v17 }
 0x11a   :  { %v2790_v48 = vpop.eup %2789  ;;  %v406_v54 = vmul.f32 %v3917_v26, %v278_v11  ;;  %v465_v55 = vmul.f32 %v3630_v49, %v337_v46  ;;  %v3922_v24 = vsub.s32 %v1848_v40, %v4890_v7  ;;  %v2583_v11 = vadd.f32 -1.0, %v563_v13 }
 0x11b   :  { %v2792_v30 = vpop.eup %2791  ;;  %v1232_v10 = vmul.f32 %v2790_v48, %v2612_v52  ;;  %v1063_v61 = vmul.f32 1.442695, %v834_v25  ;;  %v1033_v3 = vmul.f32 1.442695, %v819_v21  ;;  %v1833_v49 = vsel %vm1832_vm9, %v1831_v62, %v1826_v1 }
 0x11c   :  { %4902 = vst [vmem:[#allocation27_spill] sm:$0xff] %v3922_v24  ;;  %v3924_v39 = vpop.xlane.xlu1 %1407  ;;  %v1217_v60 = vmul.f32 %v2792_v30, %v2597_v0  ;;  %v534_v43 = vmul.f32 %v406_v54, %v406_v54  ;;  %v593_v53 = vmul.f32 %v465_v55, %v465_v55  ;;  %v1852_v48 = vrot.slane %v3882_v19, %v3922_v24 }
 0x11d   :  { %v3926_v12 = vpop.xlane.xlu0 %1405  ;;  %v1360_v63 = vmul.f32 %v3674_v14, %v1232_v10  ;;  %2797 = vpow2.f32 %v1063_v61  ;;  %v1841_v54 = vadd.s32 4294967200, %v3733_v8  ;;  %v308_v62 = vsub.f32 %v3601_v28, %v3738_v29 }
 0x11e   :  { %v2794_v52 = vpop.eup %2793  ;;  %v1345_v25 = vmul.f32 %v3699_v9, %v1217_v60  ;;  %2799 = vpow2.f32 %v1033_v3  ;;  %v790_v46 = vmul.f32 -0.5, %v534_v43  ;;  %v3931_v0 = vadd.f32 -1.0, %v534_v43 }
 0x11f   :  { %1603 = vadd.xlane.f32.xlu1 %v1360_v63  ;;  %v1188_v40 = vmul.f32 %v2794_v52, %v2568_v22  ;;  %v849_v17 = vmul.f32 -0.5, %v593_v53  ;;  %v3937_v13 = vadd.f32 -1.0, %v593_v53  ;;  %v293_v19 = vsub.f32 %v3537_v4, %v3845_v50  ;;  %v3955_v63 = vld [vmem:[#allocation8 + $0x40] sm:$0xff] }
 0x120   :  { %v3935_v21 = vpop.xlane.xlu1 %1411  ;;  %1573 = vadd.xlane.f32.xlu0 %v1345_v25  ;;  %v975_v14 = vmul.f32 1.442695, %v790_v46  ;;  %v2796_v1 = vpop.eup %2795  ;;  %v3948_v53 = vsub.s32 %v1841_v54, %v4890_v7  ;;  %v1862_v61 = vadd.s32 4294967176, %v3733_v8  ;;  %v436_v55 = vmul.f32 %v3756_v47, %v308_v62 }
 0x121   :  { %v3940_v30 = vpop.xlane.xlu0 %1409  ;;  %v1316_v22 = vmul.f32 %v3851_v5, %v1188_v40  ;;  %v1093_v43 = vmul.f32 1.442695, %v849_v17  ;;  %v1173_v10 = vmul.f32 %v2796_v1, %v2553_v44  ;;  %v421_v60 = vmul.f32 %v3860_v32, %v293_v19 }
 0x122   :  { %2801 = vpow2.f32 %v975_v14  ;;  %4903 = vst [vmem:[#allocation28_spill] sm:$0xff] %v3948_v53  ;;  %v1845_v44 = vrot.slane %v3888_v20, %v3948_v53  ;;  %v3961_v25 = vsub.s32 %v1862_v61, %v4890_v7  ;;  %v1855_v46 = vadd.s32 4294967184, %v3733_v8 }
 0x123   :  { %1515 = vadd.xlane.f32.xlu1 %v1316_v22  ;;  %2803 = vpow2.f32 %v1093_v43  ;;  %v1301_v52 = vmul.f32 %v3955_v63, %v1173_v10  ;;  %v1840_v17 = vsel %vm1839_vm10, %v1838_v45, %v1833_v49  ;;  %v564_v14 = vmul.f32 %v436_v55, %v436_v55 }
 0x124   :  { %v3953_v3 = vpop.xlane.xlu1 %1415  ;;  %4904 = vst [vmem:[#allocation29_spill] sm:$0xff] %v3961_v25  ;;  %v549_v54 = vmul.f32 %v421_v60, %v421_v60  ;;  %v1847_v1 = vsel %vm1846_vm11, %v1845_v44, %v1840_v17  ;;  %v3969_v22 = vsub.s32 %v1855_v46, %v4890_v7  ;;  %v338_v20 = vsub.f32 %v3715_v58, %v3670_v16 }
 0x125   :  { %v3964_v40 = vpop.xlane.xlu0 %1413  ;;  %1485 = vadd.xlane.f32.xlu0 %v1301_v52  ;;  %v820_v62 = vmul.f32 -0.5, %v564_v14  ;;  %v1866_v19 = vrot.slane %v3898_v35, %v3961_v25  ;;  %v1854_v61 = vsel %vm1853_vm12, %v1852_v48, %v1847_v1  ;;  %v323_v35 = vsub.f32 %v3658_v41, %v3707_v37 }
 0x126   :  { %4905 = vst [vmem:[#allocation30_spill] sm:$0xff] %v3969_v22  ;;  %v805_v8 = vmul.f32 -0.5, %v549_v54  ;;  %v1859_v7 = vrot.slane %v3908_v34, %v3969_v22  ;;  %v466_v55 = vmul.f32 %v3679_v51, %v338_v20  ;;  %v3986_v17 = vadd.f32 -1.0, %v564_v14 }
 0x127   :  { %v2798_v43 = vpop.eup %2797  ;;  %v1035_v52 = vmul.f32 1.442695, %v820_v62  ;;  %v451_v51 = vmul.f32 %v3718_v36, %v323_v35  ;;  %v1876_v34 = vrot.slane %v3924_v39, %v3785_v15  ;;  %v1872_v14 = vrot.slane %v3926_v12, %v3761_v27 }
 0x128   :  { %v3975_v45 = vpop.xlane.xlu1 %1419  ;;  %v2800_v49 = vpop.eup %2799  ;;  %v1218_v10 = vmul.f32 %v2798_v43, %v2598_v23  ;;  %v1005_v44 = vmul.f32 1.442695, %v805_v8  ;;  %v1861_v23 = vsel %vm1860_vm13, %v1859_v7, %v1854_v61  ;;  %v594_v48 = vmul.f32 %v466_v55, %v466_v55  ;;  %v4002_v7 = vld [vmem:[#allocation7 + $0x50] sm:$0xff] }
 0x129   :  { %v3981_v60 = vpop.xlane.xlu0 %1417  ;;  %v1203_v16 = vmul.f32 %v2800_v49, %v2583_v11  ;;  %2805 = vpow2.f32 %v1035_v52  ;;  %v2569_v43 = vadd.f32 -1.0, %v549_v54  ;;  %v579_v61 = vmul.f32 %v451_v51, %v451_v51 }
 0x12a   :  { %v1346_v46 = vmul.f32 %v3752_v57, %v1218_v10  ;;  %2807 = vpow2.f32 %v1005_v44  ;;  %v850_v62 = vmul.f32 -0.5, %v594_v48  ;;  %v294_v39 = vsub.f32 %v3537_v4, %v3904_v56  ;;  %v4012_v44 = vld [vmem:[#allocation8 + $0x48] sm:$0xff] }
 0x12b   :  { %v1331_v1 = vmul.f32 %v3810_v59, %v1203_v16  ;;  %v279_v54 = vsub.f32 %v3554_v18, %v4002_v7  ;;  %v4008_v16 = vsel %vm1867_vm14, %v1866_v19, %v1861_v23  ;;  %v4010_v12 = vadd.f32 -1.0, %v594_v48 }
 0x12c   :  { %v3993_v11 = vpop.xlane.xlu1 %1423  ;;  %v2802_v20 = vpop.eup %2801  ;;  %1575 = vadd.xlane.f32.xlu1 %v1346_v46  ;;  %4906 = vst [vmem:[#allocation31_spill] sm:$0xff] %v4008_v16  ;;  %v1095_v52 = vmul.f32 1.442695, %v850_v62  ;;  %v835_v35 = vmul.f32 -0.5, %v579_v61  ;;  %v1877_v46 = vsel %vm1769_vm0, %v1876_v34, %v1872_v14  ;;  %v1881_v23 = vrot.slane %v3940_v30, %v3772_v33 }
 0x12d   :  { %v3997_v8 = vpop.xlane.xlu0 %1421  ;;  %v2804_v49 = vpop.eup %2803  ;;  %1545 = vadd.xlane.f32.xlu0 %v1331_v1  ;;  %v1174_v10 = vmul.f32 %v2802_v20, %v3931_v0  ;;  %v422_v1 = vmul.f32 %v3917_v26, %v294_v39  ;;  %v324_v34 = vsub.f32 %v3658_v41, %v3738_v29  ;;  %v309_v14 = vsub.f32 %v3601_v28, %v3845_v50 }
 0x12e   :  { %v1233_v55 = vmul.f32 %v2804_v49, %v3937_v13  ;;  %2809 = vpow2.f32 %v1095_v52  ;;  %v4020_v13 = vld [vmem:[#allocation5 + $0x50] sm:$0xff]  ;;  %v1065_v48 = vmul.f32 1.442695, %v835_v35  ;;  %v1886_v39 = vrot.slane %v3935_v21, %v3778_v38 }
 0x12f   :  { %v1302_v0 = vmul.f32 %v4012_v44, %v1174_v10  ;;  %v407_v19 = vmul.f32 %v4020_v13, %v279_v54  ;;  %v550_v62 = vmul.f32 %v422_v1, %v422_v1  ;;  %v1882_v54 = vsel %vm1776_vm1, %v1881_v23, %v1877_v46 }
 0x130   :  { %v4017_v51 = vpop.xlane.xlu1 %1427  ;;  %v1361_v20 = vmul.f32 %v3699_v9, %v1233_v55  ;;  %v2599_v9 = vadd.f32 -1.0, %v579_v61  ;;  %2811 = vpow2.f32 %v1065_v48  ;;  %v452_v55 = vmul.f32 %v3756_v47, %v324_v34  ;;  %v4046_v48 = vld [vmem:[#allocation7 + $0x58] sm:$0xff] }
 0x131   :  { %1487 = vadd.xlane.f32.xlu1 %v1302_v0  ;;  %v535_v10 = vmul.f32 %v407_v19, %v407_v19  ;;  %v806_v30 = vmul.f32 -0.5, %v550_v62  ;;  %v1896_v52 = vrot.slane %v3953_v3, %v3800_v2  ;;  %v4039_v35 = vadd.f32 -1.0, %v550_v62 }
 0x132   :  { %v4029_v49 = vpop.xlane.xlu0 %1425  ;;  %1605 = vadd.xlane.f32.xlu0 %v1361_v20  ;;  %v437_v61 = vmul.f32 %v3860_v32, %v309_v14  ;;  %v1891_v20 = vrot.slane %v3964_v40, %v3803_v42  ;;  %v580_v23 = vmul.f32 %v452_v55, %v452_v55  ;;  %v280_v3 = vsub.f32 %v3554_v18, %v4046_v48 }
 0x133   :  { %v791_v1 = vmul.f32 -0.5, %v535_v10  ;;  %v2806_v21 = vpop.eup %2805  ;;  %v1007_v19 = vmul.f32 1.442695, %v806_v30  ;;  %v4044_v46 = vadd.f32 -1.0, %v535_v10  ;;  %v339_v40 = vsub.f32 %v3715_v58, %v3707_v37 }
 0x134   :  { %v4037_v0 = vpop.xlane.xlu1 %1431  ;;  %v2808_v62 = vpop.eup %2807  ;;  %v1204_v16 = vmul.f32 %v2806_v21, %v3986_v17  ;;  %v565_v14 = vmul.f32 %v437_v61, %v437_v61  ;;  %v836_v10 = vmul.f32 -0.5, %v580_v23  ;;  %v1887_v30 = vsel %vm1783_vm2, %v1886_v39, %v1882_v54  ;;  %v4061_v61 = vld [vmem:[#allocation5 + $0x58] sm:$0xff] }
 0x135   :  { %v977_v2 = vmul.f32 1.442695, %v791_v1  ;;  %v1189_v42 = vmul.f32 %v2808_v62, %v2569_v43  ;;  %2813 = vpow2.f32 %v1007_v19  ;;  %v1892_v27 = vsel %vm1790_vm3, %v1891_v20, %v1887_v30 }
 0x136   :  { %v4050_v34 = vpop.xlane.xlu0 %1429  ;;  %v1332_v33 = vmul.f32 %v3851_v5, %v1204_v16  ;;  %v821_v38 = vmul.f32 -0.5, %v565_v14  ;;  %v1067_v1 = vmul.f32 1.442695, %v836_v10  ;;  %v408_v37 = vmul.f32 %v4061_v61, %v280_v3 }
 0x137   :  { %2815 = vpow2.f32 %v977_v2  ;;  %v1317_v17 = vmul.f32 %v3955_v63, %v1189_v42  ;;  %v467_v43 = vmul.f32 %v3718_v36, %v339_v40  ;;  %v2600_v54 = vadd.f32 -1.0, %v580_v23 }
 0x138   :  { %v4056_v55 = vpop.xlane.xlu1 %1435  ;;  %v2810_v39 = vpop.eup %2809  ;;  %1547 = vadd.xlane.f32.xlu1 %v1332_v33  ;;  %v4067_v19 = vadd.f32 -1.0, %v565_v14  ;;  %v1037_v2 = vmul.f32 1.442695, %v821_v38  ;;  %v1901_v16 = vrot.slane %v3981_v60, %v3839_v6  ;;  %2817 = vpow2.f32 %v1067_v1 }
 0x139   :  { %1517 = vadd.xlane.f32.xlu0 %v1317_v17  ;;  %v1234_v42 = vmul.f32 %v2810_v39, %v4010_v12  ;;  %v536_v20 = vmul.f32 %v408_v37, %v408_v37  ;;  %v595_v62 = vmul.f32 %v467_v43, %v467_v43  ;;  %v1897_v36 = vsel %vm1797_vm4, %v1896_v52, %v1892_v27 }
 0x13a   :  { %v4065_v21 = vpop.xlane.xlu0 %1433  ;;  %2819 = vpow2.f32 %v1037_v2  ;;  %v310_v3 = vsub.f32 %v3601_v28, %v3904_v56  ;;  %v295_v33 = vsub.f32 %v3537_v4, %v4002_v7  ;;  %v2812_v38 = vpop.eup %2811  ;;  %v1906_v12 = vrot.slane %v3975_v45, %v3836_v31 }
 0x13b   :  { %v1362_v60 = vmul.f32 %v3752_v57, %v1234_v42  ;;  %v792_v14 = vmul.f32 -0.5, %v536_v20  ;;  %v1902_v40 = vsel %vm1804_vm5, %v1901_v16, %v1897_v36  ;;  %v1219_v10 = vmul.f32 %v2812_v38, %v2599_v9  ;;  %v4907_v57 = vld [vmem:[#allocation22_spill] sm:$0xff] }
 0x13c   :  { %v851_v30 = vmul.f32 -0.5, %v595_v62  ;;  %v438_v27 = vmul.f32 %v3917_v26, %v310_v3  ;;  %v423_v52 = vmul.f32 %v4020_v13, %v295_v33  ;;  %v4087_v1 = vadd.f32 -1.0, %v536_v20  ;;  %v4908_v3 = vld [vmem:[#allocation38_spill] sm:$0xff] }
 0x13d   :  { %v4077_v23 = vpop.xlane.xlu1 %1439  ;;  %1607 = vadd.xlane.f32.xlu1 %v1362_v60  ;;  %v979_v37 = vmul.f32 1.442695, %v792_v14  ;;  %v4089_v43 = vadd.f32 -1.0, %v595_v62  ;;  %v1911_v39 = vrot.slane %v3997_v8, %v4907_v57  ;;  %v1347_v45 = vmul.f32 %v3810_v59, %v1219_v10 }
 0x13e   :  { %v1097_v2 = vmul.f32 1.442695, %v851_v30  ;;  %v566_v9 = vmul.f32 %v438_v27, %v438_v27  ;;  %v551_v16 = vmul.f32 %v423_v52, %v423_v52  ;;  %v1916_v33 = vrot.slane %v3993_v11, %v4908_v3 }
 0x13f   :  { %v4085_v17 = vpop.xlane.xlu0 %1437  ;;  %v2814_v36 = vpop.eup %2813  ;;  %2821 = vpow2.f32 %v979_v37  ;;  %v340_v20 = vsub.f32 %v3715_v58, %v3738_v29  ;;  %v325_v62 = vsub.f32 %v3658_v41, %v3845_v50  ;;  %1577 = vadd.xlane.f32.xlu0 %v1347_v45  ;;  %v1907_v14 = vsel %vm1811_vm6, %v1906_v12, %v1902_v40 }
 0x140   :  { %v1190_v8 = vmul.f32 %v2814_v36, %v4039_v35  ;;  %2823 = vpow2.f32 %v1097_v2  ;;  %v822_v60 = vmul.f32 -0.5, %v566_v9  ;;  %v807_v30 = vmul.f32 -0.5, %v551_v16  ;;  %v4113_v36 = vld [vmem:[#allocation8 + $0x50] sm:$0xff] }
 0x141   :  { %v4094_v42 = vpop.xlane.xlu1 %1443  ;;  %v2816_v38 = vpop.eup %2815  ;;  %v1912_v27 = vsel %vm1818_vm7, %v1911_v39, %v1907_v14  ;;  %v468_v11 = vmul.f32 %v3756_v47, %v340_v20  ;;  %v4110_v37 = vadd.f32 -1.0, %v566_v9  ;;  %v453_v35 = vmul.f32 %v3860_v32, %v325_v62  ;;  %v4910_v9 = vld [vmem:[#allocation39_spill] sm:$0xff] }
 0x142   :  { %v1175_v10 = vmul.f32 %v2816_v38, %v4044_v46  ;;  %v1318_v29 = vmul.f32 %v4012_v44, %v1190_v8  ;;  %v1039_v45 = vmul.f32 1.442695, %v822_v60  ;;  %v2818_v2 = vpop.eup %2817  ;;  %v1009_v46 = vmul.f32 1.442695, %v807_v30  ;;  %v4909_v38 = vld [vmem:[#allocation23_spill] sm:$0xff] }
 0x143   :  { %v4107_v52 = vpop.xlane.xlu0 %1441  ;;  %v596_v40 = vmul.f32 %v468_v11, %v468_v11  ;;  %v1926_v39 = vrot.slane %v4017_v51, %v4909_v38  ;;  %v1220_v20 = vmul.f32 %v2818_v2, %v2600_v54  ;;  %v581_v8 = vmul.f32 %v453_v35, %v453_v35  ;;  %v4129_v35 = vld [vmem:[#allocation7 + $0x60] sm:$0xff] }
 0x144   :  { %v1303_v12 = vmul.f32 %v4113_v36, %v1175_v10  ;;  %v2820_v47 = vpop.eup %2819  ;;  %1519 = vadd.xlane.f32.xlu1 %v1318_v29  ;;  %2825 = vpow2.f32 %v1039_v45  ;;  %v1921_v60 = vrot.slane %v4029_v49, %v4910_v9  ;;  %v1917_v30 = vsel %vm1825_vm8, %v1916_v33, %v1912_v27 }
 0x145   :  { %v1205_v62 = vmul.f32 %v2820_v47, %v4067_v19  ;;  %2827 = vpow2.f32 %v1009_v46  ;;  %v852_v10 = vmul.f32 -0.5, %v596_v40  ;;  %v1348_v11 = vmul.f32 %v3851_v5, %v1220_v20 }
 0x146   :  { %1489 = vadd.xlane.f32.xlu0 %v1303_v12  ;;  %v2571_v51 = vadd.f32 -1.0, %v551_v16  ;;  %v837_v38 = vmul.f32 -0.5, %v581_v8  ;;  %v1922_v54 = vsel %vm1832_vm9, %v1921_v60, %v1917_v30  ;;  %v296_v49 = vsub.f32 %v3537_v4, %v4046_v48  ;;  %v4143_v60 = vld [vmem:[#allocation5 + $0x60] sm:$0xff] }
 0x147   :  { %v4120_v14 = vpop.xlane.xlu1 %1447  ;;  %v1333_v29 = vmul.f32 %v3955_v63, %v1205_v62  ;;  %v1099_v45 = vmul.f32 1.442695, %v852_v10  ;;  %v281_v19 = vsub.f32 %v3554_v18, %v4129_v35  ;;  %v1936_v16 = vrot.slane %v4037_v0, %v3922_v24 }
 0x148   :  { %1579 = vadd.xlane.f32.xlu1 %v1348_v11  ;;  %v1069_v33 = vmul.f32 1.442695, %v837_v38  ;;  %v1927_v27 = vsel %vm1839_vm10, %v1926_v39, %v1922_v54  ;;  %v1931_v12 = vrot.slane %v4050_v34, %v3948_v53  ;;  %v424_v20 = vmul.f32 %v4061_v61, %v296_v49  ;;  %v4156_v49 = vld [vmem:[#allocation8 + $0x58] sm:$0xff] }
 0x149   :  { %v2822_v47 = vpop.eup %2821  ;;  %2829 = vpow2.f32 %v1099_v45  ;;  %v409_v62 = vmul.f32 %v4143_v60, %v281_v19  ;;  %v326_v38 = vsub.f32 %v3658_v41, %v3904_v56  ;;  %v311_v10 = vsub.f32 %v3601_v28, %v4002_v7 }
 0x14a   :  { %v4133_v2 = vpop.xlane.xlu0 %1445  ;;  %1549 = vadd.xlane.f32.xlu0 %v1333_v29  ;;  %v2824_v0 = vpop.eup %2823  ;;  %v1176_v39 = vmul.f32 %v2822_v47, %v4087_v1  ;;  %2831 = vpow2.f32 %v1069_v33  ;;  %v1932_v34 = vsel %vm1846_vm11, %v1931_v12, %v1927_v27  ;;  %v552_v11 = vmul.f32 %v424_v20, %v424_v20 }
 0x14b   :  { %v4140_v46 = vpop.xlane.xlu1 %1451  ;;  %v1235_v30 = vmul.f32 %v2824_v0, %v4089_v43  ;;  %v537_v54 = vmul.f32 %v409_v62, %v409_v62  ;;  %v454_v29 = vmul.f32 %v3917_v26, %v326_v38  ;;  %v2616_v53 = vadd.f32 -1.0, %v596_v40 }
 0x14c   :  { %v1304_v19 = vmul.f32 %v4156_v49, %v1176_v39  ;;  %v2601_v1 = vadd.f32 -1.0, %v581_v8  ;;  %v439_v33 = vmul.f32 %v4020_v13, %v311_v10  ;;  %v808_v12 = vmul.f32 -0.5, %v552_v11 }
 0x14d   :  { %v1363_v27 = vmul.f32 %v3810_v59, %v1235_v30  ;;  %v1946_v43 = vrot.slane %v4056_v55, %v3961_v25  ;;  %v1937_v47 = vsel %vm1853_vm12, %v1936_v16, %v1932_v34  ;;  %v4166_v38 = vadd.f32 -1.0, %v552_v11  ;;  %v4171_v55 = vld [vmem:[#allocation7 + $0x68] sm:$0xff] }
 0x14e   :  { %v4154_v45 = vpop.xlane.xlu0 %1449  ;;  %v2826_v62 = vpop.eup %2825  ;;  %1491 = vadd.xlane.f32.xlu1 %v1304_v19  ;;  %v793_v0 = vmul.f32 -0.5, %v537_v54  ;;  %v582_v39 = vmul.f32 %v454_v29, %v454_v29  ;;  %v567_v40 = vmul.f32 %v439_v33, %v439_v33  ;;  %v1011_v59 = vmul.f32 1.442695, %v808_v12 }
 0x14f   :  { %v4164_v20 = vpop.xlane.xlu1 %1455  ;;  %v2828_v8 = vpop.eup %2827  ;;  %1609 = vadd.xlane.f32.xlu0 %v1363_v27  ;;  %v1206_v10 = vmul.f32 %v2826_v62, %v4110_v37  ;;  %v1941_v30 = vrot.slane %v4065_v21, %v3969_v22  ;;  %v282_v16 = vsub.f32 %v3554_v18, %v4171_v55  ;;  %v4177_v19 = vadd.f32 -1.0, %v537_v54  ;;  %v4187_v54 = vld [vmem:[#allocation5 + $0x68] sm:$0xff] }
 0x150   :  { %v1191_v11 = vmul.f32 %v2828_v8, %v2571_v51  ;;  %v981_v29 = vmul.f32 1.442695, %v793_v0  ;;  %v838_v33 = vmul.f32 -0.5, %v582_v39  ;;  %2833 = vpow2.f32 %v1011_v59 }
 0x151   :  { %v1334_v27 = vmul.f32 %v4012_v44, %v1206_v10  ;;  %v4180_v37 = vadd.f32 -1.0, %v582_v39  ;;  %v823_v12 = vmul.f32 -0.5, %v567_v40  ;;  %v1942_v22 = vsel %vm1860_vm13, %v1941_v30, %v1937_v47 }
 0x152   :  { %v4175_v34 = vpop.xlane.xlu0 %1453  ;;  %v1319_v21 = vmul.f32 %v4113_v36, %v1191_v11  ;;  %2835 = vpow2.f32 %v981_v29  ;;  %v1071_v62 = vmul.f32 1.442695, %v838_v33  ;;  %v4185_v51 = vsel %vm1867_vm14, %v1946_v43, %v1942_v22 }
 0x153   :  { %v2830_v25 = vpop.eup %2829  ;;  %1551 = vadd.xlane.f32.xlu1 %v1334_v27  ;;  %v1041_v24 = vmul.f32 1.442695, %v823_v12  ;;  %4911 = vst [vmem:[#allocation32_spill] sm:$0xff] %v4185_v51  ;;  %v410_v0 = vmul.f32 %v4187_v54, %v282_v16  ;;  %v341_v39 = vsub.f32 %v3715_v58, %v3845_v50  ;;  %v2587_v47 = vadd.f32 -1.0, %v567_v40  ;;  %v4912_v50 = vld [vmem:[#allocation37_spill] sm:$0xff]  ;;  %v4913_v12 = vld [vmem:[#allocation36_spill] sm:$0xff] }
 0x154   :  { %v2832_v10 = vpop.eup %2831  ;;  %1521 = vadd.xlane.f32.xlu0 %v1319_v21  ;;  %v1236_v59 = vmul.f32 %v2830_v25, %v2616_v53  ;;  %2837 = vpow2.f32 %v1071_v62  ;;  %v1955_v30 = vrot.slane %v4077_v23, %v3785_v15  ;;  %v1951_v33 = vrot.slane %v4085_v17, %v4912_v50 }
 0x155   :  { %v1221_v22 = vmul.f32 %v2832_v10, %v2601_v1  ;;  %2839 = vpow2.f32 %v1041_v24  ;;  %v538_v43 = vmul.f32 %v410_v0, %v410_v0  ;;  %v469_v16 = vmul.f32 %v3860_v32, %v341_v39 }
 0x156   :  { %v4192_v8 = vpop.xlane.xlu1 %1459  ;;  %v1364_v29 = vmul.f32 %v3851_v5, %v1236_v59  ;;  %v312_v53 = vsub.f32 %v3601_v28, %v4046_v48  ;;  %v297_v25 = vsub.f32 %v3537_v4, %v4129_v35  ;;  %v1956_v5 = vsel %vm1769_vm0, %v1955_v30, %v1951_v33  ;;  %v4914_v59 = vld [vmem:[#allocation35_spill] sm:$0xff] }
 0x157   :  { %v4196_v11 = vpop.xlane.xlu0 %1457  ;;  %v1349_v23 = vmul.f32 %v3955_v63, %v1221_v22  ;;  %v4207_v40 = vadd.f32 -1.0, %v538_v43  ;;  %v794_v1 = vmul.f32 -0.5, %v538_v43  ;;  %v597_v24 = vmul.f32 %v469_v16, %v469_v16 }
 0x158   :  { %1611 = vadd.xlane.f32.xlu1 %v1364_v29  ;;  %v440_v32 = vmul.f32 %v4061_v61, %v312_v53  ;;  %v425_v17 = vmul.f32 %v4143_v60, %v297_v25  ;;  %v1965_v21 = vrot.slane %v4094_v42, %v4913_v12  ;;  %v1960_v22 = vrot.slane %v4107_v52, %v4914_v59  ;;  %v4915_v25 = vld [vmem:[#allocation19_spill] sm:$0xff]  ;;  %v4243_v12 = vld [vmem:[#allocation8 + $0x60] sm:$0xff] }
 0x159   :  { %1581 = vadd.xlane.f32.xlu0 %v1349_v23  ;;  %v983_v0 = vmul.f32 1.442695, %v794_v1  ;;  %v4218_v39 = vadd.f32 -1.0, %v597_v24  ;;  %v853_v10 = vmul.f32 -0.5, %v597_v24  ;;  %v342_v30 = vsub.f32 %v3715_v58, %v3904_v56 }
 0x15a   :  { %v4209_v27 = vpop.xlane.xlu1 %1463  ;;  %v568_v43 = vmul.f32 %v440_v32, %v440_v32  ;;  %v553_v16 = vmul.f32 %v425_v17, %v425_v17  ;;  %v327_v29 = vsub.f32 %v3658_v41, %v4002_v7  ;;  %v2834_v33 = vpop.eup %2833  ;;  %v1961_v53 = vsel %vm1776_vm1, %v1960_v22, %v1956_v5 }
 0x15b   :  { %v4216_v62 = vpop.xlane.xlu0 %1461  ;;  %2841 = vpow2.f32 %v983_v0  ;;  %v1101_v42 = vmul.f32 1.442695, %v853_v10  ;;  %v1975_v23 = vrot.slane %v4120_v14, %v4915_v25  ;;  %v1192_v24 = vmul.f32 %v2834_v33, %v4166_v38 }
 0x15c   :  { %v2836_v1 = vpop.eup %2835  ;;  %v4230_v52 = vadd.f32 -1.0, %v568_v43  ;;  %v824_v32 = vmul.f32 -0.5, %v568_v43  ;;  %v4232_v17 = vadd.f32 -1.0, %v553_v16  ;;  %v809_v51 = vmul.f32 -0.5, %v553_v16 }
 0x15d   :  { %v1177_v56 = vmul.f32 %v2836_v1, %v4177_v19  ;;  %2843 = vpow2.f32 %v1101_v42  ;;  %v470_v0 = vmul.f32 %v3917_v26, %v342_v30  ;;  %v1320_v22 = vmul.f32 %v4156_v49, %v1192_v24  ;;  %v4916_v24 = vld [vmem:[#allocation21_spill] sm:$0xff] }
 0x15e   :  { %v4236_v10 = vpop.xlane.xlu1 %1467  ;;  %v2838_v5 = vpop.eup %2837  ;;  %v1043_v14 = vmul.f32 1.442695, %v824_v32  ;;  %v455_v25 = vmul.f32 %v4020_v13, %v327_v29  ;;  %v1966_v38 = vsel %vm1783_vm2, %v1965_v21, %v1961_v53  ;;  %v1013_v26 = vmul.f32 1.442695, %v809_v51 }
 0x15f   :  { %v4241_v33 = vpop.xlane.xlu0 %1465  ;;  %v2840_v43 = vpop.eup %2839  ;;  %v1305_v19 = vmul.f32 %v4243_v12, %v1177_v56  ;;  %v1222_v16 = vmul.f32 %v2838_v5, %v4180_v37  ;;  %v598_v30 = vmul.f32 %v470_v0, %v470_v0  ;;  %1523 = vadd.xlane.f32.xlu1 %v1320_v22  ;;  %v1970_v29 = vrot.slane %v4133_v2, %v4916_v24  ;;  %v4258_v0 = vld [vmem:[#allocation7 + $0x70] sm:$0xff] }
 0x160   :  { %v1207_v42 = vmul.f32 %v2840_v43, %v2587_v47  ;;  %2845 = vpow2.f32 %v1043_v14  ;;  %v583_v1 = vmul.f32 %v455_v25, %v455_v25  ;;  %v298_v25 = vsub.f32 %v3537_v4, %v4171_v55 }
 0x161   :  { %1493 = vadd.xlane.f32.xlu0 %v1305_v19  ;;  %v1350_v21 = vmul.f32 %v4012_v44, %v1222_v16  ;;  %2847 = vpow2.f32 %v1013_v26  ;;  %v4250_v53 = vadd.f32 -1.0, %v598_v30  ;;  %v854_v32 = vmul.f32 -0.5, %v598_v30 }
 0x162   :  { %v1335_v56 = vmul.f32 %v4113_v36, %v1207_v42  ;;  %v4253_v59 = vadd.f32 -1.0, %v583_v1  ;;  %v839_v37 = vmul.f32 -0.5, %v583_v1  ;;  %v1971_v51 = vsel %vm1790_vm3, %v1970_v29, %v1966_v38 }
 0x163   :  { %v1103_v47 = vmul.f32 1.442695, %v854_v32  ;;  %v283_v2 = vsub.f32 %v3554_v18, %v4258_v0  ;;  %v1985_v5 = vrot.slane %v4140_v46, %v3836_v31  ;;  %1583 = vadd.xlane.f32.xlu1 %v1350_v21  ;;  %v1976_v43 = vsel %vm1797_vm4, %v1975_v23, %v1971_v51  ;;  %v4274_v46 = vld [vmem:[#allocation5 + $0x70] sm:$0xff] }
 0x164   :  { %v1073_v14 = vmul.f32 1.442695, %v839_v37  ;;  %v1980_v38 = vrot.slane %v4154_v45, %v3839_v6  ;;  %v328_v19 = vsub.f32 %v3658_v41, %v4046_v48  ;;  %v426_v30 = vmul.f32 %v4187_v54, %v298_v25  ;;  %v4287_v25 = vld [vmem:[#allocation8 + $0x68] sm:$0xff] }
 0x165   :  { %v2842_v26 = vpop.eup %2841  ;;  %1553 = vadd.xlane.f32.xlu0 %v1335_v56  ;;  %2849 = vpow2.f32 %v1103_v47  ;;  %v411_v42 = vmul.f32 %v4274_v46, %v283_v2  ;;  %v313_v23 = vsub.f32 %v3601_v28, %v4129_v35  ;;  %v1995_v51 = vrot.slane %v4164_v20, %v4908_v3 }
 0x166   :  { %v4264_v22 = vpop.xlane.xlu1 %1471  ;;  %v1178_v1 = vmul.f32 %v2842_v26, %v4207_v40  ;;  %2851 = vpow2.f32 %v1073_v14  ;;  %v1981_v45 = vsel %vm1804_vm5, %v1980_v38, %v1976_v43  ;;  %v456_v29 = vmul.f32 %v4061_v61, %v328_v19 }
 0x167   :  { %v4271_v16 = vpop.xlane.xlu0 %1469  ;;  %v2844_v21 = vpop.eup %2843  ;;  %v554_v32 = vmul.f32 %v426_v30, %v426_v30  ;;  %v539_v56 = vmul.f32 %v411_v42, %v411_v42  ;;  %v441_v37 = vmul.f32 %v4143_v60, %v313_v23  ;;  %v1986_v43 = vsel %vm1811_vm6, %v1985_v5, %v1981_v45 }
 0x168   :  { %v1306_v2 = vmul.f32 %v4287_v25, %v1178_v1  ;;  %v1237_v40 = vmul.f32 %v2844_v21, %v4218_v39  ;;  %v584_v14 = vmul.f32 %v456_v29, %v456_v29  ;;  %v1990_v21 = vrot.slane %v4175_v34, %v4907_v57 }
 0x169   :  { %v4294_v19 = vadd.f32 -1.0, %v554_v32  ;;  %v810_v26 = vmul.f32 -0.5, %v554_v32  ;;  %v4296_v30 = vadd.f32 -1.0, %v539_v56  ;;  %v795_v42 = vmul.f32 -0.5, %v539_v56 }
 0x16a   :  { %v4285_v47 = vpop.xlane.xlu1 %1501  ;;  %v2846_v20 = vpop.eup %2845  ;;  %1495 = vadd.xlane.f32.xlu1 %v1306_v2  ;;  %v1365_v23 = vmul.f32 %v3955_v63, %v1237_v40  ;;  %v4299_v3 = vadd.f32 -1.0, %v584_v14  ;;  %v840_v1 = vmul.f32 -0.5, %v584_v14  ;;  %v569_v31 = vmul.f32 %v441_v37, %v441_v37  ;;  %v4313_v14 = vld [vmem:[#allocation7 + $0x78] sm:$0xff] }
 0x16b   :  { %v4292_v38 = vpop.xlane.xlu0 %1473  ;;  %v2848_v39 = vpop.eup %2847  ;;  %v1208_v29 = vmul.f32 %v2846_v20, %v4230_v52  ;;  %v1015_v5 = vmul.f32 1.442695, %v810_v26  ;;  %v985_v45 = vmul.f32 1.442695, %v795_v42  ;;  %v1991_v52 = vsel %vm1818_vm7, %v1990_v21, %v1986_v43  ;;  %v4320_v20 = vld [vmem:[#allocation5 + $0x78] sm:$0xff]  ;;  %v4917_v43 = vld [vmem:[#allocation23_spill] sm:$0xff] }
 0x16c   :  { %1613 = vadd.xlane.f32.xlu0 %v1365_v23  ;;  %v1193_v56 = vmul.f32 %v2848_v39, %v4232_v17  ;;  %v1075_v2 = vmul.f32 1.442695, %v840_v1  ;;  %v4307_v6 = vadd.f32 -1.0, %v569_v31  ;;  %v825_v63 = vmul.f32 -0.5, %v569_v31 }
 0x16d   :  { %v1336_v37 = vmul.f32 %v4156_v49, %v1208_v29  ;;  %2853 = vpow2.f32 %v1015_v5  ;;  %v284_v34 = vsub.f32 %v3554_v18, %v4313_v14  ;;  %v343_v42 = vsub.f32 %v3715_v58, %v4002_v7 }
 0x16e   :  { %v4304_v32 = vpop.xlane.xlu1 %1475  ;;  %v1321_v26 = vmul.f32 %v4243_v12, %v1193_v56  ;;  %2855 = vpow2.f32 %v985_v45  ;;  %v1045_v17 = vmul.f32 1.442695, %v825_v63  ;;  %v2005_v1 = vrot.slane %v4192_v8, %v4917_v43 }
 0x16f   :  { %v4309_v40 = vpop.xlane.xlu0 %1503  ;;  %v2850_v31 = vpop.eup %2849  ;;  %1555 = vadd.xlane.f32.xlu1 %v1336_v37  ;;  %2857 = vpow2.f32 %v1075_v2  ;;  %v412_v23 = vmul.f32 %v4320_v20, %v284_v34  ;;  %v1996_v39 = vsel %vm1825_vm8, %v1995_v51, %v1991_v52  ;;  %v471_v7 = vmul.f32 %v4020_v13, %v343_v42  ;;  %v4918_v13 = vld [vmem:[#allocation27_spill] sm:$0xff] }
 0x170   :  { %v2852_v29 = vpop.eup %2851  ;;  %1525 = vadd.xlane.f32.xlu0 %v1321_v26  ;;  %v1238_v5 = vmul.f32 %v2850_v31, %v4250_v53  ;;  %2859 = vpow2.f32 %v1045_v17  ;;  %v2000_v45 = vrot.slane %v4196_v11, %v4910_v9  ;;  %v314_v8 = vsub.f32 %v3601_v28, %v4171_v55 }
 0x171   :  { %v1223_v56 = vmul.f32 %v2852_v29, %v4253_v59  ;;  %v540_v2 = vmul.f32 %v412_v23, %v412_v23  ;;  %v299_v51 = vsub.f32 %v3537_v4, %v4258_v0  ;;  %v599_v53 = vmul.f32 %v471_v7, %v471_v7 }
 0x172   :  { %v4326_v18 = vpop.xlane.xlu1 %1533  ;;  %v1366_v63 = vmul.f32 %v4012_v44, %v1238_v5  ;;  %v2001_v37 = vsel %vm1832_vm9, %v2000_v45, %v1996_v39  ;;  %v2015_v52 = vrot.slane %v4209_v27, %v4918_v13  ;;  %v442_v26 = vmul.f32 %v4187_v54, %v314_v8  ;;  %v4919_v5 = vld [vmem:[#allocation28_spill] sm:$0xff] }
 0x173   :  { %v4332_v21 = vpop.xlane.xlu0 %1505  ;;  %v1351_v11 = vmul.f32 %v4113_v36, %v1223_v56  ;;  %v4344_v34 = vadd.f32 -1.0, %v540_v2  ;;  %v796_v59 = vmul.f32 -0.5, %v540_v2  ;;  %v4349_v42 = vadd.f32 -1.0, %v599_v53 }
 0x174   :  { %1615 = vadd.xlane.f32.xlu1 %v1366_v63  ;;  %v855_v31 = vmul.f32 -0.5, %v599_v53  ;;  %v427_v44 = vmul.f32 %v4274_v46, %v299_v51  ;;  %v2006_v23 = vsel %vm1839_vm10, %v2005_v1, %v2001_v37  ;;  %v570_v29 = vmul.f32 %v442_v26, %v442_v26  ;;  %v4920_v63 = vld [vmem:[#allocation29_spill] sm:$0xff] }
 0x175   :  { %1585 = vadd.xlane.f32.xlu0 %v1351_v11  ;;  %v987_v27 = vmul.f32 1.442695, %v796_v59  ;;  %v2010_v7 = vrot.slane %v4216_v62, %v4919_v5  ;;  %v344_v45 = vsub.f32 %v3715_v58, %v4046_v48  ;;  %v329_v8 = vsub.f32 %v3658_v41, %v4129_v35 }
 0x176   :  { %v4347_v17 = vpop.xlane.xlu1 %1477  ;;  %v1105_v56 = vmul.f32 1.442695, %v855_v31  ;;  %v555_v2 = vmul.f32 %v427_v44, %v427_v44  ;;  %v2025_v51 = vrot.slane %v4236_v10, %v4920_v63  ;;  %v4363_v53 = vadd.f32 -1.0, %v570_v29 }
 0x177   :  { %v4353_v39 = vpop.xlane.xlu0 %1535  ;;  %v2854_v1 = vpop.eup %2853  ;;  %2861 = vpow2.f32 %v987_v27  ;;  %v826_v37 = vmul.f32 -0.5, %v570_v29  ;;  %v2011_v11 = vsel %vm1846_vm11, %v2010_v7, %v2006_v23  ;;  %v472_v27 = vmul.f32 %v4061_v61, %v344_v45 }
 0x178   :  { %v2856_v59 = vpop.eup %2855  ;;  %v1194_v62 = vmul.f32 %v2854_v1, %v4294_v19  ;;  %2863 = vpow2.f32 %v1105_v56  ;;  %v4367_v48 = vadd.f32 -1.0, %v555_v2  ;;  %v811_v26 = vmul.f32 -0.5, %v555_v2  ;;  %v4379_v1 = vld [vmem:[#allocation8 + $0x70] sm:$0xff] }
 0x179   :  { %v2858_v44 = vpop.eup %2857  ;;  %v1179_v13 = vmul.f32 %v2856_v59, %v4296_v30  ;;  %v1047_v10 = vmul.f32 1.442695, %v826_v37  ;;  %v457_v63 = vmul.f32 %v4143_v60, %v329_v8  ;;  %v2016_v2 = vsel %vm1853_vm12, %v2015_v52, %v2011_v11  ;;  %v4921_v37 = vld [vmem:[#allocation30_spill] sm:$0xff] }
 0x17a   :  { %v4369_v31 = vpop.xlane.xlu1 %1537  ;;  %v2860_v23 = vpop.eup %2859  ;;  %v1322_v7 = vmul.f32 %v4287_v25, %v1194_v62  ;;  %v1224_v19 = vmul.f32 %v2858_v44, %v4299_v3  ;;  %v1017_v56 = vmul.f32 1.442695, %v811_v26  ;;  %v600_v61 = vmul.f32 %v472_v27, %v472_v27 }
 0x17b   :  { %v4374_v29 = vpop.xlane.xlu0 %1507  ;;  %v1307_v5 = vmul.f32 %v4379_v1, %v1179_v13  ;;  %v1209_v30 = vmul.f32 %v2860_v23, %v4307_v6  ;;  %2865 = vpow2.f32 %v1047_v10  ;;  %v585_v8 = vmul.f32 %v457_v63, %v457_v63 }
 0x17c   :  { %1527 = vadd.xlane.f32.xlu1 %v1322_v7  ;;  %v1352_v45 = vmul.f32 %v4156_v49, %v1224_v19  ;;  %2867 = vpow2.f32 %v1017_v56  ;;  %v2020_v59 = vrot.slane %v4241_v33, %v4921_v37  ;;  %v4387_v52 = vadd.f32 -1.0, %v600_v61 }
 0x17d   :  { %1497 = vadd.xlane.f32.xlu0 %v1307_v5  ;;  %v1337_v3 = vmul.f32 %v4243_v12, %v1209_v30  ;;  %v856_v11 = vmul.f32 -0.5, %v600_v61  ;;  %v315_v13 = vsub.f32 %v3601_v28, %v4258_v0  ;;  %v4391_v6 = vadd.f32 -1.0, %v585_v8 }
 0x17e   :  { %v841_v62 = vmul.f32 -0.5, %v585_v8  ;;  %v2021_v26 = vsel %vm1860_vm13, %v2020_v59, %v2016_v2  ;;  %v300_v63 = vsub.f32 %v3537_v4, %v4313_v14  ;;  %v2034_v27 = vrot.slane %v4264_v22, %v3785_v15 }
 0x17f   :  { %v1107_v33 = vmul.f32 1.442695, %v856_v11  ;;  %v4399_v5 = vsel %vm1867_vm14, %v2025_v51, %v2021_v26  ;;  %v443_v10 = vmul.f32 %v4274_v46, %v315_v13  ;;  %v2030_v4 = vrot.slane %v4271_v16, %v4912_v50 }
 0x180   :  { %1587 = vadd.xlane.f32.xlu1 %v1352_v45  ;;  %v1077_v7 = vmul.f32 1.442695, %v841_v62  ;;  %v428_v19 = vmul.f32 %v4320_v20, %v300_v63  ;;  %v345_v56 = vsub.f32 %v3715_v58, %v4129_v35  ;;  %v330_v30 = vsub.f32 %v3658_v41, %v4171_v55  ;;  %v4423_v62 = vld [vmem:[#allocation8 + $0x78] sm:$0xff] }
 0x181   :  { %v4396_v44 = vpop.xlane.xlu1 %1567  ;;  %v2862_v2 = vpop.eup %2861  ;;  %1557 = vadd.xlane.f32.xlu0 %v1337_v3  ;;  %2869 = vpow2.f32 %v1107_v33  ;;  %v571_v51 = vmul.f32 %v443_v10, %v443_v10  ;;  %v2109_v22 = vrot.slane %v4285_v47, %v4912_v50  ;;  %v2035_v16 = vsel %vm1769_vm0, %v2034_v27, %v2030_v4  ;;  %v4922_v4 = vld [vmem:[#allocation35_spill] sm:$0xff] }
 0x182   :  { %v4404_v23 = vpop.xlane.xlu0 %1565  ;;  %v2864_v61 = vpop.eup %2863  ;;  %v1180_v45 = vmul.f32 %v2862_v2, %v4344_v34  ;;  %2871 = vpow2.f32 %v1077_v7  ;;  %v556_v8 = vmul.f32 %v428_v19, %v428_v19  ;;  %v473_v11 = vmul.f32 %v4143_v60, %v345_v56 }
 0x183   :  { %v1239_v59 = vmul.f32 %v2864_v61, %v4349_v42  ;;  %v4418_v35 = vadd.f32 -1.0, %v571_v51  ;;  %v827_v3 = vmul.f32 -0.5, %v571_v51  ;;  %v458_v33 = vmul.f32 %v4187_v54, %v330_v30 }
 0x184   :  { %v1308_v26 = vmul.f32 %v4423_v62, %v1180_v45  ;;  %v4426_v63 = vadd.f32 -1.0, %v556_v8  ;;  %v812_v34 = vmul.f32 -0.5, %v556_v8  ;;  %v601_v19 = vmul.f32 %v473_v11, %v473_v11 }
 0x185   :  { %v4421_v13 = vpop.xlane.xlu1 %1509  ;;  %v2866_v27 = vpop.eup %2865  ;;  %v1367_v42 = vmul.f32 %v4113_v36, %v1239_v59  ;;  %v1049_v7 = vmul.f32 1.442695, %v827_v3  ;;  %v2039_v60 = vrot.slane %v4292_v38, %v4922_v4  ;;  %v586_v61 = vmul.f32 %v458_v33, %v458_v33 }
 0x186   :  { %v4429_v10 = vpop.xlane.xlu0 %1479  ;;  %v2868_v56 = vpop.eup %2867  ;;  %1499 = vadd.xlane.f32.xlu1 %v1308_v26  ;;  %v1210_v2 = vmul.f32 %v2866_v27, %v4363_v53  ;;  %v1019_v51 = vmul.f32 1.442695, %v812_v34  ;;  %v331_v45 = vsub.f32 %v3658_v41, %v4258_v0  ;;  %v4438_v8 = vadd.f32 -1.0, %v601_v19 }
 0x187   :  { %1617 = vadd.xlane.f32.xlu0 %v1367_v42  ;;  %v1195_v30 = vmul.f32 %v2868_v56, %v4367_v48  ;;  %2873 = vpow2.f32 %v1049_v7  ;;  %v857_v36 = vmul.f32 -0.5, %v601_v19  ;;  %v4441_v38 = vadd.f32 -1.0, %v586_v61  ;;  %v4923_v42 = vld [vmem:[#allocation36_spill] sm:$0xff] }
 0x188   :  { %v1338_v59 = vmul.f32 %v4287_v25, %v1210_v2  ;;  %2875 = vpow2.f32 %v1019_v51  ;;  %v842_v3 = vmul.f32 -0.5, %v586_v61  ;;  %v2040_v26 = vsel %vm1776_vm1, %v2039_v60, %v2035_v16 }
 0x189   :  { %v1323_v53 = vmul.f32 %v4379_v1, %v1195_v30  ;;  %v1109_v11 = vmul.f32 1.442695, %v857_v36  ;;  %v459_v34 = vmul.f32 %v4274_v46, %v331_v45  ;;  %v4446_v33 = vpop.xlane.xlu1 %1569  ;;  %v316_v27 = vsub.f32 %v3601_v28, %v4313_v14 }
 0x18a   :  { %1559 = vadd.xlane.f32.xlu1 %v1338_v59  ;;  %v1079_v48 = vmul.f32 1.442695, %v842_v3  ;;  %v2044_v7 = vrot.slane %v4304_v32, %v4923_v42  ;;  %v2113_v19 = vrot.slane %v4309_v40, %v3785_v15  ;;  %v4454_v56 = vpop.xlane.xlu0 %1539  ;;  %v332_v60 = vsub.f32 %v3658_v41, %v4313_v14 }
 0x18b   :  { %v2870_v2 = vpop.eup %2869  ;;  %1529 = vadd.xlane.f32.xlu0 %v1323_v53  ;;  %2877 = vpow2.f32 %v1109_v11  ;;  %v587_v16 = vmul.f32 %v459_v34, %v459_v34  ;;  %v346_v51 = vsub.f32 %v3715_v58, %v4171_v55  ;;  %v444_v32 = vmul.f32 %v4320_v20, %v316_v27 }
 0x18c   :  { %v2872_v61 = vpop.eup %2871  ;;  %v1240_v28 = vmul.f32 %v2870_v2, %v4387_v52  ;;  %2879 = vpow2.f32 %v1079_v48  ;;  %v2045_v40 = vsel %vm1783_vm2, %v2044_v7, %v2040_v26  ;;  %v2114_v41 = vsel %vm1769_vm0, %v2113_v19, %v2109_v22 }
 0x18d   :  { %v1225_v45 = vmul.f32 %v2872_v61, %v4391_v6  ;;  %v4464_v30 = vadd.f32 -1.0, %v587_v16  ;;  %v843_v36 = vmul.f32 -0.5, %v587_v16  ;;  %v572_v59 = vmul.f32 %v444_v32, %v444_v32 }
 0x18e   :  { %v1368_v55 = vmul.f32 %v4156_v49, %v1240_v28  ;;  %v460_v52 = vmul.f32 %v4320_v20, %v332_v60  ;;  %v474_v3 = vmul.f32 %v4187_v54, %v346_v51  ;;  %v2188_v6 = vrot.slane %v4326_v18, %v4912_v50 }
 0x18f   :  { %v1353_v53 = vmul.f32 %v4243_v12, %v1225_v45  ;;  %v1081_v11 = vmul.f32 1.442695, %v843_v36  ;;  %v2118_v26 = vrot.slane %v4332_v21, %v4922_v4  ;;  %v4480_v47 = vadd.f32 -1.0, %v572_v59 }
 0x190   :  { %1619 = vadd.xlane.f32.xlu1 %v1368_v55  ;;  %v828_v49 = vmul.f32 -0.5, %v572_v59  ;;  %v588_v22 = vmul.f32 %v460_v52, %v460_v52  ;;  %v602_v48 = vmul.f32 %v474_v3, %v474_v3  ;;  %v347_v18 = vsub.f32 %v3715_v58, %v4258_v0 }
 0x191   :  { %v2874_v54 = vpop.eup %2873  ;;  %1589 = vadd.xlane.f32.xlu0 %v1353_v53  ;;  %2881 = vpow2.f32 %v1081_v11  ;;  %v2119_v7 = vsel %vm1776_vm1, %v2118_v26, %v2114_v41  ;;  %v348_v21 = vsub.f32 %v3715_v58, %v4313_v14  ;;  %v2049_v52 = vrot.slane %v4347_v17, %v4916_v24 }
 0x192   :  { %v4478_v34 = vpop.xlane.xlu1 %1599  ;;  %v2876_v19 = vpop.eup %2875  ;;  %v1211_v2 = vmul.f32 %v2874_v54, %v4418_v35  ;;  %v1051_v16 = vmul.f32 1.442695, %v828_v49  ;;  %v4490_v60 = vadd.f32 -1.0, %v588_v22  ;;  %v844_v51 = vmul.f32 -0.5, %v588_v22 }
 0x193   :  { %v4482_v27 = vpop.xlane.xlu0 %1597  ;;  %v1196_v61 = vmul.f32 %v2876_v19, %v4426_v63  ;;  %v4493_v28 = vadd.f32 -1.0, %v602_v48  ;;  %v858_v32 = vmul.f32 -0.5, %v602_v48  ;;  %v475_v45 = vmul.f32 %v4274_v46, %v347_v18 }
 0x194   :  { %v1339_v0 = vmul.f32 %v4379_v1, %v1211_v2  ;;  %2883 = vpow2.f32 %v1051_v16  ;;  %v1083_v58 = vmul.f32 1.442695, %v844_v51  ;;  %v476_v14 = vmul.f32 %v4320_v20, %v348_v21 }
 0x195   :  { %v2878_v41 = vpop.eup %2877  ;;  %v1324_v55 = vmul.f32 %v4423_v62, %v1196_v61  ;;  %v1111_v59 = vmul.f32 1.442695, %v858_v32  ;;  %v603_v63 = vmul.f32 %v475_v45, %v475_v45  ;;  %v2192_v11 = vrot.slane %v4353_v39, %v3785_v15 }
 0x196   :  { %v4496_v36 = vpop.xlane.xlu1 %1511  ;;  %v2880_v3 = vpop.eup %2879  ;;  %1561 = vadd.xlane.f32.xlu1 %v1339_v0  ;;  %v1241_v46 = vmul.f32 %v2878_v41, %v4438_v8  ;;  %2885 = vpow2.f32 %v1083_v58  ;;  %v604_v53 = vmul.f32 %v476_v14, %v476_v14  ;;  %v2050_v8 = vsel %vm1790_vm3, %v2049_v52, %v2045_v40 }
 0x197   :  { %v4500_v35 = vpop.xlane.xlu0 %1481  ;;  %1531 = vadd.xlane.f32.xlu0 %v1324_v55  ;;  %v1226_v20 = vmul.f32 %v2880_v3, %v4441_v38  ;;  %2887 = vpow2.f32 %v1111_v59  ;;  %v4509_v26 = vadd.f32 -1.0, %v603_v63  ;;  %v859_v49 = vmul.f32 -0.5, %v603_v63  ;;  %v4925_v3 = vld [vmem:[#allocation20_spill] sm:$0xff] }
 0x198   :  { %v1369_v48 = vmul.f32 %v4243_v12, %v1241_v46  ;;  %v4512_v17 = vadd.f32 -1.0, %v604_v53  ;;  %v860_v54 = vmul.f32 -0.5, %v604_v53  ;;  %v2193_v19 = vsel %vm1769_vm0, %v2192_v11, %v2188_v6 }
 0x199   :  { %v1354_v21 = vmul.f32 %v4287_v25, %v1226_v20  ;;  %v1113_v39 = vmul.f32 1.442695, %v859_v49  ;;  %v2197_v38 = vrot.slane %v4369_v31, %v4922_v4  ;;  %v2123_v12 = vrot.slane %v4374_v29, %v4923_v42  ;;  %v4924_v31 = vld [vmem:[#allocation19_spill] sm:$0xff]  ;;  %v4926_v49 = vld [vmem:[#allocation18_spill] sm:$0xff] }
 0x19a   :  { %v1572_v22 = vpop.xlane.xlu1 %1571  ;;  %1621 = vadd.xlane.f32.xlu1 %v1369_v48  ;;  %v1115_v2 = vmul.f32 1.442695, %v860_v54  ;;  %v2271_v16 = vrot.slane %v4396_v44, %v3785_v15  ;;  %v2267_v40 = vrot.slane %v4404_v23, %v4912_v50  ;;  %v2128_v6 = vrot.slane %v4421_v13, %v4916_v24 }
 0x19b   :  { %v1542_v18 = vpop.xlane.xlu0 %1541  ;;  %v2882_v51 = vpop.eup %2881  ;;  %1591 = vadd.xlane.f32.xlu0 %v1354_v21  ;;  %2889 = vpow2.f32 %v1113_v39  ;;  %v2198_v61 = vsel %vm1776_vm1, %v2197_v38, %v2193_v19  ;;  %v2054_v32 = vrot.slane %v4429_v10, %v4924_v31  ;;  %v2124_v44 = vsel %vm1783_vm2, %v2123_v12, %v2119_v7  ;;  %v4927_v38 = vld [vmem:[#allocation31_spill] sm:$0xff] }
 0x19c   :  { %v1227_v29 = vmul.f32 %v2882_v51, %v4464_v30  ;;  %2891 = vpow2.f32 %v1115_v2  ;;  %v2272_v0 = vsel %vm1769_vm0, %v2271_v16, %v2267_v40  ;;  %v2129_v58 = vsel %vm1790_vm3, %v2128_v6, %v2124_v44  ;;  %v4928_v2 = vld [vmem:[#allocation32_spill] sm:$0xff] }
 0x19d   :  { %v2055_v14 = vsel %vm1797_vm4, %v2054_v32, %v2050_v8  ;;  %v2276_v41 = vrot.slane %v4446_v33, %v4922_v4  ;;  %v2202_v13 = vrot.slane %v4454_v56, %v4923_v42  ;;  %v2350_v30 = vrot.slane %v4478_v34, %v3785_v15 }
 0x19e   :  { %v1484_v45 = vpop.xlane.xlu1 %1483  ;;  %v2884_v10 = vpop.eup %2883  ;;  %v1355_v55 = vmul.f32 %v4379_v1, %v1227_v29  ;;  %v2346_v7 = vrot.slane %v4482_v27, %v4912_v50  ;;  %v2133_v59 = vrot.slane %v4496_v36, %v4924_v31  ;;  %v2059_v56 = vrot.slane %v4500_v35, %v4925_v3 }
 0x19f   :  { %v1602_v23 = vpop.xlane.xlu0 %1601  ;;  %v1212_v63 = vmul.f32 %v2884_v10, %v4480_v47  ;;  %v2277_v52 = vsel %vm1776_vm1, %v2276_v41, %v2272_v0  ;;  %v2203_v33 = vsel %vm1783_vm2, %v2202_v13, %v2198_v61  ;;  %v2281_v50 = vrot.slane %v1572_v22, %v4923_v42 }
 0x1a0   :  { %v2886_v46 = vpop.eup %2885  ;;  %1593 = vadd.xlane.f32.xlu1 %v1355_v55  ;;  %v2351_v53 = vsel %vm1769_vm0, %v2350_v30, %v2346_v7  ;;  %v2134_v15 = vsel %vm1797_vm4, %v2133_v59, %v2129_v58  ;;  %v2207_v34 = vrot.slane %v1542_v18, %v4916_v24  ;;  %v2060_v20 = vsel %vm1804_vm5, %v2059_v56, %v2055_v14 }
 0x1a1   :  { %v2888_v36 = vpop.eup %2887  ;;  %v1340_v47 = vmul.f32 %v4423_v62, %v1212_v63  ;;  %v1228_v11 = vmul.f32 %v2886_v46, %v4490_v60  ;;  %v2064_v35 = vrot.slane %v1484_v45, %v4926_v49  ;;  %v2282_v54 = vsel %vm1783_vm2, %v2281_v50, %v2277_v52  ;;  %v4929_v52 = vld [vmem:[#allocation38_spill] sm:$0xff] }
 0x1a2   :  { %v1544_v27 = vpop.xlane.xlu1 %1543  ;;  %v1242_v48 = vmul.f32 %v2888_v36, %v4493_v28  ;;  %v2208_v8 = vsel %vm1790_vm3, %v2207_v34, %v2203_v33  ;;  %v2355_v22 = vrot.slane %v1602_v23, %v4922_v4  ;;  %v2423_v28 = vsel %vm2422_vm15, %v4928_v2, %v4927_v38 }
 0x1a3   :  { %1563 = vadd.xlane.f32.xlu0 %v1340_v47  ;;  %v1356_v18 = vmul.f32 %v4423_v62, %v1228_v11  ;;  %v2065_v39 = vsel %vm1811_vm6, %v2064_v35, %v2060_v20  ;;  %v2212_v60 = vrot.slane %v1544_v27, %v4924_v31  ;;  %vm2424_vm0 = vcmask 1042434  }
 0x1a4   :  { %v1370_v12 = vmul.f32 %v4287_v25, %v1242_v48  ;;  %v2356_v16 = vsel %vm1776_vm1, %v2355_v22, %v2351_v53  ;;  %v4575_v61 = vsel %vm2424_vm0, %v4399_v5, %v2423_v28  ;;  %vm2426_vm1 = vcmask 1043459  }
 0x1a5   :  { %v1514_v21 = vpop.xlane.xlu0 %1513  ;;  %v2890_v4 = vpop.eup %2889  ;;  %1595 = vadd.xlane.f32.xlu1 %v1356_v18  ;;  %v2213_v40 = vsel %vm1797_vm4, %v2212_v60, %v2208_v8 }
 0x1a6   :  { %v2138_v19 = vrot.slane %v1514_v21, %v4925_v3  ;;  %v2892_v6 = vpop.eup %2891  ;;  %v1243_v32 = vmul.f32 %v2890_v4, %v4509_v26 }
 0x1a7   :  { %1623 = vadd.xlane.f32.xlu0 %v1370_v12  ;;  %v1244_v45 = vmul.f32 %v2892_v6, %v4512_v17 }
 0x1a8   :  { %v2139_v51 = vsel %vm1804_vm5, %v2138_v19, %v2134_v15  ;;  %v1371_v25 = vmul.f32 %v4379_v1, %v1243_v32 }
 0x1a9   :  { %v1372_v29 = vmul.f32 %v4423_v62, %v1244_v45 }
 0x1ab   :  { %1625 = vadd.xlane.f32.xlu0 %v1371_v25  ;;  %1627 = vadd.xlane.f32.xlu1 %v1372_v29 }
 0x1ac   :  { %v1604_v44 = vpop.xlane.xlu1 %1603 }
 0x1ad   :  { %v2360_v0 = vrot.slane %v1604_v44, %v4923_v42  ;;  %v1574_v23 = vpop.xlane.xlu0 %1573 }
 0x1ae   :  { %v2286_v58 = vrot.slane %v1574_v23, %v4916_v24 }
 0x1af   :  { %v2361_v5 = vsel %vm1783_vm2, %v2360_v0, %v2356_v16  ;;  %vm2428_vm2 = vcmask 1044484  }
 0x1b0   :  { %v2287_v14 = vsel %vm1790_vm3, %v2286_v58, %v2282_v54  ;;  %v1516_v26 = vpop.xlane.xlu1 %1515 }
 0x1b1   :  { %v2143_v41 = vrot.slane %v1516_v26, %v4926_v49 }
 0x1b2   :  { %v1486_v1 = vpop.xlane.xlu0 %1485 }
 0x1b3   :  { %v2144_v17 = vsel %vm1811_vm6, %v2143_v41, %v2139_v51  ;;  %v2069_v62 = vrot.slane %v1486_v1, %v4907_v57 }
 0x1b5   :  { %v2070_v13 = vsel %vm1818_vm7, %v2069_v62, %v2065_v39 }
 0x1b9   :  { %v1576_v10 = vpop.xlane.xlu1 %1575 }
 0x1ba   :  { %v2291_v42 = vrot.slane %v1576_v10, %v4924_v31  ;;  %v1546_v55 = vpop.xlane.xlu0 %1545 }
 0x1bb   :  { %v2217_v30 = vrot.slane %v1546_v55, %v4925_v3 }
 0x1bc   :  { %v2292_v7 = vsel %vm1797_vm4, %v2291_v42, %v2287_v14  ;;  %v4931_v42 = vld [vmem:[#allocation27_spill] sm:$0xff] }
 0x1bd   :  { %v2218_v59 = vsel %vm1804_vm5, %v2217_v30, %v2213_v40 }
 0x1be   :  { %v1488_v63 = vpop.xlane.xlu1 %1487 }
 0x1bf   :  { %v2074_v33 = vrot.slane %v1488_v63, %v4929_v52  ;;  %v1606_v56 = vpop.xlane.xlu0 %1605 }
 0x1c0   :  { %v2365_v46 = vrot.slane %v1606_v56, %v4916_v24  ;;  %v4932_v56 = vld [vmem:[#allocation29_spill] sm:$0xff] }
 0x1c1   :  { %v2075_v53 = vsel %vm1825_vm8, %v2074_v33, %v2070_v13  ;;  %v4930_v13 = vld [vmem:[#allocation28_spill] sm:$0xff] }
 0x1c2   :  { %v2366_v15 = vsel %vm1790_vm3, %v2365_v46, %v2361_v5  ;;  %vm2430_vm3 = vcmask 1045509  }
 0x1c5   :  { %v1548_v50 = vpop.xlane.xlu1 %1547 }
 0x1c6   :  { %v2222_v34 = vrot.slane %v1548_v50, %v4926_v49  ;;  %v1518_v27 = vpop.xlane.xlu0 %1517 }
 0x1c7   :  { %v2148_v36 = vrot.slane %v1518_v27, %v4907_v57 }
 0x1c8   :  { %v2223_v47 = vsel %vm1811_vm6, %v2222_v34, %v2218_v59 }
 0x1c9   :  { %v2149_v11 = vsel %vm1818_vm7, %v2148_v36, %v2144_v17 }
 0x1ca   :  { %v1608_v20 = vpop.xlane.xlu1 %1607 }
 0x1cb   :  { %v2370_v35 = vrot.slane %v1608_v20, %v4924_v31 }
 0x1cc   :  { %v1578_v24 = vpop.xlane.xlu0 %1577 }
 0x1cd   :  { %v4603_v48 = vsel %vm1797_vm4, %v2370_v35, %v2366_v15  ;;  %v2296_v54 = vrot.slane %v1578_v24, %v4925_v3  ;;  %vm2432_vm4 = vcmask 1046534  }
 0x1cf   :  { %v4607_v8 = vsel %vm1804_vm5, %v2296_v54, %v2292_v7 }
 0x1d1   :  { %v1520_v22 = vpop.xlane.xlu1 %1519 }
 0x1d2   :  { %v2153_v21 = vrot.slane %v1520_v22, %v4929_v52 }
 0x1d3   :  { %v1490_v18 = vpop.xlane.xlu0 %1489 }
 0x1d4   :  { %v2079_v39 = vrot.slane %v1490_v18, %v4910_v9  ;;  %v2154_v60 = vsel %vm1825_vm8, %v2153_v21, %v2149_v11 }
 0x1d5   :  { %v4613_v31 = vpop.xlane.xlu1 %1579 }
 0x1d6   :  { %v2080_v19 = vsel %vm1832_vm9, %v2079_v39, %v2075_v53 }
 0x1d7   :  { %v1550_v38 = vpop.xlane.xlu0 %1549 }
 0x1d8   :  { %v2227_v2 = vrot.slane %v1550_v38, %v4907_v57 }
 0x1da   :  { %v4617_v28 = vsel %vm1818_vm7, %v2227_v2, %v2223_v47 }
 0x1db   :  { %v1492_v12 = vpop.xlane.xlu1 %1491 }
 0x1dc   :  { %v4619_v16 = vpop.xlane.xlu0 %1609  ;;  %v2084_v1 = vrot.slane %v1492_v12, %v4917_v43 }
 0x1de   :  { %v2085_v7 = vsel %vm1839_vm10, %v2084_v1, %v2080_v19 }
 0x1e0   :  { %v4621_v4 = vpop.xlane.xlu1 %1551 }
 0x1e1   :  { %v1522_v40 = vpop.xlane.xlu0 %1521 }
 0x1e2   :  { %v2158_v11 = vrot.slane %v1522_v40, %v4910_v9 }
 0x1e4   :  { %v2159_v22 = vsel %vm1832_vm9, %v2158_v11, %v2154_v60  ;;  %v2301_v60 = vrot.slane %v4613_v31, %v4926_v49 }
 0x1e5   :  { %v4623_v51 = vpop.xlane.xlu1 %1611 }
 0x1e6   :  { %v4625_v6 = vpop.xlane.xlu0 %1581  ;;  %v2302_v31 = vsel %vm1811_vm6, %v2301_v60, %v4607_v8 }
 0x1ec   :  { %v1524_v32 = vpop.xlane.xlu1 %1523 }
 0x1ed   :  { %v2163_v35 = vrot.slane %v1524_v32, %v4917_v43 }
 0x1ee   :  { %v1494_v45 = vpop.xlane.xlu0 %1493 }
 0x1ef   :  { %v2089_v10 = vrot.slane %v1494_v45, %v4930_v13  ;;  %v2164_v18 = vsel %vm1839_vm10, %v2163_v35, %v2159_v22 }
 0x1f0   :  { %v4627_v25 = vpop.xlane.xlu1 %1583 }
 0x1f1   :  { %v2090_v59 = vsel %vm1846_vm11, %v2089_v10, %v2085_v7  ;;  %v2311_v1 = vrot.slane %v4627_v25, %v4929_v52 }
 0x1f2   :  { %v4629_v29 = vpop.xlane.xlu0 %1553 }
 0x1f7   :  { %v1496_v44 = vpop.xlane.xlu1 %1495 }
 0x1f8   :  { %v2094_v55 = vrot.slane %v1496_v44, %v4931_v42  ;;  %v2232_v44 = vrot.slane %v4621_v4, %v4929_v52 }
 0x1f9   :  { %v4631_v0 = vpop.xlane.xlu0 %1613 }
 0x1fa   :  { %v2095_v33 = vsel %vm1853_vm12, %v2094_v55, %v2090_v59 }
 0x1fc   :  { %v4633_v23 = vpop.xlane.xlu1 %1555 }
 0x1fd   :  { %v1526_v58 = vpop.xlane.xlu0 %1525  ;;  %v2242_v10 = vrot.slane %v4633_v23, %v4917_v43 }
 0x1fe   :  { %v2168_v24 = vrot.slane %v1526_v58, %v4930_v13  ;;  %v2306_v58 = vrot.slane %v4625_v6, %v4907_v57  ;;  %v2375_v6 = vrot.slane %v4619_v16, %v4925_v3  ;;  %v2380_v16 = vrot.slane %v4623_v51, %v4926_v49 }
 0x200   :  { %v2169_v39 = vsel %vm1846_vm11, %v2168_v24, %v2164_v18  ;;  %v2307_v8 = vsel %vm1818_vm7, %v2306_v58, %v2302_v31 }
 0x201   :  { %v4635_v5 = vpop.xlane.xlu1 %1615  ;;  %v2312_v59 = vsel %vm1825_vm8, %v2311_v1, %v2307_v8 }
 0x202   :  { %v4637_v14 = vpop.xlane.xlu0 %1585  ;;  %v2390_v49 = vrot.slane %v4635_v5, %v4929_v52 }
 0x203   :  { %v2316_v55 = vrot.slane %v4637_v14, %v4910_v9 }
 0x209   :  { %v1528_v26 = vpop.xlane.xlu1 %1527 }
 0x20a   :  { %v1498_v41 = vpop.xlane.xlu0 %1497  ;;  %v2173_v54 = vrot.slane %v1528_v26, %v4931_v42  ;;  %v2237_v26 = vrot.slane %v4629_v29, %v4910_v9  ;;  %v2233_v29 = vsel %vm1825_vm8, %v2232_v44, %v4617_v28 }
 0x20b   :  { %v2099_v30 = vrot.slane %v1498_v41, %v4921_v37 }
 0x20c   :  { %v2174_v38 = vsel %vm1853_vm12, %v2173_v54, %v2169_v39  ;;  %v2238_v14 = vsel %vm1832_vm9, %v2237_v26, %v2233_v29 }
 0x20d   :  { %v4639_v17 = vpop.xlane.xlu1 %1587  ;;  %v2100_v15 = vsel %vm1860_vm13, %v2099_v30, %v2095_v33  ;;  %v2243_v3 = vsel %vm1839_vm10, %v2242_v10, %v2238_v14  ;;  %v2625_v14 = vld [vmem:[%s4764_s4] ss:$0 sm:$0xff] }
 0x20e   :  { %v4642_v62 = vpop.xlane.xlu0 %1557  ;;  %v2321_v25 = vrot.slane %v4639_v17, %v4917_v43  ;;  %v2317_v17 = vsel %vm1832_vm9, %v2316_v55, %v2312_v59 }
 0x20f   :  { %v2247_v4 = vrot.slane %v4642_v62, %v4930_v13 }
 0x213   :  { %v1500_v63 = vpop.xlane.xlu1 %1499 }
 0x214   :  { %v2104_v46 = vrot.slane %v1500_v63, %v4932_v56  ;;  %v4651_v53 = vpop.xlane.xlu0 %1617  ;;  %v2248_v63 = vsel %vm1846_vm11, %v2247_v4, %v2243_v3 }
 0x216   :  { %v2105_v50 = vsel %vm1867_vm14, %v2104_v46, %v2100_v15  ;;  %v2385_v15 = vrot.slane %v4631_v0, %v4907_v57  ;;  %v2395_v57 = vrot.slane %v4651_v53, %v4910_v9 }
 0x217   :  { %v2427_v34 = vsel %vm2426_vm1, %v2105_v50, %v4575_v61  ;;  %v1560_v27 = vpop.xlane.xlu1 %1559  ;;  %v2322_v50 = vsel %vm1839_vm10, %v2321_v25, %v2317_v17 }
 0x218   :  { %v1530_v36 = vpop.xlane.xlu0 %1529  ;;  %v2252_v23 = vrot.slane %v1560_v27, %v4931_v42 }
 0x219   :  { %v2178_v21 = vrot.slane %v1530_v36, %v4921_v37  ;;  %v2376_v36 = vsel %vm1804_vm5, %v2375_v6, %v4603_v48  ;;  %vm2434_vm5 = vcmask 1047559  }
 0x21a   :  { %v2381_v54 = vsel %vm1811_vm6, %v2380_v16, %v2376_v36 }
 0x21b   :  { %v2179_v12 = vsel %vm1860_vm13, %v2178_v21, %v2174_v38  ;;  %v2386_v21 = vsel %vm1818_vm7, %v2385_v15, %v2381_v54 }
 0x21c   :  { %v2391_v18 = vsel %vm1825_vm8, %v2390_v49, %v2386_v21 }
 0x21d   :  { %v4656_v47 = vpop.xlane.xlu1 %1619 }
 0x21e   :  { %v1590_v20 = vpop.xlane.xlu0 %1589  ;;  %v2400_v48 = vrot.slane %v4656_v47, %v4917_v43 }
 0x21f   :  { %v2326_v7 = vrot.slane %v1590_v20, %v4930_v13 }
 0x221   :  { %v2327_v51 = vsel %vm1846_vm11, %v2326_v7, %v2322_v50 }
 0x223   :  { %v1562_v61 = vpop.xlane.xlu1 %1561 }
 0x224   :  { %v1532_v19 = vpop.xlane.xlu0 %1531  ;;  %v2257_v62 = vrot.slane %v1562_v61, %v4921_v37 }
 0x225   :  { %v2183_v2 = vrot.slane %v1532_v19, %v4932_v56  ;;  %v2396_v19 = vsel %vm1832_vm9, %v2395_v57, %v2391_v18 }
 0x226   :  { %v2401_v43 = vsel %vm1839_vm10, %v2400_v48, %v2396_v19 }
 0x227   :  { %v2184_v40 = vsel %vm1867_vm14, %v2183_v2, %v2179_v12  ;;  %v1622_v32 = vpop.xlane.xlu1 %1621 }
 0x228   :  { %v2429_v45 = vsel %vm2428_vm2, %v2184_v40, %v2427_v34  ;;  %v1592_v41 = vpop.xlane.xlu0 %1591  ;;  %v2253_v34 = vsel %vm1853_vm12, %v2252_v23, %v2248_v63  ;;  %v2405_v9 = vrot.slane %v1622_v32, %v4930_v13 }
 0x229   :  { %v2331_v28 = vrot.slane %v1592_v41, %v4931_v42  ;;  %v2258_v11 = vsel %vm1860_vm13, %v2257_v62, %v2253_v34  ;;  %v2626_v62 = vld [vmem:[%s4765_s5] ss:$0 sm:$0xff] }
 0x22a   :  { %v2406_v2 = vsel %vm1846_vm11, %v2405_v9, %v2401_v43 }
 0x22b   :  { %v2332_v0 = vsel %vm1853_vm12, %v2331_v28, %v2327_v51 }
 0x22d   :  { %v1594_v30 = vpop.xlane.xlu1 %1593 }
 0x22e   :  { %v2336_v33 = vrot.slane %v1594_v30, %v4921_v37 }
 0x230   :  { %v1564_v46 = vpop.xlane.xlu0 %1563  ;;  %v2337_v52 = vsel %vm1860_vm13, %v2336_v33, %v2332_v0 }
 0x231   :  { %v2262_v27 = vrot.slane %v1564_v46, %v4932_v56 }
 0x232   :  { %v1596_v20 = vpop.xlane.xlu1 %1595 }
 0x233   :  { %v2263_v35 = vsel %vm1867_vm14, %v2262_v27, %v2258_v11  ;;  %v2341_v24 = vrot.slane %v1596_v20, %v4932_v56 }
 0x234   :  { %v2431_v5 = vsel %vm2430_vm3, %v2263_v35, %v2429_v45  ;;  %v1624_v22 = vpop.xlane.xlu0 %1623 }
 0x235   :  { %v2342_v53 = vsel %vm1867_vm14, %v2341_v24, %v2337_v52  ;;  %v2410_v39 = vrot.slane %v1624_v22, %v4931_v42 }
 0x236   :  { %v2433_v61 = vsel %vm2432_vm4, %v2342_v53, %v2431_v5 }
 0x237   :  { %v2411_v40 = vsel %vm1853_vm12, %v2410_v39, %v2406_v2 }
 0x238   :  { %v1626_v47 = vpop.xlane.xlu0 %1625  ;;  %v1628_v38 = vpop.xlane.xlu1 %1627 }
 0x239   :  { %v2415_v12 = vrot.slane %v1626_v47, %v4921_v37  ;;  %v2420_v13 = vrot.slane %v1628_v38, %v4932_v56 }
 0x23b   :  { %v2416_v32 = vsel %vm1860_vm13, %v2415_v12, %v2411_v40 }
 0x23c   :  { %v2421_v60 = vsel %vm1867_vm14, %v2420_v13, %v2416_v32 }
 0x23d   :  { %v2435_v42 = vsel %vm2434_vm5, %v2421_v60, %v2433_v61 }
 0x23e   :  { %v2443_v45 = vrot.slane %v2435_v42, 4 }
 0x240   :  { %v2444_v44 = vadd.f32 %v2443_v45, %v2435_v42 }
 0x242   :  { %v2445_v58 = vrot.slane %v2444_v44, 2 }
 0x244   :  { %v2446_v26 = vadd.f32 %v2445_v58, %v2444_v44 }
 0x246   :  { %v2447_v41 = vrot.slane %v2446_v26, 1 }
 0x248   :  { %v2448_v1 = vadd.f32 %v2447_v41, %v2446_v26 }
 0x24a   :  { %v2450_v10 = vmul.f32 0.125, %v2448_v1 }
 0x24c   :  { %v2451_v31 = vsub.f32 %v2435_v42, %v2450_v10 }
 0x24e   :  { %v2452_v55 = vmul.f32 %v2451_v31, %v2451_v31 }
 0x250   :  { %v2453_v37 = vrot.slane %v2452_v55, 4 }
 0x252   :  { %v2454_v4 = vadd.f32 %v2453_v37, %v2452_v55 }
 0x254   :  { %v2455_v56 = vrot.slane %v2454_v4, 2 }
 0x256   :  { %v2456_v6 = vadd.f32 %v2455_v56, %v2454_v4 }
 0x258   :  { %v2457_v29 = vrot.slane %v2456_v6, 1 }
 0x25a   :  { %v2458_v25 = vadd.f32 %v2457_v29, %v2456_v6 }
 0x25c   :  { %v2459_v23 = vmul.f32 0.125, %v2458_v25 }
 0x25e   :  { %v2460_v30 = vadd.f32 1e-05, %v2459_v23 }
 0x260   :  { %2893 = vrsqrt.f32 %v2460_v30 }
 0x26a   :  { %v2894_v8 = vpop.eup %2893 }
 0x26b   :  { %v2462_v7 = vmul.f32 %v2894_v8, %v2451_v31 }
 0x26d   :  { %v2470_v59 = vmul.f32 %v2625_v14, %v2462_v7 }
 0x26f   :  { %v2478_v3 = vadd.f32 %v2626_v62, %v2470_v59 }
 0x271   :  { %2479 = vst [vmem:[#allocation10] sm:$0xff] %v2478_v3 }
 0x272   :  { %3042 = shalt.err (!%p3039_p8)
}
 0x273   :  { %s3043_s26 = scalar_lea.hbm %s4766_s6, 128 }
 0x274   :  { %p3044_p9 = scmp.ne.s32.totalorder %s4766_s6, %s3043_s26  ;;  %p3047_p10 = scmp.lt.u32.totalorder %s3043_s26, %s4766_s6 }
 0x276   :  { %p3049_p11 = pnand %p3047_p10, %p3044_p9 }
 0x278   :  { %3052 = shalt.err (!%p3049_p11)
}
 0x279   :  { %2489 = dma.vmem_to_hbm [thread:$0]  %s2487_s23, 128, %s4766_s6, [#allocation4]  }
 0x27a   :  { %3059 = dma.done.wait [#allocation4], 128  }
 0x27b   :  { %3060 = vsyncadd [#allocation4], 4294967168 }
 0x27c   :  { %2493 = vsyncpa [#allocation3], 1 }
 0x27d   :  { %2494 = vsyncpa [#allocation6], 1 }
 0x27e   :  { %2495 = vsyncpa [#allocation9], 1 }
 0x27f   :  { %2496 = vsyncpa [#allocation4], 1 }

</bundles_post_ra>
